<compile_context>
chip_gen: v6e
topology: v6e:2x2x1
jax: 0.10.0
libtpu: 0.0.40
codegen_flags: <defaults>
</compile_context>

<pallas_src>
import jax
import jax.numpy as jnp
from jax.experimental import pallas as pl
from jax.experimental.pallas import tpu as pltpu

_MIN_PALLAS_BYTES = 2 * 1024 * 1024   # below this, XLA's fused op wins
_MAX_ROW_BYTES = 512 * 1024           # keep an 8-row block <= 4 MiB


def _abs_diff_kernel(y_ref, x_ref, o_ref):
    # y_ref: SMEM (1,) scalar; x_ref / o_ref: VMEM (block_m, W) tiles.
    yv = y_ref[0]                     # hoist scalar read once per tile
    o_ref[...] = jnp.abs(x_ref[...] - yv)


def _block_bytes_for_device() -> int:
    """Target bytes per input block (per grid step)."""
    # 2 MiB is safe on every generation: 2 arrays x 2 buffers x 2 MiB = 8 MiB,
    # under v5e's 16 MiB scoped-VMEM default. v6e/v7x have a 32 MiB default
    # (and v7x much higher HBM BW), so larger blocks amortize per-step
    # overhead better there.
    try:
        kind = jax.devices()[0].device_kind.lower()
    except Exception:
        return 2 * 1024 * 1024
    if "v6" in kind or "v7" in kind:
        return 4 * 1024 * 1024
    return 2 * 1024 * 1024


def _abs_diff_pallas(x, y_scalar):
    """Pallas path. Precondition: the (M, W) view of x is a free bitcast."""
    orig_shape = x.shape
    W = orig_shape[-1]                       # lane dim, multiple of 128
    M = x.size // W                          # multiple of 8 (or == shape[0])
    x2 = x.reshape(M, W)                     # bitcast: minor-two tiling kept

    itemsize = x.dtype.itemsize
    row_bytes = W * itemsize
    target = _block_bytes_for_device()
    block_m = max(8, (target // row_bytes) // 8 * 8)
    block_m = min(block_m, M)
    grid = (pl.cdiv(M, block_m),)            # partial last block handled by Pallas

    out2 = pl.pallas_call(
        _abs_diff_kernel,
        out_shape=jax.ShapeDtypeStruct((M, W), x.dtype),
        grid=grid,
        in_specs=[
            pl.BlockSpec(memory_space=pltpu.SMEM),                # scalar y
            pl.BlockSpec((block_m, W), lambda i: (i, 0)),         # x block
        ],
        out_specs=pl.BlockSpec((block_m, W), lambda i: (i, 0)),
        compiler_params=pltpu.CompilerParams(
            # Shards the grid across TensorCores on v7x; near-no-op on v5e/v6e.
            dimension_semantics=("parallel",),
        ),
    )(y_scalar.reshape(1), x2)

    return out2.reshape(orig_shape)          # inverse bitcast


def my_loss(x, y):
    """Elementwise |x - y| with scalar y (matches torch.abs(x - y))."""
    x = jnp.asarray(x)
    itemsize = x.dtype.itemsize
    use_pallas = (
        jnp.issubdtype(x.dtype, jnp.floating)            # ints: keep jnp promotion
        and x.ndim >= 2
        and x.size * itemsize >= _MIN_PALLAS_BYTES       # big enough to beat XLA
        and x.shape[-1] % 128 == 0                       # lane-dense last dim
        and (x.ndim == 2 or x.shape[-2] % 8 == 0)        # 2-D view is a bitcast
        and x.shape[-1] * itemsize <= _MAX_ROW_BYTES     # block fits VMEM easily
    )
    if not use_pallas:
        # Small / non-lane-friendly / non-float inputs: XLA's fused elementwise
        # op is at the 2N-byte roofline already; a Pallas call would only add
        # launch overhead and relayout copies.
        return jnp.abs(x - jnp.asarray(y))

    y_scalar = jnp.asarray(y, dtype=x.dtype)
    return _abs_diff_pallas(x, y_scalar)


if __name__ == "__main__":
    key = jax.random.PRNGKey(0)
    k1, k2 = jax.random.split(key)
    y = jnp.float32(0.5)                      # mirrors `y = torch.tensor(0.5)`

    # (a) Module-consistent small NCHW activation: dispatches to the fused-XLA
    #     fallback (tiny + non-lane-aligned, where Pallas would be slower).
    x_small = jax.random.normal(k1, (2, 4, 16, 16), dtype=jnp.float32)
    out_small = my_loss(x_small, y)
    jax.block_until_ready(out_small)
    assert out_small.shape == x_small.shape
    assert jnp.allclose(out_small, jnp.abs(x_small - y), atol=1e-6)

    # (b) Lane-friendly tensor above the 2 MiB threshold: exercises the Pallas
    #     kernel path (2-D bitcast view, multi-step grid, partial-block safe).
    x_big = jax.random.normal(k2, (8, 1024, 256), dtype=jnp.float32)
    out_big = my_loss(x_big, y)
    jax.block_until_ready(out_big)
    assert out_big.shape == x_big.shape
    assert jnp.allclose(out_big, jnp.abs(x_big - y), atol=1e-6)

    print("KERNEL_OK")
</pallas_src>

<mosaic_0001>
module attributes {stable_mosaic.version = 11 : i64} {
  func.func @_abs_diff_kernel(%arg0: i32, %arg1: memref<1xf32, #tpu.memory_space<smem>>, %arg2: memref<2048x256xf32, #tpu.memory_space<vmem>>, %arg3: memref<2048x256xf32, #tpu.memory_space<vmem>>) attributes {dimension_semantics = [#tpu.dimension_semantics<parallel>], iteration_bounds = array<i64: 4>, scalar_prefetch = 0 : i64, scratch_operands = 0 : i64, tpu.core_type = #tpu.core_type<tc>, window_params = [{transform_indices = @transform_0, window_bounds = array<i64: 1>}, {transform_indices = @transform_1, window_bounds = array<i64: 2048, 256>}, {transform_indices = @transform_2, window_bounds = array<i64: 2048, 256>}]} {
    %c0 = arith.constant 0 : index
    %0 = memref.load %arg1[%c0] : memref<1xf32, #tpu.memory_space<smem>>
    %c0_0 = arith.constant 0 : index
    %c0_1 = arith.constant 0 : index
    %1 = vector.load %arg2[%c0_0, %c0_1] : memref<2048x256xf32, #tpu.memory_space<vmem>>, vector<2048x256xf32>
    %2 = vector.broadcast %0 : f32 to vector<2048x256xf32>
    %3 = arith.subf %1, %2 : vector<2048x256xf32>
    %4 = math.absf %3 : vector<2048x256xf32>
    %c0_2 = arith.constant 0 : index
    %c0_3 = arith.constant 0 : index
    %5 = vector.load %arg3[%c0_2, %c0_3] : memref<2048x256xf32, #tpu.memory_space<vmem>>, vector<2048x256xf32>
    tpu.vector_store %arg3[%c0_2, %c0_3], %4 {strides = array<i32>} : memref<2048x256xf32, #tpu.memory_space<vmem>>, vector<2048x256xf32>,
    return
  }
  func.func @transform_0(%arg0: i32) -> i32 {
    %c0_i32 = arith.constant 0 : i32
    %c0_i32_0 = arith.constant 0 : i32
    return %c0_i32 : i32
  }
  func.func @transform_1(%arg0: i32) -> (i32, i32) {
    %c0_i32 = arith.constant 0 : i32
    %c0_i32_0 = arith.constant 0 : i32
    return %arg0, %c0_i32 : i32, i32
  }
  func.func @transform_2(%arg0: i32) -> (i32, i32) {
    %c0_i32 = arith.constant 0 : i32
    %c0_i32_0 = arith.constant 0 : i32
    return %arg0, %c0_i32 : i32, i32
  }
}

</mosaic_0001>

<bundles_post_ra>
// kernel: tpu_custom_call.1
= control target key start
LH: loop header
LB: loop body
LE: loop exit
PB: predicated region body
PF: predicated region fallthrough
CT: control target
= control target key end

     0   :  { %s4187_s0 = inlined_call_operand.<no memory space> [shape: f32[1], index: 0, kind: input, shape index: {}]   ;;  %s4188_s1 = inlined_call_operand.hbm [shape: f32[8192,256], index: 1, kind: input, shape index: {}]   ;;  %s4189_s2 = inlined_call_operand.hbm [shape: f32[8192,256], index: 2, kind: output, shape index: {}]  }
   0x1   :  { %7 = sst [smem:[#allocation2]] %s4187_s0 }
   0x2   :  { %8 = vsyncpa [#allocation4], 0 }
   0x3   :  { %10 = vsyncpa [#allocation4 + $0x1], 0 }
   0x4   :  { %11 = vsyncpa [#allocation5], 0 }
   0x5   :  { %13 = vsyncpa [#allocation5 + $0x1], 0  ;;  %s2492_s11 = smov 0   ;;  %s2494_s12 = smov 0  }
   0x6   :  { %s2496_s13 = smov 0   ;;  %s2498_s14 = smov 0  }
   0x7 LB: > { %s2513_s0 = sadd.s32 4294967295, %s2466_s14   ;;  %s2304_s15 = sadd.s32 4294967294, %s2466_s14   ;;  %s2466_s14 = sphi %s2498_s14, %s4203_s14   ;;  %s2462_s13 = sphi %s2496_s13, %s4202_s13   ;;  %s2458_s12 = sphi %s2494_s12, %s4201_s12   ;;  %s2454_s11 = sphi %s2492_s11, %s4200_s11  }
   0x8   : > { %s2517_s16 = sadd.s32 1, %s2466_s14   ;;  %s47_s17 = sadd.s32 1, %s2462_s13 }
   0x9   : > { %s44_s18 = ssub.s32 %s2466_s14, %s2517_s16  ;;  %p54_p0 = scmp.ne.s32.totalorder %s2462_s13, %s2458_s12 }
   0xa   : > { %p45_p1 = scmp.eq.s32.totalorder %s44_s18, 0  ;;  %p55_p2 = scmp.eq.s32.totalorder %s2466_s14, 0 }
   0xb   : > { %p60_p3 = scmp.ne.s32.totalorder %s2458_s12, %s2454_s11  ;;  %p61_p4 = scmp.eq.s32.totalorder %s2513_s0, 0 }
   0xc   : > { %s2529_s19 = scalar_select %p45_p1, %s2462_s13, %s47_s17  }
   0xd   : > { %p2531_p5 = por %p55_p2, %p54_p0  ;;  %p2535_p6 = por %p61_p4, %p60_p3 }
   0xe   : > { %p84_p7 = scmp.eq.s32.totalorder %s2513_s0, 3  ;;  %p90_p8 = scmp.eq.s32.totalorder %s2304_s15, 3 }
   0xf   : > { %s4193_s21 = scalar_select %p2535_p6, 1, 0 }
  0x10   : > { %p2336_p9 = scmp.lt.s32.totalorder %s2466_s14, 4  ;;  %p2541_p10 = por %p84_p7, %p54_p0 }
  0x11   : > { %p2545_p11 = por %p90_p8, %p60_p3  ;;  %s113_s24 = sand.u32 1, %s2462_s13  }
  0x12   : > { %s4194_s22 = scalar_select %p2541_p10, 1, 0 }
  0x13   : > { %s4195_s23 = scalar_select %p2545_p11, 1, 0 }
  0x14   : > { %s2321_s25 = sshll.u32 %s2466_s14, 16  ;;  %s2307_s26 = sshll.u32 %s113_s24, 12 }
  0x15   : > { %s2554_s29 = scalar_lea.hbm %s4188_s1, %s2321_s25  ;;  %s117_s30 = scalar_lea.vmem [#allocation3], %s2307_s26 }
  0x16   : > { %s125_s3 = sshll.u32 %s117_s30, 4  ;;  %p2558_p12 = pnand %p2336_p9, %p2531_p5  ;;  %s2562_s3 = int_to_ptr.vmem [resolvable:$true] %s125_s3 }
  0x17   : > { %s2564_s5 = scalar_lea.sflag [#allocation4], %s113_s24  ;;  %s2374_s6 = scalar_lea.hbm %s2554_s29, 65536 }
  0x18   : > { %p2375_p13 = scmp.ne.s32.totalorder %s2554_s29, %s2374_s6  ;;  %p2376_p0 = pneg %p2558_p12 }
  0x19   : > { %s2379_s9 = scalar_lea.hbm %s4188_s1, 262144  ;;  %p2380_p3 = scmp.lt.s32.totalorder %s2554_s29, %s4188_s1 }
  0x1a   : > { %p2377_p1 = pnand %p2376_p0, %p2375_p13  ;;  %p2381_p4 = scmp.lt.s32.totalorder %s2379_s9, %s2374_s6 }
  0x1c   : > { %p2378_p2 = pneg %p2377_p1  ;;  %p2382_p5 = por %p2381_p4, %p2380_p3 }
  0x1e   : > { %p2383_p7 = pnand %p2382_p5, %p2378_p2 }
  0x20   : > { %2386 = shalt.err (!%p2383_p7)
}
  0x21   : > { %s2387_s17 = scalar_lea.vmem %s2562_s3, 65536  ;;  %s2468_s18 = smov [#allocation3]  }
  0x22   : > { %p2388_p8 = scmp.ne.s32.totalorder %s2562_s3, %s2387_s17  ;;  %s2392_s20 = sshll.u32 %s2468_s18, 4  ;;  %s2393_s20 = int_to_ptr.vmem [resolvable:$false] %s2392_s20 }
  0x23   : > { %s2394_s24 = scalar_lea.vmem %s2393_s20, 131072  ;;  %p2395_p1 = scmp.lt.s32.totalorder %s2562_s3, %s2393_s20 }
  0x24   : > { %p2390_p9 = pnand %p2388_p8, %p2376_p0  ;;  %p2396_p11 = scmp.lt.s32.totalorder %s2394_s24, %s2387_s17 }
  0x26   : > { %p2391_p13 = pneg %p2390_p9  ;;  %p2397_p10 = por %p2396_p11, %p2395_p1 }
  0x28   : > { %p2398_p6 = pnand %p2397_p10, %p2391_p13 }
  0x2a   : > { %2401 = shalt.err (!%p2398_p6)
}
  0x2b   : > { %s2469_s25 = smov 256   ;;  %s2470_s26 = smov 16  }
  0x2c   : > { %2331 = dma.hbm_to_vmem [thread:$0]  (!%p2558_p12), %s2554_s29, 65536, %s2562_s3, %s2564_s5, %s2469_s25, %s2469_s25, %s2470_s26  }
  0x2d   : > { %p2311_p0 = scmp.ge.s32.totalorder %s2466_s14, 1  ;;  %p133_p2 = scmp.lt.s32.totalorder %s2466_s14, 5 }
  0x2f   : > { %p134_p3 = pnand %p2311_p0, %p133_p2 }
  0x30   : > { %s2588_s27 = sand.u32 (!%p134_p3), 1, %s2458_s12   ;;  %p4197_p6 = scmp.ne.s32.totalorder (!%p134_p3), %s4193_s21, 0 }
  0x31   : > { %137 = sbr.rel (%p134_p3) target bundleno = 416 (0x1a0), region = 28  ;;  %s2312_s28 = sshll.u32 (!%p134_p3), %s2588_s27, 12 }
  0x32   : > { %s140_s30 = scalar_lea.sflag (!%p134_p3), [#allocation4], %s2588_s27  ;;  %s2592_s6 = scalar_lea.vmem (!%p134_p3), [#allocation3], %s2312_s28 }
  0x36   : > { %2445 = dma.done.wait (%p4197_p6), %s140_s30, 65536  }
  0x37   : > { %2447 = vsyncadd (%p4197_p6), %s140_s30, 4294901760  ;;  %s166_s29 = sld [smem:[#allocation2]]  ;;  %v167_v0 = vld [vmem:[%s2592_s6] sm:$0xff]  ;;  %v168_v2 = vld [vmem:[%s2592_s6 + $0x8] sm:$0xff]  ;;  %s2617_s21 = scalar_lea.vmem [#allocation6], %s2312_s28 }
  0x38   : > { %v169_v3 = vld [vmem:[%s2592_s6 + $0x10] sm:$0xff]  ;;  %v170_v7 = vld [vmem:[%s2592_s6 + $0x18] sm:$0xff]  ;;  %v171_v8 = vld [vmem:[%s2592_s6 + $0x20] sm:$0xff]  ;;  %s2323_s3 = sshll.u32 %s2513_s0, 16  ;;  %s2231_s4 = sshll.u32 %s2617_s21, 4  ;;  %s4140_s4 = int_to_ptr.vmem [resolvable:$true] %s2231_s4 }
  0x39   : > { %v172_v9 = vld [vmem:[%s2592_s6 + $0x28] sm:$0xff]  ;;  %v173_v13 = vld [vmem:[%s2592_s6 + $0x30] sm:$0xff]  ;;  %v174_v14 = vld [vmem:[%s2592_s6 + $0x38] sm:$0xff]  ;;  %s4138_s7 = scalar_lea.hbm %s4189_s2, %s2323_s3  ;;  %s2217_s8 = scalar_lea.sflag [#allocation5], %s2588_s27 }
  0x3a   : > { %v175_v15 = vld [vmem:[%s2592_s6 + $0x40] sm:$0xff]  ;;  %v176_v26 = vld [vmem:[%s2592_s6 + $0x48] sm:$0xff]  ;;  %v177_v27 = vld [vmem:[%s2592_s6 + $0x50] sm:$0xff]  ;;  %s2402_s9 = scalar_lea.vmem %s4140_s4, 65536  ;;  %p4198_p11 = scmp.ne.s32.totalorder %s4194_s22, 0 }
  0x3b   : > { %v178_v28 = vld [vmem:[%s2592_s6 + $0x58] sm:$0xff]  ;;  %v179_v33 = vld [vmem:[%s2592_s6 + $0x60] sm:$0xff]  ;;  %v180_v34 = vld [vmem:[%s2592_s6 + $0x68] sm:$0xff]  ;;  %p2403_p10 = scmp.ne.s32.totalorder %s4140_s4, %s2402_s9  ;;  %s2471_s10 = smov [#allocation6]  }
  0x3c   : > { %v181_v35 = vld [vmem:[%s2592_s6 + $0x70] sm:$0xff]  ;;  %v182_v40 = vld [vmem:[%s2592_s6 + $0x78] sm:$0xff]  ;;  %v183_v41 = vld [vmem:[%s2592_s6 + $0x80] sm:$0xff]  ;;  %s2406_s15 = sshll.u32 %s2471_s10, 4  ;;  %s2407_s15 = int_to_ptr.vmem [resolvable:$false] %s2406_s15 }
  0x3d   : > { %v2599_v1 = vstv %s166_s29  ;;  %v184_v42 = vld [vmem:[%s2592_s6 + $0x88] sm:$0xff]  ;;  %v185_v53 = vld [vmem:[%s2592_s6 + $0x90] sm:$0xff]  ;;  %v186_v54 = vld [vmem:[%s2592_s6 + $0x98] sm:$0xff]  ;;  %p2404_p12 = pnand %p2403_p10, %p4198_p11  ;;  %s2408_s17 = scalar_lea.vmem %s2407_s15, 131072 }
  0x3e   : > { %v680_v4 = vsub.f32 %v167_v0, %v2599_v1  ;;  %v681_v5 = vsub.f32 %v168_v2, %v2599_v1  ;;  %v682_v6 = vsub.f32 %v169_v3, %v2599_v1  ;;  %v683_v10 = vsub.f32 %v170_v7, %v2599_v1  ;;  %v187_v55 = vld [vmem:[%s2592_s6 + $0xa0] sm:$0xff]  ;;  %v188_v60 = vld [vmem:[%s2592_s6 + $0xa8] sm:$0xff]  ;;  %v189_v61 = vld [vmem:[%s2592_s6 + $0xb0] sm:$0xff]  ;;  %p2409_p5 = scmp.lt.s32.totalorder %s4140_s4, %s2407_s15  ;;  %p2410_p7 = scmp.lt.s32.totalorder %s2408_s17, %s2402_s9 }
  0x3f   : > { %v684_v11 = vsub.f32 %v171_v8, %v2599_v1  ;;  %v685_v12 = vsub.f32 %v172_v9, %v2599_v1  ;;  %v686_v19 = vsub.f32 %v173_v13, %v2599_v1  ;;  %v687_v23 = vsub.f32 %v174_v14, %v2599_v1  ;;  %v190_v62 = vld [vmem:[%s2592_s6 + $0xb8] sm:$0xff]  ;;  %p2405_p4 = pneg %p2404_p12 }
  0x40   : > { %v1192_v16 = vand.u32 2147483647, %v680_v4  ;;  %v1193_v17 = vand.u32 2147483647, %v681_v5  ;;  %v1194_v18 = vand.u32 2147483647, %v682_v6  ;;  %v688_v25 = vsub.f32 %v175_v15, %v2599_v1  ;;  %p2411_p8 = por %p2410_p7, %p2409_p5 }
  0x41   : > { %v1195_v20 = vand.u32 2147483647, %v683_v10  ;;  %v1196_v21 = vand.u32 2147483647, %v684_v11  ;;  %v1197_v22 = vand.u32 2147483647, %v685_v12  ;;  %v689_v30 = vsub.f32 %v176_v26, %v2599_v1 }
  0x42   : > { %1704 = vst [vmem:[%s2617_s21] sm:$0xff] %v1192_v16  ;;  %1705 = vst [vmem:[%s2617_s21 + $0x8] sm:$0xff] %v1193_v17  ;;  %v1198_v24 = vand.u32 2147483647, %v686_v19  ;;  %v1199_v29 = vand.u32 2147483647, %v687_v23  ;;  %v690_v31 = vsub.f32 %v177_v27, %v2599_v1  ;;  %v691_v32 = vsub.f32 %v178_v28, %v2599_v1  ;;  %v191_v4 = vld [vmem:[%s2592_s6 + $0xc0] sm:$0xff]  ;;  %p2412_p9 = pnand %p2411_p8, %p2405_p4 }
  0x43   : > { %1706 = vst [vmem:[%s2617_s21 + $0x10] sm:$0xff] %v1194_v18  ;;  %1707 = vst [vmem:[%s2617_s21 + $0x18] sm:$0xff] %v1195_v20  ;;  %v1200_v36 = vand.u32 2147483647, %v688_v25  ;;  %v692_v37 = vsub.f32 %v179_v33, %v2599_v1  ;;  %v693_v38 = vsub.f32 %v180_v34, %v2599_v1  ;;  %v694_v39 = vsub.f32 %v181_v35, %v2599_v1  ;;  %v192_v5 = vld [vmem:[%s2592_s6 + $0xc8] sm:$0xff]  ;;  %v193_v6 = vld [vmem:[%s2592_s6 + $0xd0] sm:$0xff] }
  0x44   : > { %1708 = vst [vmem:[%s2617_s21 + $0x20] sm:$0xff] %v1196_v21  ;;  %1709 = vst [vmem:[%s2617_s21 + $0x28] sm:$0xff] %v1197_v22  ;;  %v1201_v43 = vand.u32 2147483647, %v689_v30  ;;  %v1202_v44 = vand.u32 2147483647, %v690_v31  ;;  %v695_v46 = vsub.f32 %v182_v40, %v2599_v1  ;;  %v696_v50 = vsub.f32 %v183_v41, %v2599_v1 }
  0x45   : > { %1710 = vst [vmem:[%s2617_s21 + $0x30] sm:$0xff] %v1198_v24  ;;  %1711 = vst [vmem:[%s2617_s21 + $0x38] sm:$0xff] %v1199_v29  ;;  %v1203_v45 = vand.u32 2147483647, %v691_v32  ;;  %v1204_v47 = vand.u32 2147483647, %v692_v37  ;;  %v697_v52 = vsub.f32 %v184_v42, %v2599_v1  ;;  %v698_v57 = vsub.f32 %v185_v53, %v2599_v1 }
  0x46   : > { %1712 = vst [vmem:[%s2617_s21 + $0x40] sm:$0xff] %v1200_v36  ;;  %v1205_v48 = vand.u32 2147483647, %v693_v38  ;;  %v1206_v49 = vand.u32 2147483647, %v694_v39  ;;  %1713 = vst [vmem:[%s2617_s21 + $0x48] sm:$0xff] %v1201_v43  ;;  %v699_v58 = vsub.f32 %v186_v54, %v2599_v1  ;;  %v700_v59 = vsub.f32 %v187_v55, %v2599_v1 }
  0x47   : > { %1714 = vst [vmem:[%s2617_s21 + $0x50] sm:$0xff] %v1202_v44  ;;  %1715 = vst [vmem:[%s2617_s21 + $0x58] sm:$0xff] %v1203_v45  ;;  %v1207_v51 = vand.u32 2147483647, %v695_v46  ;;  %v1208_v56 = vand.u32 2147483647, %v696_v50  ;;  %v701_v0 = vsub.f32 %v188_v60, %v2599_v1  ;;  %v702_v2 = vsub.f32 %v189_v61, %v2599_v1 }
  0x48   : > { %1716 = vst [vmem:[%s2617_s21 + $0x60] sm:$0xff] %v1204_v47  ;;  %1717 = vst [vmem:[%s2617_s21 + $0x68] sm:$0xff] %v1205_v48  ;;  %v1209_v63 = vand.u32 2147483647, %v697_v52  ;;  %v703_v3 = vsub.f32 %v190_v62, %v2599_v1  ;;  %v1210_v7 = vand.u32 2147483647, %v698_v57  ;;  %v704_v10 = vsub.f32 %v191_v4, %v2599_v1 }
  0x49   : > { %1718 = vst [vmem:[%s2617_s21 + $0x70] sm:$0xff] %v1206_v49  ;;  %1719 = vst [vmem:[%s2617_s21 + $0x78] sm:$0xff] %v1207_v51  ;;  %v1211_v8 = vand.u32 2147483647, %v699_v58  ;;  %v1212_v9 = vand.u32 2147483647, %v700_v59  ;;  %v705_v14 = vsub.f32 %v192_v5, %v2599_v1  ;;  %v706_v16 = vsub.f32 %v193_v6, %v2599_v1 }
  0x4a   : > { %1720 = vst [vmem:[%s2617_s21 + $0x80] sm:$0xff] %v1208_v56  ;;  %1721 = vst [vmem:[%s2617_s21 + $0x88] sm:$0xff] %v1209_v63  ;;  %v1213_v11 = vand.u32 2147483647, %v701_v0  ;;  %v1214_v12 = vand.u32 2147483647, %v702_v2 }
  0x4b   : > { %v1215_v13 = vand.u32 2147483647, %v703_v3  ;;  %1722 = vst [vmem:[%s2617_s21 + $0x90] sm:$0xff] %v1210_v7  ;;  %1723 = vst [vmem:[%s2617_s21 + $0x98] sm:$0xff] %v1211_v8  ;;  %v1216_v15 = vand.u32 2147483647, %v704_v10 }
  0x4c   : > { %1724 = vst [vmem:[%s2617_s21 + $0xa0] sm:$0xff] %v1212_v9  ;;  %v194_v17 = vld [vmem:[%s2592_s6 + $0xd8] sm:$0xff]  ;;  %v195_v18 = vld [vmem:[%s2592_s6 + $0xe0] sm:$0xff]  ;;  %v196_v19 = vld [vmem:[%s2592_s6 + $0xe8] sm:$0xff]  ;;  %v1217_v20 = vand.u32 2147483647, %v705_v14 }
  0x4d   : > { %1725 = vst [vmem:[%s2617_s21 + $0xa8] sm:$0xff] %v1213_v11  ;;  %1726 = vst [vmem:[%s2617_s21 + $0xb0] sm:$0xff] %v1214_v12  ;;  %v707_v21 = vsub.f32 %v194_v17, %v2599_v1  ;;  %v708_v22 = vsub.f32 %v195_v18, %v2599_v1  ;;  %v709_v23 = vsub.f32 %v196_v19, %v2599_v1  ;;  %v197_v24 = vld [vmem:[%s2592_s6 + $0xf0] sm:$0xff]  ;;  %v198_v25 = vld [vmem:[%s2592_s6 + $0xf8] sm:$0xff]  ;;  %v1218_v27 = vand.u32 2147483647, %v706_v16 }
  0x4e   : > { %1727 = vst [vmem:[%s2617_s21 + $0xb8] sm:$0xff] %v1215_v13  ;;  %v199_v26 = vld [vmem:[%s2592_s6 + $0x100] sm:$0xff]  ;;  %1728 = vst [vmem:[%s2617_s21 + $0xc0] sm:$0xff] %v1216_v15  ;;  %v710_v28 = vsub.f32 %v197_v24, %v2599_v1  ;;  %v711_v29 = vsub.f32 %v198_v25, %v2599_v1  ;;  %v200_v31 = vld [vmem:[%s2592_s6 + $0x108] sm:$0xff] }
  0x4f   : > { %v712_v30 = vsub.f32 %v199_v26, %v2599_v1  ;;  %v201_v32 = vld [vmem:[%s2592_s6 + $0x110] sm:$0xff]  ;;  %v202_v33 = vld [vmem:[%s2592_s6 + $0x118] sm:$0xff]  ;;  %1729 = vst [vmem:[%s2617_s21 + $0xc8] sm:$0xff] %v1217_v20  ;;  %v1219_v34 = vand.u32 2147483647, %v707_v21  ;;  %v713_v37 = vsub.f32 %v200_v31, %v2599_v1  ;;  %1730 = vst [vmem:[%s2617_s21 + $0xd0] sm:$0xff] %v1218_v27 }
  0x50   : > { %v1220_v35 = vand.u32 2147483647, %v708_v22  ;;  %v1221_v36 = vand.u32 2147483647, %v709_v23  ;;  %v1222_v38 = vand.u32 2147483647, %v710_v28  ;;  %v714_v41 = vsub.f32 %v201_v32, %v2599_v1 }
  0x51   : > { %v1223_v39 = vand.u32 2147483647, %v711_v29  ;;  %v1224_v40 = vand.u32 2147483647, %v712_v30  ;;  %1731 = vst [vmem:[%s2617_s21 + $0xd8] sm:$0xff] %v1219_v34  ;;  %v715_v43 = vsub.f32 %v202_v33, %v2599_v1  ;;  %v203_v44 = vld [vmem:[%s2592_s6 + $0x120] sm:$0xff] }
  0x52   : > { %1732 = vst [vmem:[%s2617_s21 + $0xe0] sm:$0xff] %v1220_v35  ;;  %1733 = vst [vmem:[%s2617_s21 + $0xe8] sm:$0xff] %v1221_v36  ;;  %v1225_v42 = vand.u32 2147483647, %v713_v37  ;;  %v204_v45 = vld [vmem:[%s2592_s6 + $0x128] sm:$0xff]  ;;  %v205_v46 = vld [vmem:[%s2592_s6 + $0x130] sm:$0xff]  ;;  %v716_v48 = vsub.f32 %v203_v44, %v2599_v1 }
  0x53   : > { %1734 = vst [vmem:[%s2617_s21 + $0xf0] sm:$0xff] %v1222_v38  ;;  %1735 = vst [vmem:[%s2617_s21 + $0xf8] sm:$0xff] %v1223_v39  ;;  %v1226_v47 = vand.u32 2147483647, %v714_v41  ;;  %v717_v49 = vsub.f32 %v204_v45, %v2599_v1  ;;  %v718_v50 = vsub.f32 %v205_v46, %v2599_v1  ;;  %v206_v51 = vld [vmem:[%s2592_s6 + $0x138] sm:$0xff]  ;;  %v207_v52 = vld [vmem:[%s2592_s6 + $0x140] sm:$0xff] }
  0x54   : > { %1736 = vst [vmem:[%s2617_s21 + $0x100] sm:$0xff] %v1224_v40  ;;  %v208_v53 = vld [vmem:[%s2592_s6 + $0x148] sm:$0xff]  ;;  %1737 = vst [vmem:[%s2617_s21 + $0x108] sm:$0xff] %v1225_v42  ;;  %v1227_v54 = vand.u32 2147483647, %v715_v43  ;;  %v719_v55 = vsub.f32 %v206_v51, %v2599_v1  ;;  %v720_v56 = vsub.f32 %v207_v52, %v2599_v1  ;;  %v209_v58 = vld [vmem:[%s2592_s6 + $0x150] sm:$0xff] }
  0x55   : > { %v721_v57 = vsub.f32 %v208_v53, %v2599_v1  ;;  %v210_v59 = vld [vmem:[%s2592_s6 + $0x158] sm:$0xff]  ;;  %v211_v60 = vld [vmem:[%s2592_s6 + $0x160] sm:$0xff]  ;;  %1738 = vst [vmem:[%s2617_s21 + $0x110] sm:$0xff] %v1226_v47  ;;  %v1228_v61 = vand.u32 2147483647, %v716_v48  ;;  %v722_v0 = vsub.f32 %v209_v58, %v2599_v1  ;;  %v212_v8 = vld [vmem:[%s2592_s6 + $0x168] sm:$0xff] }
  0x56   : > { %v1229_v62 = vand.u32 2147483647, %v717_v49  ;;  %v1230_v63 = vand.u32 2147483647, %v718_v50  ;;  %1739 = vst [vmem:[%s2617_s21 + $0x118] sm:$0xff] %v1227_v54  ;;  %v723_v5 = vsub.f32 %v210_v59, %v2599_v1  ;;  %v724_v7 = vsub.f32 %v211_v60, %v2599_v1  ;;  %v213_v9 = vld [vmem:[%s2592_s6 + $0x170] sm:$0xff] }
  0x57   : > { %v1231_v2 = vand.u32 2147483647, %v719_v55  ;;  %v1232_v3 = vand.u32 2147483647, %v720_v56  ;;  %v1233_v4 = vand.u32 2147483647, %v721_v57  ;;  %v725_v12 = vsub.f32 %v212_v8, %v2599_v1 }
  0x58   : > { %1740 = vst [vmem:[%s2617_s21 + $0x120] sm:$0xff] %v1228_v61  ;;  %1741 = vst [vmem:[%s2617_s21 + $0x128] sm:$0xff] %v1229_v62  ;;  %v1234_v6 = vand.u32 2147483647, %v722_v0  ;;  %v214_v10 = vld [vmem:[%s2592_s6 + $0x178] sm:$0xff]  ;;  %v726_v13 = vsub.f32 %v213_v9, %v2599_v1  ;;  %v215_v15 = vld [vmem:[%s2592_s6 + $0x180] sm:$0xff] }
  0x59   : > { %1742 = vst [vmem:[%s2617_s21 + $0x130] sm:$0xff] %v1230_v63  ;;  %1743 = vst [vmem:[%s2617_s21 + $0x138] sm:$0xff] %v1231_v2  ;;  %v1235_v11 = vand.u32 2147483647, %v723_v5  ;;  %v727_v14 = vsub.f32 %v214_v10, %v2599_v1  ;;  %v216_v16 = vld [vmem:[%s2592_s6 + $0x188] sm:$0xff]  ;;  %v217_v17 = vld [vmem:[%s2592_s6 + $0x190] sm:$0xff]  ;;  %v728_v19 = vsub.f32 %v215_v15, %v2599_v1 }
  0x5a   : > { %1744 = vst [vmem:[%s2617_s21 + $0x140] sm:$0xff] %v1232_v3  ;;  %1745 = vst [vmem:[%s2617_s21 + $0x148] sm:$0xff] %v1233_v4  ;;  %v1236_v18 = vand.u32 2147483647, %v724_v7  ;;  %v729_v20 = vsub.f32 %v216_v16, %v2599_v1  ;;  %v730_v21 = vsub.f32 %v217_v17, %v2599_v1  ;;  %v218_v22 = vld [vmem:[%s2592_s6 + $0x198] sm:$0xff]  ;;  %v219_v23 = vld [vmem:[%s2592_s6 + $0x1a0] sm:$0xff] }
  0x5b   : > { %1746 = vst [vmem:[%s2617_s21 + $0x150] sm:$0xff] %v1234_v6  ;;  %v220_v24 = vld [vmem:[%s2592_s6 + $0x1a8] sm:$0xff]  ;;  %1747 = vst [vmem:[%s2617_s21 + $0x158] sm:$0xff] %v1235_v11  ;;  %v1237_v25 = vand.u32 2147483647, %v725_v12  ;;  %v731_v28 = vsub.f32 %v218_v22, %v2599_v1  ;;  %v732_v32 = vsub.f32 %v219_v23, %v2599_v1  ;;  %v221_v35 = vld [vmem:[%s2592_s6 + $0x1b0] sm:$0xff] }
  0x5c   : > { %v1238_v26 = vand.u32 2147483647, %v726_v13  ;;  %v1239_v27 = vand.u32 2147483647, %v727_v14  ;;  %1748 = vst [vmem:[%s2617_s21 + $0x160] sm:$0xff] %v1236_v18  ;;  %v733_v34 = vsub.f32 %v220_v24, %v2599_v1  ;;  %v222_v36 = vld [vmem:[%s2592_s6 + $0x1b8] sm:$0xff]  ;;  %v734_v39 = vsub.f32 %v221_v35, %v2599_v1 }
  0x5d   : > { %v1240_v29 = vand.u32 2147483647, %v728_v19  ;;  %v1241_v30 = vand.u32 2147483647, %v729_v20  ;;  %v1242_v31 = vand.u32 2147483647, %v730_v21  ;;  %v735_v40 = vsub.f32 %v222_v36, %v2599_v1 }
  0x5e   : > { %1749 = vst [vmem:[%s2617_s21 + $0x168] sm:$0xff] %v1237_v25  ;;  %1750 = vst [vmem:[%s2617_s21 + $0x170] sm:$0xff] %v1238_v26  ;;  %v1243_v33 = vand.u32 2147483647, %v731_v28  ;;  %v223_v37 = vld [vmem:[%s2592_s6 + $0x1c0] sm:$0xff]  ;;  %v224_v42 = vld [vmem:[%s2592_s6 + $0x1c8] sm:$0xff] }
  0x5f   : > { %1751 = vst [vmem:[%s2617_s21 + $0x178] sm:$0xff] %v1239_v27  ;;  %1752 = vst [vmem:[%s2617_s21 + $0x180] sm:$0xff] %v1240_v29  ;;  %v1244_v38 = vand.u32 2147483647, %v732_v32  ;;  %v736_v41 = vsub.f32 %v223_v37, %v2599_v1  ;;  %v225_v43 = vld [vmem:[%s2592_s6 + $0x1d0] sm:$0xff]  ;;  %v226_v44 = vld [vmem:[%s2592_s6 + $0x1d8] sm:$0xff]  ;;  %v737_v46 = vsub.f32 %v224_v42, %v2599_v1 }
  0x60   : > { %1753 = vst [vmem:[%s2617_s21 + $0x188] sm:$0xff] %v1241_v30  ;;  %1754 = vst [vmem:[%s2617_s21 + $0x190] sm:$0xff] %v1242_v31  ;;  %v1245_v45 = vand.u32 2147483647, %v733_v34  ;;  %v738_v47 = vsub.f32 %v225_v43, %v2599_v1  ;;  %v739_v48 = vsub.f32 %v226_v44, %v2599_v1  ;;  %v227_v49 = vld [vmem:[%s2592_s6 + $0x1e0] sm:$0xff]  ;;  %v228_v50 = vld [vmem:[%s2592_s6 + $0x1e8] sm:$0xff] }
  0x61   : > { %1755 = vst [vmem:[%s2617_s21 + $0x198] sm:$0xff] %v1243_v33  ;;  %v229_v51 = vld [vmem:[%s2592_s6 + $0x1f0] sm:$0xff]  ;;  %1756 = vst [vmem:[%s2617_s21 + $0x1a0] sm:$0xff] %v1244_v38  ;;  %v1246_v52 = vand.u32 2147483647, %v734_v39  ;;  %v740_v55 = vsub.f32 %v227_v49, %v2599_v1  ;;  %v741_v59 = vsub.f32 %v228_v50, %v2599_v1  ;;  %v230_v62 = vld [vmem:[%s2592_s6 + $0x1f8] sm:$0xff] }
  0x62   : > { %v1247_v53 = vand.u32 2147483647, %v735_v40  ;;  %v1248_v54 = vand.u32 2147483647, %v736_v41  ;;  %1757 = vst [vmem:[%s2617_s21 + $0x1a8] sm:$0xff] %v1245_v45  ;;  %v742_v61 = vsub.f32 %v229_v51, %v2599_v1  ;;  %v231_v63 = vld [vmem:[%s2592_s6 + $0x200] sm:$0xff]  ;;  %v743_v3 = vsub.f32 %v230_v62, %v2599_v1 }
  0x63   : > { %v1249_v56 = vand.u32 2147483647, %v737_v46  ;;  %v1250_v57 = vand.u32 2147483647, %v738_v47  ;;  %v1251_v58 = vand.u32 2147483647, %v739_v48  ;;  %v744_v4 = vsub.f32 %v231_v63, %v2599_v1 }
  0x64   : > { %1758 = vst [vmem:[%s2617_s21 + $0x1b0] sm:$0xff] %v1246_v52  ;;  %1759 = vst [vmem:[%s2617_s21 + $0x1b8] sm:$0xff] %v1247_v53  ;;  %v1252_v60 = vand.u32 2147483647, %v740_v55  ;;  %v232_v0 = vld [vmem:[%s2592_s6 + $0x208] sm:$0xff]  ;;  %v233_v6 = vld [vmem:[%s2592_s6 + $0x210] sm:$0xff] }
  0x65   : > { %1760 = vst [vmem:[%s2617_s21 + $0x1c0] sm:$0xff] %v1248_v54  ;;  %1761 = vst [vmem:[%s2617_s21 + $0x1c8] sm:$0xff] %v1249_v56  ;;  %v1253_v2 = vand.u32 2147483647, %v741_v59  ;;  %v745_v5 = vsub.f32 %v232_v0, %v2599_v1  ;;  %v234_v7 = vld [vmem:[%s2592_s6 + $0x218] sm:$0xff]  ;;  %v235_v8 = vld [vmem:[%s2592_s6 + $0x220] sm:$0xff]  ;;  %v746_v10 = vsub.f32 %v233_v6, %v2599_v1 }
  0x66   : > { %1762 = vst [vmem:[%s2617_s21 + $0x1d0] sm:$0xff] %v1250_v57  ;;  %1763 = vst [vmem:[%s2617_s21 + $0x1d8] sm:$0xff] %v1251_v58  ;;  %v1254_v9 = vand.u32 2147483647, %v742_v61  ;;  %v747_v11 = vsub.f32 %v234_v7, %v2599_v1  ;;  %v748_v12 = vsub.f32 %v235_v8, %v2599_v1  ;;  %v236_v13 = vld [vmem:[%s2592_s6 + $0x228] sm:$0xff]  ;;  %v237_v14 = vld [vmem:[%s2592_s6 + $0x230] sm:$0xff] }
  0x67   : > { %1764 = vst [vmem:[%s2617_s21 + $0x1e0] sm:$0xff] %v1252_v60  ;;  %v238_v15 = vld [vmem:[%s2592_s6 + $0x238] sm:$0xff]  ;;  %1765 = vst [vmem:[%s2617_s21 + $0x1e8] sm:$0xff] %v1253_v2  ;;  %v1255_v16 = vand.u32 2147483647, %v743_v3  ;;  %v749_v19 = vsub.f32 %v236_v13, %v2599_v1  ;;  %v750_v23 = vsub.f32 %v237_v14, %v2599_v1  ;;  %v239_v26 = vld [vmem:[%s2592_s6 + $0x240] sm:$0xff] }
  0x68   : > { %v1256_v17 = vand.u32 2147483647, %v744_v4  ;;  %v1257_v18 = vand.u32 2147483647, %v745_v5  ;;  %1766 = vst [vmem:[%s2617_s21 + $0x1f0] sm:$0xff] %v1254_v9  ;;  %v751_v25 = vsub.f32 %v238_v15, %v2599_v1  ;;  %v240_v27 = vld [vmem:[%s2592_s6 + $0x248] sm:$0xff]  ;;  %v752_v30 = vsub.f32 %v239_v26, %v2599_v1 }
  0x69   : > { %v1258_v20 = vand.u32 2147483647, %v746_v10  ;;  %v1259_v21 = vand.u32 2147483647, %v747_v11  ;;  %v1260_v22 = vand.u32 2147483647, %v748_v12  ;;  %v753_v31 = vsub.f32 %v240_v27, %v2599_v1 }
  0x6a   : > { %1767 = vst [vmem:[%s2617_s21 + $0x1f8] sm:$0xff] %v1255_v16  ;;  %1768 = vst [vmem:[%s2617_s21 + $0x200] sm:$0xff] %v1256_v17  ;;  %v1261_v24 = vand.u32 2147483647, %v749_v19  ;;  %v241_v28 = vld [vmem:[%s2592_s6 + $0x250] sm:$0xff]  ;;  %v242_v33 = vld [vmem:[%s2592_s6 + $0x258] sm:$0xff] }
  0x6b   : > { %1769 = vst [vmem:[%s2617_s21 + $0x208] sm:$0xff] %v1257_v18  ;;  %1770 = vst [vmem:[%s2617_s21 + $0x210] sm:$0xff] %v1258_v20  ;;  %v1262_v29 = vand.u32 2147483647, %v750_v23  ;;  %v754_v32 = vsub.f32 %v241_v28, %v2599_v1  ;;  %v243_v34 = vld [vmem:[%s2592_s6 + $0x260] sm:$0xff]  ;;  %v244_v35 = vld [vmem:[%s2592_s6 + $0x268] sm:$0xff]  ;;  %v755_v37 = vsub.f32 %v242_v33, %v2599_v1 }
  0x6c   : > { %1771 = vst [vmem:[%s2617_s21 + $0x218] sm:$0xff] %v1259_v21  ;;  %1772 = vst [vmem:[%s2617_s21 + $0x220] sm:$0xff] %v1260_v22  ;;  %v1263_v36 = vand.u32 2147483647, %v751_v25  ;;  %v756_v38 = vsub.f32 %v243_v34, %v2599_v1  ;;  %v757_v39 = vsub.f32 %v244_v35, %v2599_v1  ;;  %v245_v40 = vld [vmem:[%s2592_s6 + $0x270] sm:$0xff]  ;;  %v246_v41 = vld [vmem:[%s2592_s6 + $0x278] sm:$0xff] }
  0x6d   : > { %1773 = vst [vmem:[%s2617_s21 + $0x228] sm:$0xff] %v1261_v24  ;;  %v247_v42 = vld [vmem:[%s2592_s6 + $0x280] sm:$0xff]  ;;  %1774 = vst [vmem:[%s2617_s21 + $0x230] sm:$0xff] %v1262_v29  ;;  %v1264_v43 = vand.u32 2147483647, %v752_v30  ;;  %v758_v46 = vsub.f32 %v245_v40, %v2599_v1  ;;  %v759_v50 = vsub.f32 %v246_v41, %v2599_v1  ;;  %v248_v53 = vld [vmem:[%s2592_s6 + $0x288] sm:$0xff] }
  0x6e   : > { %v1265_v44 = vand.u32 2147483647, %v753_v31  ;;  %v1266_v45 = vand.u32 2147483647, %v754_v32  ;;  %1775 = vst [vmem:[%s2617_s21 + $0x238] sm:$0xff] %v1263_v36  ;;  %v760_v52 = vsub.f32 %v247_v42, %v2599_v1  ;;  %v249_v54 = vld [vmem:[%s2592_s6 + $0x290] sm:$0xff]  ;;  %v761_v57 = vsub.f32 %v248_v53, %v2599_v1 }
  0x6f   : > { %v1267_v47 = vand.u32 2147483647, %v755_v37  ;;  %v1268_v48 = vand.u32 2147483647, %v756_v38  ;;  %v1269_v49 = vand.u32 2147483647, %v757_v39  ;;  %v762_v58 = vsub.f32 %v249_v54, %v2599_v1 }
  0x70   : > { %1776 = vst [vmem:[%s2617_s21 + $0x240] sm:$0xff] %v1264_v43  ;;  %1777 = vst [vmem:[%s2617_s21 + $0x248] sm:$0xff] %v1265_v44  ;;  %v1270_v51 = vand.u32 2147483647, %v758_v46  ;;  %v250_v55 = vld [vmem:[%s2592_s6 + $0x298] sm:$0xff]  ;;  %v251_v60 = vld [vmem:[%s2592_s6 + $0x2a0] sm:$0xff] }
  0x71   : > { %1778 = vst [vmem:[%s2617_s21 + $0x250] sm:$0xff] %v1266_v45  ;;  %1779 = vst [vmem:[%s2617_s21 + $0x258] sm:$0xff] %v1267_v47  ;;  %v1271_v56 = vand.u32 2147483647, %v759_v50  ;;  %v763_v59 = vsub.f32 %v250_v55, %v2599_v1  ;;  %v252_v61 = vld [vmem:[%s2592_s6 + $0x2a8] sm:$0xff]  ;;  %v253_v62 = vld [vmem:[%s2592_s6 + $0x2b0] sm:$0xff]  ;;  %v764_v0 = vsub.f32 %v251_v60, %v2599_v1 }
  0x72   : > { %1780 = vst [vmem:[%s2617_s21 + $0x260] sm:$0xff] %v1268_v48  ;;  %1781 = vst [vmem:[%s2617_s21 + $0x268] sm:$0xff] %v1269_v49  ;;  %v1272_v63 = vand.u32 2147483647, %v760_v52  ;;  %v765_v2 = vsub.f32 %v252_v61, %v2599_v1  ;;  %v766_v3 = vsub.f32 %v253_v62, %v2599_v1  ;;  %v254_v4 = vld [vmem:[%s2592_s6 + $0x2b8] sm:$0xff]  ;;  %v255_v5 = vld [vmem:[%s2592_s6 + $0x2c0] sm:$0xff] }
  0x73   : > { %1782 = vst [vmem:[%s2617_s21 + $0x270] sm:$0xff] %v1270_v51  ;;  %v256_v6 = vld [vmem:[%s2592_s6 + $0x2c8] sm:$0xff]  ;;  %1783 = vst [vmem:[%s2617_s21 + $0x278] sm:$0xff] %v1271_v56  ;;  %v1273_v7 = vand.u32 2147483647, %v761_v57  ;;  %v767_v10 = vsub.f32 %v254_v4, %v2599_v1  ;;  %v768_v14 = vsub.f32 %v255_v5, %v2599_v1  ;;  %v257_v17 = vld [vmem:[%s2592_s6 + $0x2d0] sm:$0xff] }
  0x74   : > { %v1274_v8 = vand.u32 2147483647, %v762_v58  ;;  %v1275_v9 = vand.u32 2147483647, %v763_v59  ;;  %1784 = vst [vmem:[%s2617_s21 + $0x280] sm:$0xff] %v1272_v63  ;;  %v769_v16 = vsub.f32 %v256_v6, %v2599_v1  ;;  %v258_v18 = vld [vmem:[%s2592_s6 + $0x2d8] sm:$0xff]  ;;  %v770_v21 = vsub.f32 %v257_v17, %v2599_v1 }
  0x75   : > { %v1276_v11 = vand.u32 2147483647, %v764_v0  ;;  %v1277_v12 = vand.u32 2147483647, %v765_v2  ;;  %v1278_v13 = vand.u32 2147483647, %v766_v3  ;;  %v771_v22 = vsub.f32 %v258_v18, %v2599_v1 }
  0x76   : > { %1785 = vst [vmem:[%s2617_s21 + $0x288] sm:$0xff] %v1273_v7  ;;  %1786 = vst [vmem:[%s2617_s21 + $0x290] sm:$0xff] %v1274_v8  ;;  %v1279_v15 = vand.u32 2147483647, %v767_v10  ;;  %v259_v19 = vld [vmem:[%s2592_s6 + $0x2e0] sm:$0xff]  ;;  %v260_v24 = vld [vmem:[%s2592_s6 + $0x2e8] sm:$0xff] }
  0x77   : > { %1787 = vst [vmem:[%s2617_s21 + $0x298] sm:$0xff] %v1275_v9  ;;  %1788 = vst [vmem:[%s2617_s21 + $0x2a0] sm:$0xff] %v1276_v11  ;;  %v1280_v20 = vand.u32 2147483647, %v768_v14  ;;  %v772_v23 = vsub.f32 %v259_v19, %v2599_v1  ;;  %v261_v25 = vld [vmem:[%s2592_s6 + $0x2f0] sm:$0xff]  ;;  %v262_v26 = vld [vmem:[%s2592_s6 + $0x2f8] sm:$0xff]  ;;  %v773_v28 = vsub.f32 %v260_v24, %v2599_v1 }
  0x78   : > { %1789 = vst [vmem:[%s2617_s21 + $0x2a8] sm:$0xff] %v1277_v12  ;;  %1790 = vst [vmem:[%s2617_s21 + $0x2b0] sm:$0xff] %v1278_v13  ;;  %v1281_v27 = vand.u32 2147483647, %v769_v16  ;;  %v774_v29 = vsub.f32 %v261_v25, %v2599_v1  ;;  %v775_v30 = vsub.f32 %v262_v26, %v2599_v1  ;;  %v263_v31 = vld [vmem:[%s2592_s6 + $0x300] sm:$0xff]  ;;  %v264_v32 = vld [vmem:[%s2592_s6 + $0x308] sm:$0xff] }
  0x79   : > { %1791 = vst [vmem:[%s2617_s21 + $0x2b8] sm:$0xff] %v1279_v15  ;;  %v265_v33 = vld [vmem:[%s2592_s6 + $0x310] sm:$0xff]  ;;  %1792 = vst [vmem:[%s2617_s21 + $0x2c0] sm:$0xff] %v1280_v20  ;;  %v1282_v34 = vand.u32 2147483647, %v770_v21  ;;  %v776_v37 = vsub.f32 %v263_v31, %v2599_v1  ;;  %v777_v41 = vsub.f32 %v264_v32, %v2599_v1  ;;  %v266_v44 = vld [vmem:[%s2592_s6 + $0x318] sm:$0xff] }
  0x7a   : > { %v1283_v35 = vand.u32 2147483647, %v771_v22  ;;  %v1284_v36 = vand.u32 2147483647, %v772_v23  ;;  %1793 = vst [vmem:[%s2617_s21 + $0x2c8] sm:$0xff] %v1281_v27  ;;  %v778_v43 = vsub.f32 %v265_v33, %v2599_v1  ;;  %v267_v45 = vld [vmem:[%s2592_s6 + $0x320] sm:$0xff]  ;;  %v779_v48 = vsub.f32 %v266_v44, %v2599_v1 }
  0x7b   : > { %v1285_v38 = vand.u32 2147483647, %v773_v28  ;;  %v1286_v39 = vand.u32 2147483647, %v774_v29  ;;  %v1287_v40 = vand.u32 2147483647, %v775_v30  ;;  %v780_v49 = vsub.f32 %v267_v45, %v2599_v1 }
  0x7c   : > { %1794 = vst [vmem:[%s2617_s21 + $0x2d0] sm:$0xff] %v1282_v34  ;;  %1795 = vst [vmem:[%s2617_s21 + $0x2d8] sm:$0xff] %v1283_v35  ;;  %v1288_v42 = vand.u32 2147483647, %v776_v37  ;;  %v268_v46 = vld [vmem:[%s2592_s6 + $0x328] sm:$0xff]  ;;  %v269_v51 = vld [vmem:[%s2592_s6 + $0x330] sm:$0xff] }
  0x7d   : > { %1796 = vst [vmem:[%s2617_s21 + $0x2e0] sm:$0xff] %v1284_v36  ;;  %1797 = vst [vmem:[%s2617_s21 + $0x2e8] sm:$0xff] %v1285_v38  ;;  %v1289_v47 = vand.u32 2147483647, %v777_v41  ;;  %v781_v50 = vsub.f32 %v268_v46, %v2599_v1  ;;  %v270_v52 = vld [vmem:[%s2592_s6 + $0x338] sm:$0xff]  ;;  %v271_v53 = vld [vmem:[%s2592_s6 + $0x340] sm:$0xff]  ;;  %v782_v55 = vsub.f32 %v269_v51, %v2599_v1 }
  0x7e   : > { %1798 = vst [vmem:[%s2617_s21 + $0x2f0] sm:$0xff] %v1286_v39  ;;  %1799 = vst [vmem:[%s2617_s21 + $0x2f8] sm:$0xff] %v1287_v40  ;;  %v1290_v54 = vand.u32 2147483647, %v778_v43  ;;  %v783_v56 = vsub.f32 %v270_v52, %v2599_v1  ;;  %v784_v57 = vsub.f32 %v271_v53, %v2599_v1  ;;  %v272_v58 = vld [vmem:[%s2592_s6 + $0x348] sm:$0xff]  ;;  %v273_v59 = vld [vmem:[%s2592_s6 + $0x350] sm:$0xff] }
  0x7f   : > { %1800 = vst [vmem:[%s2617_s21 + $0x300] sm:$0xff] %v1288_v42  ;;  %v274_v60 = vld [vmem:[%s2592_s6 + $0x358] sm:$0xff]  ;;  %1801 = vst [vmem:[%s2617_s21 + $0x308] sm:$0xff] %v1289_v47  ;;  %v1291_v61 = vand.u32 2147483647, %v779_v48  ;;  %v785_v0 = vsub.f32 %v272_v58, %v2599_v1  ;;  %v786_v5 = vsub.f32 %v273_v59, %v2599_v1  ;;  %v275_v8 = vld [vmem:[%s2592_s6 + $0x360] sm:$0xff] }
  0x80   : > { %v1292_v62 = vand.u32 2147483647, %v780_v49  ;;  %v1293_v63 = vand.u32 2147483647, %v781_v50  ;;  %1802 = vst [vmem:[%s2617_s21 + $0x310] sm:$0xff] %v1290_v54  ;;  %v787_v7 = vsub.f32 %v274_v60, %v2599_v1  ;;  %v276_v9 = vld [vmem:[%s2592_s6 + $0x368] sm:$0xff]  ;;  %v788_v12 = vsub.f32 %v275_v8, %v2599_v1 }
  0x81   : > { %v1294_v2 = vand.u32 2147483647, %v782_v55  ;;  %v1295_v3 = vand.u32 2147483647, %v783_v56  ;;  %v1296_v4 = vand.u32 2147483647, %v784_v57  ;;  %v789_v13 = vsub.f32 %v276_v9, %v2599_v1 }
  0x82   : > { %1803 = vst [vmem:[%s2617_s21 + $0x318] sm:$0xff] %v1291_v61  ;;  %1804 = vst [vmem:[%s2617_s21 + $0x320] sm:$0xff] %v1292_v62  ;;  %v1297_v6 = vand.u32 2147483647, %v785_v0  ;;  %v277_v10 = vld [vmem:[%s2592_s6 + $0x370] sm:$0xff]  ;;  %v278_v15 = vld [vmem:[%s2592_s6 + $0x378] sm:$0xff] }
  0x83   : > { %1805 = vst [vmem:[%s2617_s21 + $0x328] sm:$0xff] %v1293_v63  ;;  %1806 = vst [vmem:[%s2617_s21 + $0x330] sm:$0xff] %v1294_v2  ;;  %v1298_v11 = vand.u32 2147483647, %v786_v5  ;;  %v790_v14 = vsub.f32 %v277_v10, %v2599_v1  ;;  %v279_v16 = vld [vmem:[%s2592_s6 + $0x380] sm:$0xff]  ;;  %v280_v17 = vld [vmem:[%s2592_s6 + $0x388] sm:$0xff]  ;;  %v791_v19 = vsub.f32 %v278_v15, %v2599_v1 }
  0x84   : > { %1807 = vst [vmem:[%s2617_s21 + $0x338] sm:$0xff] %v1295_v3  ;;  %1808 = vst [vmem:[%s2617_s21 + $0x340] sm:$0xff] %v1296_v4  ;;  %v1299_v18 = vand.u32 2147483647, %v787_v7  ;;  %v792_v20 = vsub.f32 %v279_v16, %v2599_v1  ;;  %v793_v21 = vsub.f32 %v280_v17, %v2599_v1  ;;  %v281_v22 = vld [vmem:[%s2592_s6 + $0x390] sm:$0xff]  ;;  %v282_v23 = vld [vmem:[%s2592_s6 + $0x398] sm:$0xff] }
  0x85   : > { %1809 = vst [vmem:[%s2617_s21 + $0x348] sm:$0xff] %v1297_v6  ;;  %v283_v24 = vld [vmem:[%s2592_s6 + $0x3a0] sm:$0xff]  ;;  %1810 = vst [vmem:[%s2617_s21 + $0x350] sm:$0xff] %v1298_v11  ;;  %v1300_v25 = vand.u32 2147483647, %v788_v12  ;;  %v794_v28 = vsub.f32 %v281_v22, %v2599_v1  ;;  %v795_v32 = vsub.f32 %v282_v23, %v2599_v1  ;;  %v284_v35 = vld [vmem:[%s2592_s6 + $0x3a8] sm:$0xff] }
  0x86   : > { %v1301_v26 = vand.u32 2147483647, %v789_v13  ;;  %v1302_v27 = vand.u32 2147483647, %v790_v14  ;;  %1811 = vst [vmem:[%s2617_s21 + $0x358] sm:$0xff] %v1299_v18  ;;  %v796_v34 = vsub.f32 %v283_v24, %v2599_v1  ;;  %v285_v36 = vld [vmem:[%s2592_s6 + $0x3b0] sm:$0xff]  ;;  %v797_v39 = vsub.f32 %v284_v35, %v2599_v1 }
  0x87   : > { %v1303_v29 = vand.u32 2147483647, %v791_v19  ;;  %v1304_v30 = vand.u32 2147483647, %v792_v20  ;;  %v1305_v31 = vand.u32 2147483647, %v793_v21  ;;  %v798_v40 = vsub.f32 %v285_v36, %v2599_v1 }
  0x88   : > { %1812 = vst [vmem:[%s2617_s21 + $0x360] sm:$0xff] %v1300_v25  ;;  %1813 = vst [vmem:[%s2617_s21 + $0x368] sm:$0xff] %v1301_v26  ;;  %v1306_v33 = vand.u32 2147483647, %v794_v28  ;;  %v286_v37 = vld [vmem:[%s2592_s6 + $0x3b8] sm:$0xff]  ;;  %v287_v42 = vld [vmem:[%s2592_s6 + $0x3c0] sm:$0xff] }
  0x89   : > { %1814 = vst [vmem:[%s2617_s21 + $0x370] sm:$0xff] %v1302_v27  ;;  %1815 = vst [vmem:[%s2617_s21 + $0x378] sm:$0xff] %v1303_v29  ;;  %v1307_v38 = vand.u32 2147483647, %v795_v32  ;;  %v799_v41 = vsub.f32 %v286_v37, %v2599_v1  ;;  %v288_v43 = vld [vmem:[%s2592_s6 + $0x3c8] sm:$0xff]  ;;  %v289_v44 = vld [vmem:[%s2592_s6 + $0x3d0] sm:$0xff]  ;;  %v800_v46 = vsub.f32 %v287_v42, %v2599_v1 }
  0x8a   : > { %1816 = vst [vmem:[%s2617_s21 + $0x380] sm:$0xff] %v1304_v30  ;;  %1817 = vst [vmem:[%s2617_s21 + $0x388] sm:$0xff] %v1305_v31  ;;  %v1308_v45 = vand.u32 2147483647, %v796_v34  ;;  %v801_v47 = vsub.f32 %v288_v43, %v2599_v1  ;;  %v802_v48 = vsub.f32 %v289_v44, %v2599_v1  ;;  %v290_v49 = vld [vmem:[%s2592_s6 + $0x3d8] sm:$0xff]  ;;  %v291_v50 = vld [vmem:[%s2592_s6 + $0x3e0] sm:$0xff] }
  0x8b   : > { %1818 = vst [vmem:[%s2617_s21 + $0x390] sm:$0xff] %v1306_v33  ;;  %v292_v51 = vld [vmem:[%s2592_s6 + $0x3e8] sm:$0xff]  ;;  %1819 = vst [vmem:[%s2617_s21 + $0x398] sm:$0xff] %v1307_v38  ;;  %v1309_v52 = vand.u32 2147483647, %v797_v39  ;;  %v803_v55 = vsub.f32 %v290_v49, %v2599_v1  ;;  %v804_v59 = vsub.f32 %v291_v50, %v2599_v1  ;;  %v293_v62 = vld [vmem:[%s2592_s6 + $0x3f0] sm:$0xff] }
  0x8c   : > { %v1310_v53 = vand.u32 2147483647, %v798_v40  ;;  %v1311_v54 = vand.u32 2147483647, %v799_v41  ;;  %1820 = vst [vmem:[%s2617_s21 + $0x3a0] sm:$0xff] %v1308_v45  ;;  %v805_v61 = vsub.f32 %v292_v51, %v2599_v1  ;;  %v294_v63 = vld [vmem:[%s2592_s6 + $0x3f8] sm:$0xff]  ;;  %v806_v3 = vsub.f32 %v293_v62, %v2599_v1 }
  0x8d   : > { %v1312_v56 = vand.u32 2147483647, %v800_v46  ;;  %v1313_v57 = vand.u32 2147483647, %v801_v47  ;;  %v1314_v58 = vand.u32 2147483647, %v802_v48  ;;  %v807_v4 = vsub.f32 %v294_v63, %v2599_v1 }
  0x8e   : > { %1821 = vst [vmem:[%s2617_s21 + $0x3a8] sm:$0xff] %v1309_v52  ;;  %1822 = vst [vmem:[%s2617_s21 + $0x3b0] sm:$0xff] %v1310_v53  ;;  %v1315_v60 = vand.u32 2147483647, %v803_v55  ;;  %v295_v0 = vld [vmem:[%s2592_s6 + $0x400] sm:$0xff]  ;;  %v296_v6 = vld [vmem:[%s2592_s6 + $0x408] sm:$0xff] }
  0x8f   : > { %1823 = vst [vmem:[%s2617_s21 + $0x3b8] sm:$0xff] %v1311_v54  ;;  %1824 = vst [vmem:[%s2617_s21 + $0x3c0] sm:$0xff] %v1312_v56  ;;  %v1316_v2 = vand.u32 2147483647, %v804_v59  ;;  %v808_v5 = vsub.f32 %v295_v0, %v2599_v1  ;;  %v297_v7 = vld [vmem:[%s2592_s6 + $0x410] sm:$0xff]  ;;  %v298_v8 = vld [vmem:[%s2592_s6 + $0x418] sm:$0xff]  ;;  %v809_v10 = vsub.f32 %v296_v6, %v2599_v1 }
  0x90   : > { %1825 = vst [vmem:[%s2617_s21 + $0x3c8] sm:$0xff] %v1313_v57  ;;  %1826 = vst [vmem:[%s2617_s21 + $0x3d0] sm:$0xff] %v1314_v58  ;;  %v1317_v9 = vand.u32 2147483647, %v805_v61  ;;  %v810_v11 = vsub.f32 %v297_v7, %v2599_v1  ;;  %v811_v12 = vsub.f32 %v298_v8, %v2599_v1  ;;  %v299_v13 = vld [vmem:[%s2592_s6 + $0x420] sm:$0xff]  ;;  %v300_v14 = vld [vmem:[%s2592_s6 + $0x428] sm:$0xff] }
  0x91   : > { %1827 = vst [vmem:[%s2617_s21 + $0x3d8] sm:$0xff] %v1315_v60  ;;  %v301_v15 = vld [vmem:[%s2592_s6 + $0x430] sm:$0xff]  ;;  %1828 = vst [vmem:[%s2617_s21 + $0x3e0] sm:$0xff] %v1316_v2  ;;  %v1318_v16 = vand.u32 2147483647, %v806_v3  ;;  %v812_v19 = vsub.f32 %v299_v13, %v2599_v1  ;;  %v813_v23 = vsub.f32 %v300_v14, %v2599_v1  ;;  %v302_v26 = vld [vmem:[%s2592_s6 + $0x438] sm:$0xff] }
  0x92   : > { %v1319_v17 = vand.u32 2147483647, %v807_v4  ;;  %v1320_v18 = vand.u32 2147483647, %v808_v5  ;;  %1829 = vst [vmem:[%s2617_s21 + $0x3e8] sm:$0xff] %v1317_v9  ;;  %v814_v25 = vsub.f32 %v301_v15, %v2599_v1  ;;  %v303_v27 = vld [vmem:[%s2592_s6 + $0x440] sm:$0xff]  ;;  %v815_v30 = vsub.f32 %v302_v26, %v2599_v1 }
  0x93   : > { %v1321_v20 = vand.u32 2147483647, %v809_v10  ;;  %v1322_v21 = vand.u32 2147483647, %v810_v11  ;;  %v1323_v22 = vand.u32 2147483647, %v811_v12  ;;  %v816_v31 = vsub.f32 %v303_v27, %v2599_v1 }
  0x94   : > { %1830 = vst [vmem:[%s2617_s21 + $0x3f0] sm:$0xff] %v1318_v16  ;;  %1831 = vst [vmem:[%s2617_s21 + $0x3f8] sm:$0xff] %v1319_v17  ;;  %v1324_v24 = vand.u32 2147483647, %v812_v19  ;;  %v304_v28 = vld [vmem:[%s2592_s6 + $0x448] sm:$0xff]  ;;  %v305_v33 = vld [vmem:[%s2592_s6 + $0x450] sm:$0xff] }
  0x95   : > { %1832 = vst [vmem:[%s2617_s21 + $0x400] sm:$0xff] %v1320_v18  ;;  %1833 = vst [vmem:[%s2617_s21 + $0x408] sm:$0xff] %v1321_v20  ;;  %v1325_v29 = vand.u32 2147483647, %v813_v23  ;;  %v817_v32 = vsub.f32 %v304_v28, %v2599_v1  ;;  %v306_v34 = vld [vmem:[%s2592_s6 + $0x458] sm:$0xff]  ;;  %v307_v35 = vld [vmem:[%s2592_s6 + $0x460] sm:$0xff]  ;;  %v818_v37 = vsub.f32 %v305_v33, %v2599_v1 }
  0x96   : > { %1834 = vst [vmem:[%s2617_s21 + $0x410] sm:$0xff] %v1322_v21  ;;  %1835 = vst [vmem:[%s2617_s21 + $0x418] sm:$0xff] %v1323_v22  ;;  %v1326_v36 = vand.u32 2147483647, %v814_v25  ;;  %v819_v38 = vsub.f32 %v306_v34, %v2599_v1  ;;  %v820_v39 = vsub.f32 %v307_v35, %v2599_v1  ;;  %v308_v40 = vld [vmem:[%s2592_s6 + $0x468] sm:$0xff]  ;;  %v309_v41 = vld [vmem:[%s2592_s6 + $0x470] sm:$0xff] }
  0x97   : > { %1836 = vst [vmem:[%s2617_s21 + $0x420] sm:$0xff] %v1324_v24  ;;  %v310_v42 = vld [vmem:[%s2592_s6 + $0x478] sm:$0xff]  ;;  %1837 = vst [vmem:[%s2617_s21 + $0x428] sm:$0xff] %v1325_v29  ;;  %v1327_v43 = vand.u32 2147483647, %v815_v30  ;;  %v821_v46 = vsub.f32 %v308_v40, %v2599_v1  ;;  %v822_v50 = vsub.f32 %v309_v41, %v2599_v1  ;;  %v311_v53 = vld [vmem:[%s2592_s6 + $0x480] sm:$0xff] }
  0x98   : > { %v1328_v44 = vand.u32 2147483647, %v816_v31  ;;  %v1329_v45 = vand.u32 2147483647, %v817_v32  ;;  %1838 = vst [vmem:[%s2617_s21 + $0x430] sm:$0xff] %v1326_v36  ;;  %v823_v52 = vsub.f32 %v310_v42, %v2599_v1  ;;  %v312_v54 = vld [vmem:[%s2592_s6 + $0x488] sm:$0xff]  ;;  %v824_v57 = vsub.f32 %v311_v53, %v2599_v1 }
  0x99   : > { %v1330_v47 = vand.u32 2147483647, %v818_v37  ;;  %v1331_v48 = vand.u32 2147483647, %v819_v38  ;;  %v1332_v49 = vand.u32 2147483647, %v820_v39  ;;  %v825_v58 = vsub.f32 %v312_v54, %v2599_v1 }
  0x9a   : > { %1839 = vst [vmem:[%s2617_s21 + $0x438] sm:$0xff] %v1327_v43  ;;  %1840 = vst [vmem:[%s2617_s21 + $0x440] sm:$0xff] %v1328_v44  ;;  %v1333_v51 = vand.u32 2147483647, %v821_v46  ;;  %v313_v55 = vld [vmem:[%s2592_s6 + $0x490] sm:$0xff]  ;;  %v314_v60 = vld [vmem:[%s2592_s6 + $0x498] sm:$0xff] }
  0x9b   : > { %1841 = vst [vmem:[%s2617_s21 + $0x448] sm:$0xff] %v1329_v45  ;;  %1842 = vst [vmem:[%s2617_s21 + $0x450] sm:$0xff] %v1330_v47  ;;  %v1334_v56 = vand.u32 2147483647, %v822_v50  ;;  %v826_v59 = vsub.f32 %v313_v55, %v2599_v1  ;;  %v315_v61 = vld [vmem:[%s2592_s6 + $0x4a0] sm:$0xff]  ;;  %v316_v62 = vld [vmem:[%s2592_s6 + $0x4a8] sm:$0xff]  ;;  %v827_v0 = vsub.f32 %v314_v60, %v2599_v1 }
  0x9c   : > { %1843 = vst [vmem:[%s2617_s21 + $0x458] sm:$0xff] %v1331_v48  ;;  %1844 = vst [vmem:[%s2617_s21 + $0x460] sm:$0xff] %v1332_v49  ;;  %v1335_v63 = vand.u32 2147483647, %v823_v52  ;;  %v828_v2 = vsub.f32 %v315_v61, %v2599_v1  ;;  %v829_v3 = vsub.f32 %v316_v62, %v2599_v1  ;;  %v317_v4 = vld [vmem:[%s2592_s6 + $0x4b0] sm:$0xff]  ;;  %v318_v5 = vld [vmem:[%s2592_s6 + $0x4b8] sm:$0xff] }
  0x9d   : > { %1845 = vst [vmem:[%s2617_s21 + $0x468] sm:$0xff] %v1333_v51  ;;  %v319_v6 = vld [vmem:[%s2592_s6 + $0x4c0] sm:$0xff]  ;;  %1846 = vst [vmem:[%s2617_s21 + $0x470] sm:$0xff] %v1334_v56  ;;  %v1336_v7 = vand.u32 2147483647, %v824_v57  ;;  %v830_v10 = vsub.f32 %v317_v4, %v2599_v1  ;;  %v831_v14 = vsub.f32 %v318_v5, %v2599_v1  ;;  %v320_v17 = vld [vmem:[%s2592_s6 + $0x4c8] sm:$0xff] }
  0x9e   : > { %v1337_v8 = vand.u32 2147483647, %v825_v58  ;;  %v1338_v9 = vand.u32 2147483647, %v826_v59  ;;  %1847 = vst [vmem:[%s2617_s21 + $0x478] sm:$0xff] %v1335_v63  ;;  %v832_v16 = vsub.f32 %v319_v6, %v2599_v1  ;;  %v321_v18 = vld [vmem:[%s2592_s6 + $0x4d0] sm:$0xff]  ;;  %v833_v21 = vsub.f32 %v320_v17, %v2599_v1 }
  0x9f   : > { %v1339_v11 = vand.u32 2147483647, %v827_v0  ;;  %v1340_v12 = vand.u32 2147483647, %v828_v2  ;;  %v1341_v13 = vand.u32 2147483647, %v829_v3  ;;  %v834_v22 = vsub.f32 %v321_v18, %v2599_v1 }
  0xa0   : > { %1848 = vst [vmem:[%s2617_s21 + $0x480] sm:$0xff] %v1336_v7  ;;  %1849 = vst [vmem:[%s2617_s21 + $0x488] sm:$0xff] %v1337_v8  ;;  %v1342_v15 = vand.u32 2147483647, %v830_v10  ;;  %v322_v19 = vld [vmem:[%s2592_s6 + $0x4d8] sm:$0xff]  ;;  %v323_v24 = vld [vmem:[%s2592_s6 + $0x4e0] sm:$0xff] }
  0xa1   : > { %1850 = vst [vmem:[%s2617_s21 + $0x490] sm:$0xff] %v1338_v9  ;;  %1851 = vst [vmem:[%s2617_s21 + $0x498] sm:$0xff] %v1339_v11  ;;  %v1343_v20 = vand.u32 2147483647, %v831_v14  ;;  %v835_v23 = vsub.f32 %v322_v19, %v2599_v1  ;;  %v324_v25 = vld [vmem:[%s2592_s6 + $0x4e8] sm:$0xff]  ;;  %v325_v26 = vld [vmem:[%s2592_s6 + $0x4f0] sm:$0xff]  ;;  %v836_v28 = vsub.f32 %v323_v24, %v2599_v1 }
  0xa2   : > { %1852 = vst [vmem:[%s2617_s21 + $0x4a0] sm:$0xff] %v1340_v12  ;;  %1853 = vst [vmem:[%s2617_s21 + $0x4a8] sm:$0xff] %v1341_v13  ;;  %v1344_v27 = vand.u32 2147483647, %v832_v16  ;;  %v837_v29 = vsub.f32 %v324_v25, %v2599_v1  ;;  %v838_v30 = vsub.f32 %v325_v26, %v2599_v1  ;;  %v326_v31 = vld [vmem:[%s2592_s6 + $0x4f8] sm:$0xff]  ;;  %v327_v32 = vld [vmem:[%s2592_s6 + $0x500] sm:$0xff] }
  0xa3   : > { %1854 = vst [vmem:[%s2617_s21 + $0x4b0] sm:$0xff] %v1342_v15  ;;  %v328_v33 = vld [vmem:[%s2592_s6 + $0x508] sm:$0xff]  ;;  %1855 = vst [vmem:[%s2617_s21 + $0x4b8] sm:$0xff] %v1343_v20  ;;  %v1345_v34 = vand.u32 2147483647, %v833_v21  ;;  %v839_v37 = vsub.f32 %v326_v31, %v2599_v1  ;;  %v840_v41 = vsub.f32 %v327_v32, %v2599_v1  ;;  %v329_v44 = vld [vmem:[%s2592_s6 + $0x510] sm:$0xff] }
  0xa4   : > { %v1346_v35 = vand.u32 2147483647, %v834_v22  ;;  %v1347_v36 = vand.u32 2147483647, %v835_v23  ;;  %1856 = vst [vmem:[%s2617_s21 + $0x4c0] sm:$0xff] %v1344_v27  ;;  %v841_v43 = vsub.f32 %v328_v33, %v2599_v1  ;;  %v330_v45 = vld [vmem:[%s2592_s6 + $0x518] sm:$0xff]  ;;  %v842_v48 = vsub.f32 %v329_v44, %v2599_v1 }
  0xa5   : > { %v1348_v38 = vand.u32 2147483647, %v836_v28  ;;  %v1349_v39 = vand.u32 2147483647, %v837_v29  ;;  %v1350_v40 = vand.u32 2147483647, %v838_v30  ;;  %v843_v49 = vsub.f32 %v330_v45, %v2599_v1 }
  0xa6   : > { %1857 = vst [vmem:[%s2617_s21 + $0x4c8] sm:$0xff] %v1345_v34  ;;  %1858 = vst [vmem:[%s2617_s21 + $0x4d0] sm:$0xff] %v1346_v35  ;;  %v1351_v42 = vand.u32 2147483647, %v839_v37  ;;  %v331_v46 = vld [vmem:[%s2592_s6 + $0x520] sm:$0xff]  ;;  %v332_v51 = vld [vmem:[%s2592_s6 + $0x528] sm:$0xff] }
  0xa7   : > { %1859 = vst [vmem:[%s2617_s21 + $0x4d8] sm:$0xff] %v1347_v36  ;;  %1860 = vst [vmem:[%s2617_s21 + $0x4e0] sm:$0xff] %v1348_v38  ;;  %v1352_v47 = vand.u32 2147483647, %v840_v41  ;;  %v844_v50 = vsub.f32 %v331_v46, %v2599_v1  ;;  %v333_v52 = vld [vmem:[%s2592_s6 + $0x530] sm:$0xff]  ;;  %v334_v53 = vld [vmem:[%s2592_s6 + $0x538] sm:$0xff]  ;;  %v845_v55 = vsub.f32 %v332_v51, %v2599_v1 }
  0xa8   : > { %1861 = vst [vmem:[%s2617_s21 + $0x4e8] sm:$0xff] %v1349_v39  ;;  %1862 = vst [vmem:[%s2617_s21 + $0x4f0] sm:$0xff] %v1350_v40  ;;  %v1353_v54 = vand.u32 2147483647, %v841_v43  ;;  %v846_v56 = vsub.f32 %v333_v52, %v2599_v1  ;;  %v847_v57 = vsub.f32 %v334_v53, %v2599_v1  ;;  %v335_v58 = vld [vmem:[%s2592_s6 + $0x540] sm:$0xff]  ;;  %v336_v59 = vld [vmem:[%s2592_s6 + $0x548] sm:$0xff] }
  0xa9   : > { %1863 = vst [vmem:[%s2617_s21 + $0x4f8] sm:$0xff] %v1351_v42  ;;  %v337_v60 = vld [vmem:[%s2592_s6 + $0x550] sm:$0xff]  ;;  %1864 = vst [vmem:[%s2617_s21 + $0x500] sm:$0xff] %v1352_v47  ;;  %v1354_v61 = vand.u32 2147483647, %v842_v48  ;;  %v848_v0 = vsub.f32 %v335_v58, %v2599_v1  ;;  %v849_v5 = vsub.f32 %v336_v59, %v2599_v1  ;;  %v338_v8 = vld [vmem:[%s2592_s6 + $0x558] sm:$0xff] }
  0xaa   : > { %v1355_v62 = vand.u32 2147483647, %v843_v49  ;;  %v1356_v63 = vand.u32 2147483647, %v844_v50  ;;  %1865 = vst [vmem:[%s2617_s21 + $0x508] sm:$0xff] %v1353_v54  ;;  %v850_v7 = vsub.f32 %v337_v60, %v2599_v1  ;;  %v339_v9 = vld [vmem:[%s2592_s6 + $0x560] sm:$0xff]  ;;  %v851_v12 = vsub.f32 %v338_v8, %v2599_v1 }
  0xab   : > { %v1357_v2 = vand.u32 2147483647, %v845_v55  ;;  %v1358_v3 = vand.u32 2147483647, %v846_v56  ;;  %v1359_v4 = vand.u32 2147483647, %v847_v57  ;;  %v852_v13 = vsub.f32 %v339_v9, %v2599_v1 }
  0xac   : > { %1866 = vst [vmem:[%s2617_s21 + $0x510] sm:$0xff] %v1354_v61  ;;  %1867 = vst [vmem:[%s2617_s21 + $0x518] sm:$0xff] %v1355_v62  ;;  %v1360_v6 = vand.u32 2147483647, %v848_v0  ;;  %v340_v10 = vld [vmem:[%s2592_s6 + $0x568] sm:$0xff]  ;;  %v341_v15 = vld [vmem:[%s2592_s6 + $0x570] sm:$0xff] }
  0xad   : > { %1868 = vst [vmem:[%s2617_s21 + $0x520] sm:$0xff] %v1356_v63  ;;  %1869 = vst [vmem:[%s2617_s21 + $0x528] sm:$0xff] %v1357_v2  ;;  %v1361_v11 = vand.u32 2147483647, %v849_v5  ;;  %v853_v14 = vsub.f32 %v340_v10, %v2599_v1  ;;  %v342_v16 = vld [vmem:[%s2592_s6 + $0x578] sm:$0xff]  ;;  %v343_v17 = vld [vmem:[%s2592_s6 + $0x580] sm:$0xff]  ;;  %v854_v19 = vsub.f32 %v341_v15, %v2599_v1 }
  0xae   : > { %1870 = vst [vmem:[%s2617_s21 + $0x530] sm:$0xff] %v1358_v3  ;;  %1871 = vst [vmem:[%s2617_s21 + $0x538] sm:$0xff] %v1359_v4  ;;  %v1362_v18 = vand.u32 2147483647, %v850_v7  ;;  %v855_v20 = vsub.f32 %v342_v16, %v2599_v1  ;;  %v856_v21 = vsub.f32 %v343_v17, %v2599_v1  ;;  %v344_v22 = vld [vmem:[%s2592_s6 + $0x588] sm:$0xff]  ;;  %v345_v23 = vld [vmem:[%s2592_s6 + $0x590] sm:$0xff] }
  0xaf   : > { %1872 = vst [vmem:[%s2617_s21 + $0x540] sm:$0xff] %v1360_v6  ;;  %v346_v24 = vld [vmem:[%s2592_s6 + $0x598] sm:$0xff]  ;;  %1873 = vst [vmem:[%s2617_s21 + $0x548] sm:$0xff] %v1361_v11  ;;  %v1363_v25 = vand.u32 2147483647, %v851_v12  ;;  %v857_v28 = vsub.f32 %v344_v22, %v2599_v1  ;;  %v858_v32 = vsub.f32 %v345_v23, %v2599_v1  ;;  %v347_v35 = vld [vmem:[%s2592_s6 + $0x5a0] sm:$0xff] }
  0xb0   : > { %v1364_v26 = vand.u32 2147483647, %v852_v13  ;;  %v1365_v27 = vand.u32 2147483647, %v853_v14  ;;  %1874 = vst [vmem:[%s2617_s21 + $0x550] sm:$0xff] %v1362_v18  ;;  %v859_v34 = vsub.f32 %v346_v24, %v2599_v1  ;;  %v348_v36 = vld [vmem:[%s2592_s6 + $0x5a8] sm:$0xff]  ;;  %v860_v39 = vsub.f32 %v347_v35, %v2599_v1 }
  0xb1   : > { %v1366_v29 = vand.u32 2147483647, %v854_v19  ;;  %v1367_v30 = vand.u32 2147483647, %v855_v20  ;;  %v1368_v31 = vand.u32 2147483647, %v856_v21  ;;  %v861_v40 = vsub.f32 %v348_v36, %v2599_v1 }
  0xb2   : > { %1875 = vst [vmem:[%s2617_s21 + $0x558] sm:$0xff] %v1363_v25  ;;  %1876 = vst [vmem:[%s2617_s21 + $0x560] sm:$0xff] %v1364_v26  ;;  %v1369_v33 = vand.u32 2147483647, %v857_v28  ;;  %v349_v37 = vld [vmem:[%s2592_s6 + $0x5b0] sm:$0xff]  ;;  %v350_v42 = vld [vmem:[%s2592_s6 + $0x5b8] sm:$0xff] }
  0xb3   : > { %1877 = vst [vmem:[%s2617_s21 + $0x568] sm:$0xff] %v1365_v27  ;;  %1878 = vst [vmem:[%s2617_s21 + $0x570] sm:$0xff] %v1366_v29  ;;  %v1370_v38 = vand.u32 2147483647, %v858_v32  ;;  %v862_v41 = vsub.f32 %v349_v37, %v2599_v1  ;;  %v351_v43 = vld [vmem:[%s2592_s6 + $0x5c0] sm:$0xff]  ;;  %v352_v44 = vld [vmem:[%s2592_s6 + $0x5c8] sm:$0xff]  ;;  %v863_v46 = vsub.f32 %v350_v42, %v2599_v1 }
  0xb4   : > { %1879 = vst [vmem:[%s2617_s21 + $0x578] sm:$0xff] %v1367_v30  ;;  %1880 = vst [vmem:[%s2617_s21 + $0x580] sm:$0xff] %v1368_v31  ;;  %v1371_v45 = vand.u32 2147483647, %v859_v34  ;;  %v864_v47 = vsub.f32 %v351_v43, %v2599_v1  ;;  %v865_v48 = vsub.f32 %v352_v44, %v2599_v1  ;;  %v353_v49 = vld [vmem:[%s2592_s6 + $0x5d0] sm:$0xff]  ;;  %v354_v50 = vld [vmem:[%s2592_s6 + $0x5d8] sm:$0xff] }
  0xb5   : > { %1881 = vst [vmem:[%s2617_s21 + $0x588] sm:$0xff] %v1369_v33  ;;  %v355_v51 = vld [vmem:[%s2592_s6 + $0x5e0] sm:$0xff]  ;;  %1882 = vst [vmem:[%s2617_s21 + $0x590] sm:$0xff] %v1370_v38  ;;  %v1372_v52 = vand.u32 2147483647, %v860_v39  ;;  %v866_v55 = vsub.f32 %v353_v49, %v2599_v1  ;;  %v867_v59 = vsub.f32 %v354_v50, %v2599_v1  ;;  %v356_v62 = vld [vmem:[%s2592_s6 + $0x5e8] sm:$0xff] }
  0xb6   : > { %v1373_v53 = vand.u32 2147483647, %v861_v40  ;;  %v1374_v54 = vand.u32 2147483647, %v862_v41  ;;  %1883 = vst [vmem:[%s2617_s21 + $0x598] sm:$0xff] %v1371_v45  ;;  %v868_v61 = vsub.f32 %v355_v51, %v2599_v1  ;;  %v357_v63 = vld [vmem:[%s2592_s6 + $0x5f0] sm:$0xff]  ;;  %v869_v3 = vsub.f32 %v356_v62, %v2599_v1 }
  0xb7   : > { %v1375_v56 = vand.u32 2147483647, %v863_v46  ;;  %v1376_v57 = vand.u32 2147483647, %v864_v47  ;;  %v1377_v58 = vand.u32 2147483647, %v865_v48  ;;  %v870_v4 = vsub.f32 %v357_v63, %v2599_v1 }
  0xb8   : > { %1884 = vst [vmem:[%s2617_s21 + $0x5a0] sm:$0xff] %v1372_v52  ;;  %1885 = vst [vmem:[%s2617_s21 + $0x5a8] sm:$0xff] %v1373_v53  ;;  %v1378_v60 = vand.u32 2147483647, %v866_v55  ;;  %v358_v0 = vld [vmem:[%s2592_s6 + $0x5f8] sm:$0xff]  ;;  %v359_v6 = vld [vmem:[%s2592_s6 + $0x600] sm:$0xff] }
  0xb9   : > { %1886 = vst [vmem:[%s2617_s21 + $0x5b0] sm:$0xff] %v1374_v54  ;;  %1887 = vst [vmem:[%s2617_s21 + $0x5b8] sm:$0xff] %v1375_v56  ;;  %v1379_v2 = vand.u32 2147483647, %v867_v59  ;;  %v871_v5 = vsub.f32 %v358_v0, %v2599_v1  ;;  %v360_v7 = vld [vmem:[%s2592_s6 + $0x608] sm:$0xff]  ;;  %v361_v8 = vld [vmem:[%s2592_s6 + $0x610] sm:$0xff]  ;;  %v872_v10 = vsub.f32 %v359_v6, %v2599_v1 }
  0xba   : > { %1888 = vst [vmem:[%s2617_s21 + $0x5c0] sm:$0xff] %v1376_v57  ;;  %1889 = vst [vmem:[%s2617_s21 + $0x5c8] sm:$0xff] %v1377_v58  ;;  %v1380_v9 = vand.u32 2147483647, %v868_v61  ;;  %v873_v11 = vsub.f32 %v360_v7, %v2599_v1  ;;  %v874_v12 = vsub.f32 %v361_v8, %v2599_v1  ;;  %v362_v13 = vld [vmem:[%s2592_s6 + $0x618] sm:$0xff]  ;;  %v363_v14 = vld [vmem:[%s2592_s6 + $0x620] sm:$0xff] }
  0xbb   : > { %1890 = vst [vmem:[%s2617_s21 + $0x5d0] sm:$0xff] %v1378_v60  ;;  %v364_v15 = vld [vmem:[%s2592_s6 + $0x628] sm:$0xff]  ;;  %1891 = vst [vmem:[%s2617_s21 + $0x5d8] sm:$0xff] %v1379_v2  ;;  %v1381_v16 = vand.u32 2147483647, %v869_v3  ;;  %v875_v19 = vsub.f32 %v362_v13, %v2599_v1  ;;  %v876_v23 = vsub.f32 %v363_v14, %v2599_v1  ;;  %v365_v26 = vld [vmem:[%s2592_s6 + $0x630] sm:$0xff] }
  0xbc   : > { %v1382_v17 = vand.u32 2147483647, %v870_v4  ;;  %v1383_v18 = vand.u32 2147483647, %v871_v5  ;;  %1892 = vst [vmem:[%s2617_s21 + $0x5e0] sm:$0xff] %v1380_v9  ;;  %v877_v25 = vsub.f32 %v364_v15, %v2599_v1  ;;  %v366_v27 = vld [vmem:[%s2592_s6 + $0x638] sm:$0xff]  ;;  %v878_v30 = vsub.f32 %v365_v26, %v2599_v1 }
  0xbd   : > { %v1384_v20 = vand.u32 2147483647, %v872_v10  ;;  %v1385_v21 = vand.u32 2147483647, %v873_v11  ;;  %v1386_v22 = vand.u32 2147483647, %v874_v12  ;;  %v879_v31 = vsub.f32 %v366_v27, %v2599_v1 }
  0xbe   : > { %1893 = vst [vmem:[%s2617_s21 + $0x5e8] sm:$0xff] %v1381_v16  ;;  %1894 = vst [vmem:[%s2617_s21 + $0x5f0] sm:$0xff] %v1382_v17  ;;  %v1387_v24 = vand.u32 2147483647, %v875_v19  ;;  %v367_v28 = vld [vmem:[%s2592_s6 + $0x640] sm:$0xff]  ;;  %v368_v33 = vld [vmem:[%s2592_s6 + $0x648] sm:$0xff] }
  0xbf   : > { %1895 = vst [vmem:[%s2617_s21 + $0x5f8] sm:$0xff] %v1383_v18  ;;  %1896 = vst [vmem:[%s2617_s21 + $0x600] sm:$0xff] %v1384_v20  ;;  %v1388_v29 = vand.u32 2147483647, %v876_v23  ;;  %v880_v32 = vsub.f32 %v367_v28, %v2599_v1  ;;  %v369_v34 = vld [vmem:[%s2592_s6 + $0x650] sm:$0xff]  ;;  %v370_v35 = vld [vmem:[%s2592_s6 + $0x658] sm:$0xff]  ;;  %v881_v37 = vsub.f32 %v368_v33, %v2599_v1 }
  0xc0   : > { %1897 = vst [vmem:[%s2617_s21 + $0x608] sm:$0xff] %v1385_v21  ;;  %1898 = vst [vmem:[%s2617_s21 + $0x610] sm:$0xff] %v1386_v22  ;;  %v1389_v36 = vand.u32 2147483647, %v877_v25  ;;  %v882_v38 = vsub.f32 %v369_v34, %v2599_v1  ;;  %v883_v39 = vsub.f32 %v370_v35, %v2599_v1  ;;  %v371_v40 = vld [vmem:[%s2592_s6 + $0x660] sm:$0xff]  ;;  %v372_v41 = vld [vmem:[%s2592_s6 + $0x668] sm:$0xff] }
  0xc1   : > { %1899 = vst [vmem:[%s2617_s21 + $0x618] sm:$0xff] %v1387_v24  ;;  %v373_v42 = vld [vmem:[%s2592_s6 + $0x670] sm:$0xff]  ;;  %1900 = vst [vmem:[%s2617_s21 + $0x620] sm:$0xff] %v1388_v29  ;;  %v1390_v43 = vand.u32 2147483647, %v878_v30  ;;  %v884_v46 = vsub.f32 %v371_v40, %v2599_v1  ;;  %v885_v50 = vsub.f32 %v372_v41, %v2599_v1  ;;  %v374_v53 = vld [vmem:[%s2592_s6 + $0x678] sm:$0xff] }
  0xc2   : > { %v1391_v44 = vand.u32 2147483647, %v879_v31  ;;  %v1392_v45 = vand.u32 2147483647, %v880_v32  ;;  %1901 = vst [vmem:[%s2617_s21 + $0x628] sm:$0xff] %v1389_v36  ;;  %v886_v52 = vsub.f32 %v373_v42, %v2599_v1  ;;  %v375_v54 = vld [vmem:[%s2592_s6 + $0x680] sm:$0xff]  ;;  %v887_v57 = vsub.f32 %v374_v53, %v2599_v1 }
  0xc3   : > { %v1393_v47 = vand.u32 2147483647, %v881_v37  ;;  %v1394_v48 = vand.u32 2147483647, %v882_v38  ;;  %v1395_v49 = vand.u32 2147483647, %v883_v39  ;;  %v888_v58 = vsub.f32 %v375_v54, %v2599_v1 }
  0xc4   : > { %1902 = vst [vmem:[%s2617_s21 + $0x630] sm:$0xff] %v1390_v43  ;;  %1903 = vst [vmem:[%s2617_s21 + $0x638] sm:$0xff] %v1391_v44  ;;  %v1396_v51 = vand.u32 2147483647, %v884_v46  ;;  %v376_v55 = vld [vmem:[%s2592_s6 + $0x688] sm:$0xff]  ;;  %v377_v60 = vld [vmem:[%s2592_s6 + $0x690] sm:$0xff] }
  0xc5   : > { %1904 = vst [vmem:[%s2617_s21 + $0x640] sm:$0xff] %v1392_v45  ;;  %1905 = vst [vmem:[%s2617_s21 + $0x648] sm:$0xff] %v1393_v47  ;;  %v1397_v56 = vand.u32 2147483647, %v885_v50  ;;  %v889_v59 = vsub.f32 %v376_v55, %v2599_v1  ;;  %v378_v61 = vld [vmem:[%s2592_s6 + $0x698] sm:$0xff]  ;;  %v379_v62 = vld [vmem:[%s2592_s6 + $0x6a0] sm:$0xff]  ;;  %v890_v0 = vsub.f32 %v377_v60, %v2599_v1 }
  0xc6   : > { %1906 = vst [vmem:[%s2617_s21 + $0x650] sm:$0xff] %v1394_v48  ;;  %1907 = vst [vmem:[%s2617_s21 + $0x658] sm:$0xff] %v1395_v49  ;;  %v1398_v63 = vand.u32 2147483647, %v886_v52  ;;  %v891_v2 = vsub.f32 %v378_v61, %v2599_v1  ;;  %v892_v3 = vsub.f32 %v379_v62, %v2599_v1  ;;  %v380_v4 = vld [vmem:[%s2592_s6 + $0x6a8] sm:$0xff]  ;;  %v381_v5 = vld [vmem:[%s2592_s6 + $0x6b0] sm:$0xff] }
  0xc7   : > { %1908 = vst [vmem:[%s2617_s21 + $0x660] sm:$0xff] %v1396_v51  ;;  %v382_v6 = vld [vmem:[%s2592_s6 + $0x6b8] sm:$0xff]  ;;  %1909 = vst [vmem:[%s2617_s21 + $0x668] sm:$0xff] %v1397_v56  ;;  %v1399_v7 = vand.u32 2147483647, %v887_v57  ;;  %v893_v10 = vsub.f32 %v380_v4, %v2599_v1  ;;  %v894_v14 = vsub.f32 %v381_v5, %v2599_v1  ;;  %v383_v17 = vld [vmem:[%s2592_s6 + $0x6c0] sm:$0xff] }
  0xc8   : > { %v1400_v8 = vand.u32 2147483647, %v888_v58  ;;  %v1401_v9 = vand.u32 2147483647, %v889_v59  ;;  %1910 = vst [vmem:[%s2617_s21 + $0x670] sm:$0xff] %v1398_v63  ;;  %v895_v16 = vsub.f32 %v382_v6, %v2599_v1  ;;  %v384_v18 = vld [vmem:[%s2592_s6 + $0x6c8] sm:$0xff]  ;;  %v896_v21 = vsub.f32 %v383_v17, %v2599_v1 }
  0xc9   : > { %v1402_v11 = vand.u32 2147483647, %v890_v0  ;;  %v1403_v12 = vand.u32 2147483647, %v891_v2  ;;  %v1404_v13 = vand.u32 2147483647, %v892_v3  ;;  %v897_v22 = vsub.f32 %v384_v18, %v2599_v1 }
  0xca   : > { %1911 = vst [vmem:[%s2617_s21 + $0x678] sm:$0xff] %v1399_v7  ;;  %1912 = vst [vmem:[%s2617_s21 + $0x680] sm:$0xff] %v1400_v8  ;;  %v1405_v15 = vand.u32 2147483647, %v893_v10  ;;  %v385_v19 = vld [vmem:[%s2592_s6 + $0x6d0] sm:$0xff]  ;;  %v386_v24 = vld [vmem:[%s2592_s6 + $0x6d8] sm:$0xff] }
  0xcb   : > { %1913 = vst [vmem:[%s2617_s21 + $0x688] sm:$0xff] %v1401_v9  ;;  %1914 = vst [vmem:[%s2617_s21 + $0x690] sm:$0xff] %v1402_v11  ;;  %v1406_v20 = vand.u32 2147483647, %v894_v14  ;;  %v898_v23 = vsub.f32 %v385_v19, %v2599_v1  ;;  %v387_v25 = vld [vmem:[%s2592_s6 + $0x6e0] sm:$0xff]  ;;  %v388_v26 = vld [vmem:[%s2592_s6 + $0x6e8] sm:$0xff]  ;;  %v899_v28 = vsub.f32 %v386_v24, %v2599_v1 }
  0xcc   : > { %1915 = vst [vmem:[%s2617_s21 + $0x698] sm:$0xff] %v1403_v12  ;;  %1916 = vst [vmem:[%s2617_s21 + $0x6a0] sm:$0xff] %v1404_v13  ;;  %v1407_v27 = vand.u32 2147483647, %v895_v16  ;;  %v900_v29 = vsub.f32 %v387_v25, %v2599_v1  ;;  %v901_v30 = vsub.f32 %v388_v26, %v2599_v1  ;;  %v389_v31 = vld [vmem:[%s2592_s6 + $0x6f0] sm:$0xff]  ;;  %v390_v32 = vld [vmem:[%s2592_s6 + $0x6f8] sm:$0xff] }
  0xcd   : > { %1917 = vst [vmem:[%s2617_s21 + $0x6a8] sm:$0xff] %v1405_v15  ;;  %v391_v33 = vld [vmem:[%s2592_s6 + $0x700] sm:$0xff]  ;;  %1918 = vst [vmem:[%s2617_s21 + $0x6b0] sm:$0xff] %v1406_v20  ;;  %v1408_v34 = vand.u32 2147483647, %v896_v21  ;;  %v902_v37 = vsub.f32 %v389_v31, %v2599_v1  ;;  %v903_v41 = vsub.f32 %v390_v32, %v2599_v1  ;;  %v392_v44 = vld [vmem:[%s2592_s6 + $0x708] sm:$0xff] }
  0xce   : > { %v1409_v35 = vand.u32 2147483647, %v897_v22  ;;  %v1410_v36 = vand.u32 2147483647, %v898_v23  ;;  %1919 = vst [vmem:[%s2617_s21 + $0x6b8] sm:$0xff] %v1407_v27  ;;  %v904_v43 = vsub.f32 %v391_v33, %v2599_v1  ;;  %v393_v45 = vld [vmem:[%s2592_s6 + $0x710] sm:$0xff]  ;;  %v905_v48 = vsub.f32 %v392_v44, %v2599_v1 }
  0xcf   : > { %v1411_v38 = vand.u32 2147483647, %v899_v28  ;;  %v1412_v39 = vand.u32 2147483647, %v900_v29  ;;  %v1413_v40 = vand.u32 2147483647, %v901_v30  ;;  %v906_v49 = vsub.f32 %v393_v45, %v2599_v1 }
  0xd0   : > { %1920 = vst [vmem:[%s2617_s21 + $0x6c0] sm:$0xff] %v1408_v34  ;;  %1921 = vst [vmem:[%s2617_s21 + $0x6c8] sm:$0xff] %v1409_v35  ;;  %v1414_v42 = vand.u32 2147483647, %v902_v37  ;;  %v394_v46 = vld [vmem:[%s2592_s6 + $0x718] sm:$0xff]  ;;  %v395_v51 = vld [vmem:[%s2592_s6 + $0x720] sm:$0xff] }
  0xd1   : > { %1922 = vst [vmem:[%s2617_s21 + $0x6d0] sm:$0xff] %v1410_v36  ;;  %1923 = vst [vmem:[%s2617_s21 + $0x6d8] sm:$0xff] %v1411_v38  ;;  %v1415_v47 = vand.u32 2147483647, %v903_v41  ;;  %v907_v50 = vsub.f32 %v394_v46, %v2599_v1  ;;  %v396_v52 = vld [vmem:[%s2592_s6 + $0x728] sm:$0xff]  ;;  %v397_v53 = vld [vmem:[%s2592_s6 + $0x730] sm:$0xff]  ;;  %v908_v55 = vsub.f32 %v395_v51, %v2599_v1 }
  0xd2   : > { %1924 = vst [vmem:[%s2617_s21 + $0x6e0] sm:$0xff] %v1412_v39  ;;  %1925 = vst [vmem:[%s2617_s21 + $0x6e8] sm:$0xff] %v1413_v40  ;;  %v1416_v54 = vand.u32 2147483647, %v904_v43  ;;  %v909_v56 = vsub.f32 %v396_v52, %v2599_v1  ;;  %v910_v57 = vsub.f32 %v397_v53, %v2599_v1  ;;  %v398_v58 = vld [vmem:[%s2592_s6 + $0x738] sm:$0xff]  ;;  %v399_v59 = vld [vmem:[%s2592_s6 + $0x740] sm:$0xff] }
  0xd3   : > { %1926 = vst [vmem:[%s2617_s21 + $0x6f0] sm:$0xff] %v1414_v42  ;;  %v400_v60 = vld [vmem:[%s2592_s6 + $0x748] sm:$0xff]  ;;  %1927 = vst [vmem:[%s2617_s21 + $0x6f8] sm:$0xff] %v1415_v47  ;;  %v1417_v61 = vand.u32 2147483647, %v905_v48  ;;  %v911_v0 = vsub.f32 %v398_v58, %v2599_v1  ;;  %v912_v5 = vsub.f32 %v399_v59, %v2599_v1  ;;  %v401_v8 = vld [vmem:[%s2592_s6 + $0x750] sm:$0xff] }
  0xd4   : > { %v1418_v62 = vand.u32 2147483647, %v906_v49  ;;  %v1419_v63 = vand.u32 2147483647, %v907_v50  ;;  %1928 = vst [vmem:[%s2617_s21 + $0x700] sm:$0xff] %v1416_v54  ;;  %v913_v7 = vsub.f32 %v400_v60, %v2599_v1  ;;  %v402_v9 = vld [vmem:[%s2592_s6 + $0x758] sm:$0xff]  ;;  %v914_v12 = vsub.f32 %v401_v8, %v2599_v1 }
  0xd5   : > { %v1420_v2 = vand.u32 2147483647, %v908_v55  ;;  %v1421_v3 = vand.u32 2147483647, %v909_v56  ;;  %v1422_v4 = vand.u32 2147483647, %v910_v57  ;;  %v915_v13 = vsub.f32 %v402_v9, %v2599_v1 }
  0xd6   : > { %1929 = vst [vmem:[%s2617_s21 + $0x708] sm:$0xff] %v1417_v61  ;;  %1930 = vst [vmem:[%s2617_s21 + $0x710] sm:$0xff] %v1418_v62  ;;  %v1423_v6 = vand.u32 2147483647, %v911_v0  ;;  %v403_v10 = vld [vmem:[%s2592_s6 + $0x760] sm:$0xff]  ;;  %v404_v15 = vld [vmem:[%s2592_s6 + $0x768] sm:$0xff] }
  0xd7   : > { %1931 = vst [vmem:[%s2617_s21 + $0x718] sm:$0xff] %v1419_v63  ;;  %1932 = vst [vmem:[%s2617_s21 + $0x720] sm:$0xff] %v1420_v2  ;;  %v1424_v11 = vand.u32 2147483647, %v912_v5  ;;  %v916_v14 = vsub.f32 %v403_v10, %v2599_v1  ;;  %v405_v16 = vld [vmem:[%s2592_s6 + $0x770] sm:$0xff]  ;;  %v406_v17 = vld [vmem:[%s2592_s6 + $0x778] sm:$0xff]  ;;  %v917_v19 = vsub.f32 %v404_v15, %v2599_v1 }
  0xd8   : > { %1933 = vst [vmem:[%s2617_s21 + $0x728] sm:$0xff] %v1421_v3  ;;  %1934 = vst [vmem:[%s2617_s21 + $0x730] sm:$0xff] %v1422_v4  ;;  %v1425_v18 = vand.u32 2147483647, %v913_v7  ;;  %v918_v20 = vsub.f32 %v405_v16, %v2599_v1  ;;  %v919_v21 = vsub.f32 %v406_v17, %v2599_v1  ;;  %v407_v22 = vld [vmem:[%s2592_s6 + $0x780] sm:$0xff]  ;;  %v408_v23 = vld [vmem:[%s2592_s6 + $0x788] sm:$0xff] }
  0xd9   : > { %1935 = vst [vmem:[%s2617_s21 + $0x738] sm:$0xff] %v1423_v6  ;;  %v409_v24 = vld [vmem:[%s2592_s6 + $0x790] sm:$0xff]  ;;  %1936 = vst [vmem:[%s2617_s21 + $0x740] sm:$0xff] %v1424_v11  ;;  %v1426_v25 = vand.u32 2147483647, %v914_v12  ;;  %v920_v28 = vsub.f32 %v407_v22, %v2599_v1  ;;  %v921_v32 = vsub.f32 %v408_v23, %v2599_v1  ;;  %v410_v35 = vld [vmem:[%s2592_s6 + $0x798] sm:$0xff] }
  0xda   : > { %v1427_v26 = vand.u32 2147483647, %v915_v13  ;;  %v1428_v27 = vand.u32 2147483647, %v916_v14  ;;  %1937 = vst [vmem:[%s2617_s21 + $0x748] sm:$0xff] %v1425_v18  ;;  %v922_v34 = vsub.f32 %v409_v24, %v2599_v1  ;;  %v411_v36 = vld [vmem:[%s2592_s6 + $0x7a0] sm:$0xff]  ;;  %v923_v39 = vsub.f32 %v410_v35, %v2599_v1 }
  0xdb   : > { %v1429_v29 = vand.u32 2147483647, %v917_v19  ;;  %v1430_v30 = vand.u32 2147483647, %v918_v20  ;;  %v1431_v31 = vand.u32 2147483647, %v919_v21  ;;  %v924_v40 = vsub.f32 %v411_v36, %v2599_v1 }
  0xdc   : > { %1938 = vst [vmem:[%s2617_s21 + $0x750] sm:$0xff] %v1426_v25  ;;  %1939 = vst [vmem:[%s2617_s21 + $0x758] sm:$0xff] %v1427_v26  ;;  %v1432_v33 = vand.u32 2147483647, %v920_v28  ;;  %v412_v37 = vld [vmem:[%s2592_s6 + $0x7a8] sm:$0xff]  ;;  %v413_v42 = vld [vmem:[%s2592_s6 + $0x7b0] sm:$0xff] }
  0xdd   : > { %1940 = vst [vmem:[%s2617_s21 + $0x760] sm:$0xff] %v1428_v27  ;;  %1941 = vst [vmem:[%s2617_s21 + $0x768] sm:$0xff] %v1429_v29  ;;  %v1433_v38 = vand.u32 2147483647, %v921_v32  ;;  %v925_v41 = vsub.f32 %v412_v37, %v2599_v1  ;;  %v414_v43 = vld [vmem:[%s2592_s6 + $0x7b8] sm:$0xff]  ;;  %v415_v44 = vld [vmem:[%s2592_s6 + $0x7c0] sm:$0xff]  ;;  %v926_v46 = vsub.f32 %v413_v42, %v2599_v1 }
  0xde   : > { %1942 = vst [vmem:[%s2617_s21 + $0x770] sm:$0xff] %v1430_v30  ;;  %1943 = vst [vmem:[%s2617_s21 + $0x778] sm:$0xff] %v1431_v31  ;;  %v1434_v45 = vand.u32 2147483647, %v922_v34  ;;  %v927_v47 = vsub.f32 %v414_v43, %v2599_v1  ;;  %v928_v48 = vsub.f32 %v415_v44, %v2599_v1  ;;  %v416_v49 = vld [vmem:[%s2592_s6 + $0x7c8] sm:$0xff]  ;;  %v417_v50 = vld [vmem:[%s2592_s6 + $0x7d0] sm:$0xff] }
  0xdf   : > { %1944 = vst [vmem:[%s2617_s21 + $0x780] sm:$0xff] %v1432_v33  ;;  %v418_v51 = vld [vmem:[%s2592_s6 + $0x7d8] sm:$0xff]  ;;  %1945 = vst [vmem:[%s2617_s21 + $0x788] sm:$0xff] %v1433_v38  ;;  %v1435_v52 = vand.u32 2147483647, %v923_v39  ;;  %v929_v55 = vsub.f32 %v416_v49, %v2599_v1  ;;  %v930_v59 = vsub.f32 %v417_v50, %v2599_v1  ;;  %v419_v62 = vld [vmem:[%s2592_s6 + $0x7e0] sm:$0xff] }
  0xe0   : > { %v1436_v53 = vand.u32 2147483647, %v924_v40  ;;  %v1437_v54 = vand.u32 2147483647, %v925_v41  ;;  %1946 = vst [vmem:[%s2617_s21 + $0x790] sm:$0xff] %v1434_v45  ;;  %v931_v61 = vsub.f32 %v418_v51, %v2599_v1  ;;  %v420_v63 = vld [vmem:[%s2592_s6 + $0x7e8] sm:$0xff]  ;;  %v932_v3 = vsub.f32 %v419_v62, %v2599_v1 }
  0xe1   : > { %v1438_v56 = vand.u32 2147483647, %v926_v46  ;;  %v1439_v57 = vand.u32 2147483647, %v927_v47  ;;  %v1440_v58 = vand.u32 2147483647, %v928_v48  ;;  %v933_v4 = vsub.f32 %v420_v63, %v2599_v1 }
  0xe2   : > { %1947 = vst [vmem:[%s2617_s21 + $0x798] sm:$0xff] %v1435_v52  ;;  %1948 = vst [vmem:[%s2617_s21 + $0x7a0] sm:$0xff] %v1436_v53  ;;  %v1441_v60 = vand.u32 2147483647, %v929_v55  ;;  %v421_v0 = vld [vmem:[%s2592_s6 + $0x7f0] sm:$0xff]  ;;  %v422_v6 = vld [vmem:[%s2592_s6 + $0x7f8] sm:$0xff] }
  0xe3   : > { %1949 = vst [vmem:[%s2617_s21 + $0x7a8] sm:$0xff] %v1437_v54  ;;  %1950 = vst [vmem:[%s2617_s21 + $0x7b0] sm:$0xff] %v1438_v56  ;;  %v1442_v2 = vand.u32 2147483647, %v930_v59  ;;  %v934_v5 = vsub.f32 %v421_v0, %v2599_v1  ;;  %v423_v7 = vld [vmem:[%s2592_s6 + $0x800] sm:$0xff]  ;;  %v424_v8 = vld [vmem:[%s2592_s6 + $0x808] sm:$0xff]  ;;  %v935_v10 = vsub.f32 %v422_v6, %v2599_v1 }
  0xe4   : > { %1951 = vst [vmem:[%s2617_s21 + $0x7b8] sm:$0xff] %v1439_v57  ;;  %1952 = vst [vmem:[%s2617_s21 + $0x7c0] sm:$0xff] %v1440_v58  ;;  %v1443_v9 = vand.u32 2147483647, %v931_v61  ;;  %v936_v11 = vsub.f32 %v423_v7, %v2599_v1  ;;  %v937_v12 = vsub.f32 %v424_v8, %v2599_v1  ;;  %v425_v13 = vld [vmem:[%s2592_s6 + $0x810] sm:$0xff]  ;;  %v426_v14 = vld [vmem:[%s2592_s6 + $0x818] sm:$0xff] }
  0xe5   : > { %1953 = vst [vmem:[%s2617_s21 + $0x7c8] sm:$0xff] %v1441_v60  ;;  %v427_v15 = vld [vmem:[%s2592_s6 + $0x820] sm:$0xff]  ;;  %1954 = vst [vmem:[%s2617_s21 + $0x7d0] sm:$0xff] %v1442_v2  ;;  %v1444_v16 = vand.u32 2147483647, %v932_v3  ;;  %v938_v19 = vsub.f32 %v425_v13, %v2599_v1  ;;  %v939_v23 = vsub.f32 %v426_v14, %v2599_v1  ;;  %v428_v26 = vld [vmem:[%s2592_s6 + $0x828] sm:$0xff] }
  0xe6   : > { %v1445_v17 = vand.u32 2147483647, %v933_v4  ;;  %v1446_v18 = vand.u32 2147483647, %v934_v5  ;;  %1955 = vst [vmem:[%s2617_s21 + $0x7d8] sm:$0xff] %v1443_v9  ;;  %v940_v25 = vsub.f32 %v427_v15, %v2599_v1  ;;  %v429_v27 = vld [vmem:[%s2592_s6 + $0x830] sm:$0xff]  ;;  %v941_v30 = vsub.f32 %v428_v26, %v2599_v1 }
  0xe7   : > { %v1447_v20 = vand.u32 2147483647, %v935_v10  ;;  %v1448_v21 = vand.u32 2147483647, %v936_v11  ;;  %v1449_v22 = vand.u32 2147483647, %v937_v12  ;;  %v942_v31 = vsub.f32 %v429_v27, %v2599_v1 }
  0xe8   : > { %1956 = vst [vmem:[%s2617_s21 + $0x7e0] sm:$0xff] %v1444_v16  ;;  %1957 = vst [vmem:[%s2617_s21 + $0x7e8] sm:$0xff] %v1445_v17  ;;  %v1450_v24 = vand.u32 2147483647, %v938_v19  ;;  %v430_v28 = vld [vmem:[%s2592_s6 + $0x838] sm:$0xff]  ;;  %v431_v33 = vld [vmem:[%s2592_s6 + $0x840] sm:$0xff] }
  0xe9   : > { %1958 = vst [vmem:[%s2617_s21 + $0x7f0] sm:$0xff] %v1446_v18  ;;  %1959 = vst [vmem:[%s2617_s21 + $0x7f8] sm:$0xff] %v1447_v20  ;;  %v1451_v29 = vand.u32 2147483647, %v939_v23  ;;  %v943_v32 = vsub.f32 %v430_v28, %v2599_v1  ;;  %v432_v34 = vld [vmem:[%s2592_s6 + $0x848] sm:$0xff]  ;;  %v433_v35 = vld [vmem:[%s2592_s6 + $0x850] sm:$0xff]  ;;  %v944_v37 = vsub.f32 %v431_v33, %v2599_v1 }
  0xea   : > { %1960 = vst [vmem:[%s2617_s21 + $0x800] sm:$0xff] %v1448_v21  ;;  %1961 = vst [vmem:[%s2617_s21 + $0x808] sm:$0xff] %v1449_v22  ;;  %v1452_v36 = vand.u32 2147483647, %v940_v25  ;;  %v945_v38 = vsub.f32 %v432_v34, %v2599_v1  ;;  %v946_v39 = vsub.f32 %v433_v35, %v2599_v1  ;;  %v434_v40 = vld [vmem:[%s2592_s6 + $0x858] sm:$0xff]  ;;  %v435_v41 = vld [vmem:[%s2592_s6 + $0x860] sm:$0xff] }
  0xeb   : > { %1962 = vst [vmem:[%s2617_s21 + $0x810] sm:$0xff] %v1450_v24  ;;  %v436_v42 = vld [vmem:[%s2592_s6 + $0x868] sm:$0xff]  ;;  %1963 = vst [vmem:[%s2617_s21 + $0x818] sm:$0xff] %v1451_v29  ;;  %v1453_v43 = vand.u32 2147483647, %v941_v30  ;;  %v947_v46 = vsub.f32 %v434_v40, %v2599_v1  ;;  %v948_v50 = vsub.f32 %v435_v41, %v2599_v1  ;;  %v437_v53 = vld [vmem:[%s2592_s6 + $0x870] sm:$0xff] }
  0xec   : > { %v1454_v44 = vand.u32 2147483647, %v942_v31  ;;  %v1455_v45 = vand.u32 2147483647, %v943_v32  ;;  %1964 = vst [vmem:[%s2617_s21 + $0x820] sm:$0xff] %v1452_v36  ;;  %v949_v52 = vsub.f32 %v436_v42, %v2599_v1  ;;  %v438_v54 = vld [vmem:[%s2592_s6 + $0x878] sm:$0xff]  ;;  %v950_v57 = vsub.f32 %v437_v53, %v2599_v1 }
  0xed   : > { %v1456_v47 = vand.u32 2147483647, %v944_v37  ;;  %v1457_v48 = vand.u32 2147483647, %v945_v38  ;;  %v1458_v49 = vand.u32 2147483647, %v946_v39  ;;  %v951_v58 = vsub.f32 %v438_v54, %v2599_v1 }
  0xee   : > { %1965 = vst [vmem:[%s2617_s21 + $0x828] sm:$0xff] %v1453_v43  ;;  %1966 = vst [vmem:[%s2617_s21 + $0x830] sm:$0xff] %v1454_v44  ;;  %v1459_v51 = vand.u32 2147483647, %v947_v46  ;;  %v439_v55 = vld [vmem:[%s2592_s6 + $0x880] sm:$0xff]  ;;  %v440_v60 = vld [vmem:[%s2592_s6 + $0x888] sm:$0xff] }
  0xef   : > { %1967 = vst [vmem:[%s2617_s21 + $0x838] sm:$0xff] %v1455_v45  ;;  %1968 = vst [vmem:[%s2617_s21 + $0x840] sm:$0xff] %v1456_v47  ;;  %v1460_v56 = vand.u32 2147483647, %v948_v50  ;;  %v952_v59 = vsub.f32 %v439_v55, %v2599_v1  ;;  %v441_v61 = vld [vmem:[%s2592_s6 + $0x890] sm:$0xff]  ;;  %v442_v62 = vld [vmem:[%s2592_s6 + $0x898] sm:$0xff]  ;;  %v953_v0 = vsub.f32 %v440_v60, %v2599_v1 }
  0xf0   : > { %1969 = vst [vmem:[%s2617_s21 + $0x848] sm:$0xff] %v1457_v48  ;;  %1970 = vst [vmem:[%s2617_s21 + $0x850] sm:$0xff] %v1458_v49  ;;  %v1461_v63 = vand.u32 2147483647, %v949_v52  ;;  %v954_v2 = vsub.f32 %v441_v61, %v2599_v1  ;;  %v955_v3 = vsub.f32 %v442_v62, %v2599_v1  ;;  %v443_v4 = vld [vmem:[%s2592_s6 + $0x8a0] sm:$0xff]  ;;  %v444_v5 = vld [vmem:[%s2592_s6 + $0x8a8] sm:$0xff] }
  0xf1   : > { %1971 = vst [vmem:[%s2617_s21 + $0x858] sm:$0xff] %v1459_v51  ;;  %v445_v6 = vld [vmem:[%s2592_s6 + $0x8b0] sm:$0xff]  ;;  %1972 = vst [vmem:[%s2617_s21 + $0x860] sm:$0xff] %v1460_v56  ;;  %v1462_v7 = vand.u32 2147483647, %v950_v57  ;;  %v956_v10 = vsub.f32 %v443_v4, %v2599_v1  ;;  %v957_v14 = vsub.f32 %v444_v5, %v2599_v1  ;;  %v446_v17 = vld [vmem:[%s2592_s6 + $0x8b8] sm:$0xff] }
  0xf2   : > { %v1463_v8 = vand.u32 2147483647, %v951_v58  ;;  %v1464_v9 = vand.u32 2147483647, %v952_v59  ;;  %1973 = vst [vmem:[%s2617_s21 + $0x868] sm:$0xff] %v1461_v63  ;;  %v958_v16 = vsub.f32 %v445_v6, %v2599_v1  ;;  %v447_v18 = vld [vmem:[%s2592_s6 + $0x8c0] sm:$0xff]  ;;  %v959_v21 = vsub.f32 %v446_v17, %v2599_v1 }
  0xf3   : > { %v1465_v11 = vand.u32 2147483647, %v953_v0  ;;  %v1466_v12 = vand.u32 2147483647, %v954_v2  ;;  %v1467_v13 = vand.u32 2147483647, %v955_v3  ;;  %v960_v22 = vsub.f32 %v447_v18, %v2599_v1 }
  0xf4   : > { %1974 = vst [vmem:[%s2617_s21 + $0x870] sm:$0xff] %v1462_v7  ;;  %1975 = vst [vmem:[%s2617_s21 + $0x878] sm:$0xff] %v1463_v8  ;;  %v1468_v15 = vand.u32 2147483647, %v956_v10  ;;  %v448_v19 = vld [vmem:[%s2592_s6 + $0x8c8] sm:$0xff]  ;;  %v449_v24 = vld [vmem:[%s2592_s6 + $0x8d0] sm:$0xff] }
  0xf5   : > { %1976 = vst [vmem:[%s2617_s21 + $0x880] sm:$0xff] %v1464_v9  ;;  %1977 = vst [vmem:[%s2617_s21 + $0x888] sm:$0xff] %v1465_v11  ;;  %v1469_v20 = vand.u32 2147483647, %v957_v14  ;;  %v961_v23 = vsub.f32 %v448_v19, %v2599_v1  ;;  %v450_v25 = vld [vmem:[%s2592_s6 + $0x8d8] sm:$0xff]  ;;  %v451_v26 = vld [vmem:[%s2592_s6 + $0x8e0] sm:$0xff]  ;;  %v962_v28 = vsub.f32 %v449_v24, %v2599_v1 }
  0xf6   : > { %1978 = vst [vmem:[%s2617_s21 + $0x890] sm:$0xff] %v1466_v12  ;;  %1979 = vst [vmem:[%s2617_s21 + $0x898] sm:$0xff] %v1467_v13  ;;  %v1470_v27 = vand.u32 2147483647, %v958_v16  ;;  %v963_v29 = vsub.f32 %v450_v25, %v2599_v1  ;;  %v964_v30 = vsub.f32 %v451_v26, %v2599_v1  ;;  %v452_v31 = vld [vmem:[%s2592_s6 + $0x8e8] sm:$0xff]  ;;  %v453_v32 = vld [vmem:[%s2592_s6 + $0x8f0] sm:$0xff] }
  0xf7   : > { %1980 = vst [vmem:[%s2617_s21 + $0x8a0] sm:$0xff] %v1468_v15  ;;  %v454_v33 = vld [vmem:[%s2592_s6 + $0x8f8] sm:$0xff]  ;;  %1981 = vst [vmem:[%s2617_s21 + $0x8a8] sm:$0xff] %v1469_v20  ;;  %v1471_v34 = vand.u32 2147483647, %v959_v21  ;;  %v965_v37 = vsub.f32 %v452_v31, %v2599_v1  ;;  %v966_v41 = vsub.f32 %v453_v32, %v2599_v1  ;;  %v455_v44 = vld [vmem:[%s2592_s6 + $0x900] sm:$0xff] }
  0xf8   : > { %v1472_v35 = vand.u32 2147483647, %v960_v22  ;;  %v1473_v36 = vand.u32 2147483647, %v961_v23  ;;  %1982 = vst [vmem:[%s2617_s21 + $0x8b0] sm:$0xff] %v1470_v27  ;;  %v967_v43 = vsub.f32 %v454_v33, %v2599_v1  ;;  %v456_v45 = vld [vmem:[%s2592_s6 + $0x908] sm:$0xff]  ;;  %v968_v48 = vsub.f32 %v455_v44, %v2599_v1 }
  0xf9   : > { %v1474_v38 = vand.u32 2147483647, %v962_v28  ;;  %v1475_v39 = vand.u32 2147483647, %v963_v29  ;;  %v1476_v40 = vand.u32 2147483647, %v964_v30  ;;  %v969_v49 = vsub.f32 %v456_v45, %v2599_v1 }
  0xfa   : > { %1983 = vst [vmem:[%s2617_s21 + $0x8b8] sm:$0xff] %v1471_v34  ;;  %1984 = vst [vmem:[%s2617_s21 + $0x8c0] sm:$0xff] %v1472_v35  ;;  %v1477_v42 = vand.u32 2147483647, %v965_v37  ;;  %v457_v46 = vld [vmem:[%s2592_s6 + $0x910] sm:$0xff]  ;;  %v458_v51 = vld [vmem:[%s2592_s6 + $0x918] sm:$0xff] }
  0xfb   : > { %1985 = vst [vmem:[%s2617_s21 + $0x8c8] sm:$0xff] %v1473_v36  ;;  %1986 = vst [vmem:[%s2617_s21 + $0x8d0] sm:$0xff] %v1474_v38  ;;  %v1478_v47 = vand.u32 2147483647, %v966_v41  ;;  %v970_v50 = vsub.f32 %v457_v46, %v2599_v1  ;;  %v459_v52 = vld [vmem:[%s2592_s6 + $0x920] sm:$0xff]  ;;  %v460_v53 = vld [vmem:[%s2592_s6 + $0x928] sm:$0xff]  ;;  %v971_v55 = vsub.f32 %v458_v51, %v2599_v1 }
  0xfc   : > { %1987 = vst [vmem:[%s2617_s21 + $0x8d8] sm:$0xff] %v1475_v39  ;;  %1988 = vst [vmem:[%s2617_s21 + $0x8e0] sm:$0xff] %v1476_v40  ;;  %v1479_v54 = vand.u32 2147483647, %v967_v43  ;;  %v972_v56 = vsub.f32 %v459_v52, %v2599_v1  ;;  %v973_v57 = vsub.f32 %v460_v53, %v2599_v1  ;;  %v461_v58 = vld [vmem:[%s2592_s6 + $0x930] sm:$0xff]  ;;  %v462_v59 = vld [vmem:[%s2592_s6 + $0x938] sm:$0xff] }
  0xfd   : > { %1989 = vst [vmem:[%s2617_s21 + $0x8e8] sm:$0xff] %v1477_v42  ;;  %v463_v60 = vld [vmem:[%s2592_s6 + $0x940] sm:$0xff]  ;;  %1990 = vst [vmem:[%s2617_s21 + $0x8f0] sm:$0xff] %v1478_v47  ;;  %v1480_v61 = vand.u32 2147483647, %v968_v48  ;;  %v974_v0 = vsub.f32 %v461_v58, %v2599_v1  ;;  %v975_v5 = vsub.f32 %v462_v59, %v2599_v1  ;;  %v464_v8 = vld [vmem:[%s2592_s6 + $0x948] sm:$0xff] }
  0xfe   : > { %v1481_v62 = vand.u32 2147483647, %v969_v49  ;;  %v1482_v63 = vand.u32 2147483647, %v970_v50  ;;  %1991 = vst [vmem:[%s2617_s21 + $0x8f8] sm:$0xff] %v1479_v54  ;;  %v976_v7 = vsub.f32 %v463_v60, %v2599_v1  ;;  %v465_v9 = vld [vmem:[%s2592_s6 + $0x950] sm:$0xff]  ;;  %v977_v12 = vsub.f32 %v464_v8, %v2599_v1 }
  0xff   : > { %v1483_v2 = vand.u32 2147483647, %v971_v55  ;;  %v1484_v3 = vand.u32 2147483647, %v972_v56  ;;  %v1485_v4 = vand.u32 2147483647, %v973_v57  ;;  %v978_v13 = vsub.f32 %v465_v9, %v2599_v1 }
 0x100   : > { %1992 = vst [vmem:[%s2617_s21 + $0x900] sm:$0xff] %v1480_v61  ;;  %1993 = vst [vmem:[%s2617_s21 + $0x908] sm:$0xff] %v1481_v62  ;;  %v1486_v6 = vand.u32 2147483647, %v974_v0  ;;  %v466_v10 = vld [vmem:[%s2592_s6 + $0x958] sm:$0xff]  ;;  %v467_v15 = vld [vmem:[%s2592_s6 + $0x960] sm:$0xff] }
 0x101   : > { %1994 = vst [vmem:[%s2617_s21 + $0x910] sm:$0xff] %v1482_v63  ;;  %1995 = vst [vmem:[%s2617_s21 + $0x918] sm:$0xff] %v1483_v2  ;;  %v1487_v11 = vand.u32 2147483647, %v975_v5  ;;  %v979_v14 = vsub.f32 %v466_v10, %v2599_v1  ;;  %v468_v16 = vld [vmem:[%s2592_s6 + $0x968] sm:$0xff]  ;;  %v469_v17 = vld [vmem:[%s2592_s6 + $0x970] sm:$0xff]  ;;  %v980_v19 = vsub.f32 %v467_v15, %v2599_v1 }
 0x102   : > { %1996 = vst [vmem:[%s2617_s21 + $0x920] sm:$0xff] %v1484_v3  ;;  %1997 = vst [vmem:[%s2617_s21 + $0x928] sm:$0xff] %v1485_v4  ;;  %v1488_v18 = vand.u32 2147483647, %v976_v7  ;;  %v981_v20 = vsub.f32 %v468_v16, %v2599_v1  ;;  %v982_v21 = vsub.f32 %v469_v17, %v2599_v1  ;;  %v470_v22 = vld [vmem:[%s2592_s6 + $0x978] sm:$0xff]  ;;  %v471_v23 = vld [vmem:[%s2592_s6 + $0x980] sm:$0xff] }
 0x103   : > { %1998 = vst [vmem:[%s2617_s21 + $0x930] sm:$0xff] %v1486_v6  ;;  %v472_v24 = vld [vmem:[%s2592_s6 + $0x988] sm:$0xff]  ;;  %1999 = vst [vmem:[%s2617_s21 + $0x938] sm:$0xff] %v1487_v11  ;;  %v1489_v25 = vand.u32 2147483647, %v977_v12  ;;  %v983_v28 = vsub.f32 %v470_v22, %v2599_v1  ;;  %v984_v32 = vsub.f32 %v471_v23, %v2599_v1  ;;  %v473_v35 = vld [vmem:[%s2592_s6 + $0x990] sm:$0xff] }
 0x104   : > { %v1490_v26 = vand.u32 2147483647, %v978_v13  ;;  %v1491_v27 = vand.u32 2147483647, %v979_v14  ;;  %2000 = vst [vmem:[%s2617_s21 + $0x940] sm:$0xff] %v1488_v18  ;;  %v985_v34 = vsub.f32 %v472_v24, %v2599_v1  ;;  %v474_v36 = vld [vmem:[%s2592_s6 + $0x998] sm:$0xff]  ;;  %v986_v39 = vsub.f32 %v473_v35, %v2599_v1 }
 0x105   : > { %v1492_v29 = vand.u32 2147483647, %v980_v19  ;;  %v1493_v30 = vand.u32 2147483647, %v981_v20  ;;  %v1494_v31 = vand.u32 2147483647, %v982_v21  ;;  %v987_v40 = vsub.f32 %v474_v36, %v2599_v1 }
 0x106   : > { %2001 = vst [vmem:[%s2617_s21 + $0x948] sm:$0xff] %v1489_v25  ;;  %2002 = vst [vmem:[%s2617_s21 + $0x950] sm:$0xff] %v1490_v26  ;;  %v1495_v33 = vand.u32 2147483647, %v983_v28  ;;  %v475_v37 = vld [vmem:[%s2592_s6 + $0x9a0] sm:$0xff]  ;;  %v476_v42 = vld [vmem:[%s2592_s6 + $0x9a8] sm:$0xff] }
 0x107   : > { %2003 = vst [vmem:[%s2617_s21 + $0x958] sm:$0xff] %v1491_v27  ;;  %2004 = vst [vmem:[%s2617_s21 + $0x960] sm:$0xff] %v1492_v29  ;;  %v1496_v38 = vand.u32 2147483647, %v984_v32  ;;  %v988_v41 = vsub.f32 %v475_v37, %v2599_v1  ;;  %v477_v43 = vld [vmem:[%s2592_s6 + $0x9b0] sm:$0xff]  ;;  %v478_v44 = vld [vmem:[%s2592_s6 + $0x9b8] sm:$0xff]  ;;  %v989_v46 = vsub.f32 %v476_v42, %v2599_v1 }
 0x108   : > { %2005 = vst [vmem:[%s2617_s21 + $0x968] sm:$0xff] %v1493_v30  ;;  %2006 = vst [vmem:[%s2617_s21 + $0x970] sm:$0xff] %v1494_v31  ;;  %v1497_v45 = vand.u32 2147483647, %v985_v34  ;;  %v990_v47 = vsub.f32 %v477_v43, %v2599_v1  ;;  %v991_v48 = vsub.f32 %v478_v44, %v2599_v1  ;;  %v479_v49 = vld [vmem:[%s2592_s6 + $0x9c0] sm:$0xff]  ;;  %v480_v50 = vld [vmem:[%s2592_s6 + $0x9c8] sm:$0xff] }
 0x109   : > { %2007 = vst [vmem:[%s2617_s21 + $0x978] sm:$0xff] %v1495_v33  ;;  %v481_v51 = vld [vmem:[%s2592_s6 + $0x9d0] sm:$0xff]  ;;  %2008 = vst [vmem:[%s2617_s21 + $0x980] sm:$0xff] %v1496_v38  ;;  %v1498_v52 = vand.u32 2147483647, %v986_v39  ;;  %v992_v55 = vsub.f32 %v479_v49, %v2599_v1  ;;  %v993_v59 = vsub.f32 %v480_v50, %v2599_v1  ;;  %v482_v62 = vld [vmem:[%s2592_s6 + $0x9d8] sm:$0xff] }
 0x10a   : > { %v1499_v53 = vand.u32 2147483647, %v987_v40  ;;  %v1500_v54 = vand.u32 2147483647, %v988_v41  ;;  %2009 = vst [vmem:[%s2617_s21 + $0x988] sm:$0xff] %v1497_v45  ;;  %v994_v61 = vsub.f32 %v481_v51, %v2599_v1  ;;  %v483_v63 = vld [vmem:[%s2592_s6 + $0x9e0] sm:$0xff]  ;;  %v995_v3 = vsub.f32 %v482_v62, %v2599_v1 }
 0x10b   : > { %v1501_v56 = vand.u32 2147483647, %v989_v46  ;;  %v1502_v57 = vand.u32 2147483647, %v990_v47  ;;  %v1503_v58 = vand.u32 2147483647, %v991_v48  ;;  %v996_v4 = vsub.f32 %v483_v63, %v2599_v1 }
 0x10c   : > { %2010 = vst [vmem:[%s2617_s21 + $0x990] sm:$0xff] %v1498_v52  ;;  %2011 = vst [vmem:[%s2617_s21 + $0x998] sm:$0xff] %v1499_v53  ;;  %v1504_v60 = vand.u32 2147483647, %v992_v55  ;;  %v484_v0 = vld [vmem:[%s2592_s6 + $0x9e8] sm:$0xff]  ;;  %v485_v6 = vld [vmem:[%s2592_s6 + $0x9f0] sm:$0xff] }
 0x10d   : > { %2012 = vst [vmem:[%s2617_s21 + $0x9a0] sm:$0xff] %v1500_v54  ;;  %2013 = vst [vmem:[%s2617_s21 + $0x9a8] sm:$0xff] %v1501_v56  ;;  %v1505_v2 = vand.u32 2147483647, %v993_v59  ;;  %v997_v5 = vsub.f32 %v484_v0, %v2599_v1  ;;  %v486_v7 = vld [vmem:[%s2592_s6 + $0x9f8] sm:$0xff]  ;;  %v487_v8 = vld [vmem:[%s2592_s6 + $0xa00] sm:$0xff]  ;;  %v998_v10 = vsub.f32 %v485_v6, %v2599_v1 }
 0x10e   : > { %2014 = vst [vmem:[%s2617_s21 + $0x9b0] sm:$0xff] %v1502_v57  ;;  %2015 = vst [vmem:[%s2617_s21 + $0x9b8] sm:$0xff] %v1503_v58  ;;  %v1506_v9 = vand.u32 2147483647, %v994_v61  ;;  %v999_v11 = vsub.f32 %v486_v7, %v2599_v1  ;;  %v1000_v12 = vsub.f32 %v487_v8, %v2599_v1  ;;  %v488_v13 = vld [vmem:[%s2592_s6 + $0xa08] sm:$0xff]  ;;  %v489_v14 = vld [vmem:[%s2592_s6 + $0xa10] sm:$0xff] }
 0x10f   : > { %2016 = vst [vmem:[%s2617_s21 + $0x9c0] sm:$0xff] %v1504_v60  ;;  %v490_v15 = vld [vmem:[%s2592_s6 + $0xa18] sm:$0xff]  ;;  %2017 = vst [vmem:[%s2617_s21 + $0x9c8] sm:$0xff] %v1505_v2  ;;  %v1507_v16 = vand.u32 2147483647, %v995_v3  ;;  %v1001_v19 = vsub.f32 %v488_v13, %v2599_v1  ;;  %v1002_v23 = vsub.f32 %v489_v14, %v2599_v1  ;;  %v491_v26 = vld [vmem:[%s2592_s6 + $0xa20] sm:$0xff] }
 0x110   : > { %v1508_v17 = vand.u32 2147483647, %v996_v4  ;;  %v1509_v18 = vand.u32 2147483647, %v997_v5  ;;  %2018 = vst [vmem:[%s2617_s21 + $0x9d0] sm:$0xff] %v1506_v9  ;;  %v1003_v25 = vsub.f32 %v490_v15, %v2599_v1  ;;  %v492_v27 = vld [vmem:[%s2592_s6 + $0xa28] sm:$0xff]  ;;  %v1004_v30 = vsub.f32 %v491_v26, %v2599_v1 }
 0x111   : > { %v1510_v20 = vand.u32 2147483647, %v998_v10  ;;  %v1511_v21 = vand.u32 2147483647, %v999_v11  ;;  %v1512_v22 = vand.u32 2147483647, %v1000_v12  ;;  %v1005_v31 = vsub.f32 %v492_v27, %v2599_v1 }
 0x112   : > { %2019 = vst [vmem:[%s2617_s21 + $0x9d8] sm:$0xff] %v1507_v16  ;;  %2020 = vst [vmem:[%s2617_s21 + $0x9e0] sm:$0xff] %v1508_v17  ;;  %v1513_v24 = vand.u32 2147483647, %v1001_v19  ;;  %v493_v28 = vld [vmem:[%s2592_s6 + $0xa30] sm:$0xff]  ;;  %v494_v33 = vld [vmem:[%s2592_s6 + $0xa38] sm:$0xff] }
 0x113   : > { %2021 = vst [vmem:[%s2617_s21 + $0x9e8] sm:$0xff] %v1509_v18  ;;  %2022 = vst [vmem:[%s2617_s21 + $0x9f0] sm:$0xff] %v1510_v20  ;;  %v1514_v29 = vand.u32 2147483647, %v1002_v23  ;;  %v1006_v32 = vsub.f32 %v493_v28, %v2599_v1  ;;  %v495_v34 = vld [vmem:[%s2592_s6 + $0xa40] sm:$0xff]  ;;  %v496_v35 = vld [vmem:[%s2592_s6 + $0xa48] sm:$0xff]  ;;  %v1007_v37 = vsub.f32 %v494_v33, %v2599_v1 }
 0x114   : > { %2023 = vst [vmem:[%s2617_s21 + $0x9f8] sm:$0xff] %v1511_v21  ;;  %2024 = vst [vmem:[%s2617_s21 + $0xa00] sm:$0xff] %v1512_v22  ;;  %v1515_v36 = vand.u32 2147483647, %v1003_v25  ;;  %v1008_v38 = vsub.f32 %v495_v34, %v2599_v1  ;;  %v1009_v39 = vsub.f32 %v496_v35, %v2599_v1  ;;  %v497_v40 = vld [vmem:[%s2592_s6 + $0xa50] sm:$0xff]  ;;  %v498_v41 = vld [vmem:[%s2592_s6 + $0xa58] sm:$0xff] }
 0x115   : > { %2025 = vst [vmem:[%s2617_s21 + $0xa08] sm:$0xff] %v1513_v24  ;;  %v499_v42 = vld [vmem:[%s2592_s6 + $0xa60] sm:$0xff]  ;;  %2026 = vst [vmem:[%s2617_s21 + $0xa10] sm:$0xff] %v1514_v29  ;;  %v1516_v43 = vand.u32 2147483647, %v1004_v30  ;;  %v1010_v46 = vsub.f32 %v497_v40, %v2599_v1  ;;  %v1011_v50 = vsub.f32 %v498_v41, %v2599_v1  ;;  %v500_v53 = vld [vmem:[%s2592_s6 + $0xa68] sm:$0xff] }
 0x116   : > { %v1517_v44 = vand.u32 2147483647, %v1005_v31  ;;  %v1518_v45 = vand.u32 2147483647, %v1006_v32  ;;  %2027 = vst [vmem:[%s2617_s21 + $0xa18] sm:$0xff] %v1515_v36  ;;  %v1012_v52 = vsub.f32 %v499_v42, %v2599_v1  ;;  %v501_v54 = vld [vmem:[%s2592_s6 + $0xa70] sm:$0xff]  ;;  %v1013_v57 = vsub.f32 %v500_v53, %v2599_v1 }
 0x117   : > { %v1519_v47 = vand.u32 2147483647, %v1007_v37  ;;  %v1520_v48 = vand.u32 2147483647, %v1008_v38  ;;  %v1521_v49 = vand.u32 2147483647, %v1009_v39  ;;  %v1014_v58 = vsub.f32 %v501_v54, %v2599_v1 }
 0x118   : > { %2028 = vst [vmem:[%s2617_s21 + $0xa20] sm:$0xff] %v1516_v43  ;;  %2029 = vst [vmem:[%s2617_s21 + $0xa28] sm:$0xff] %v1517_v44  ;;  %v1522_v51 = vand.u32 2147483647, %v1010_v46  ;;  %v502_v55 = vld [vmem:[%s2592_s6 + $0xa78] sm:$0xff]  ;;  %v503_v60 = vld [vmem:[%s2592_s6 + $0xa80] sm:$0xff] }
 0x119   : > { %2030 = vst [vmem:[%s2617_s21 + $0xa30] sm:$0xff] %v1518_v45  ;;  %2031 = vst [vmem:[%s2617_s21 + $0xa38] sm:$0xff] %v1519_v47  ;;  %v1523_v56 = vand.u32 2147483647, %v1011_v50  ;;  %v1015_v59 = vsub.f32 %v502_v55, %v2599_v1  ;;  %v504_v61 = vld [vmem:[%s2592_s6 + $0xa88] sm:$0xff]  ;;  %v505_v62 = vld [vmem:[%s2592_s6 + $0xa90] sm:$0xff]  ;;  %v1016_v0 = vsub.f32 %v503_v60, %v2599_v1 }
 0x11a   : > { %2032 = vst [vmem:[%s2617_s21 + $0xa40] sm:$0xff] %v1520_v48  ;;  %2033 = vst [vmem:[%s2617_s21 + $0xa48] sm:$0xff] %v1521_v49  ;;  %v1524_v63 = vand.u32 2147483647, %v1012_v52  ;;  %v1017_v2 = vsub.f32 %v504_v61, %v2599_v1  ;;  %v1018_v3 = vsub.f32 %v505_v62, %v2599_v1  ;;  %v506_v4 = vld [vmem:[%s2592_s6 + $0xa98] sm:$0xff]  ;;  %v507_v5 = vld [vmem:[%s2592_s6 + $0xaa0] sm:$0xff] }
 0x11b   : > { %2034 = vst [vmem:[%s2617_s21 + $0xa50] sm:$0xff] %v1522_v51  ;;  %v508_v6 = vld [vmem:[%s2592_s6 + $0xaa8] sm:$0xff]  ;;  %2035 = vst [vmem:[%s2617_s21 + $0xa58] sm:$0xff] %v1523_v56  ;;  %v1525_v7 = vand.u32 2147483647, %v1013_v57  ;;  %v1019_v10 = vsub.f32 %v506_v4, %v2599_v1  ;;  %v1020_v14 = vsub.f32 %v507_v5, %v2599_v1  ;;  %v509_v17 = vld [vmem:[%s2592_s6 + $0xab0] sm:$0xff] }
 0x11c   : > { %v1526_v8 = vand.u32 2147483647, %v1014_v58  ;;  %v1527_v9 = vand.u32 2147483647, %v1015_v59  ;;  %2036 = vst [vmem:[%s2617_s21 + $0xa60] sm:$0xff] %v1524_v63  ;;  %v1021_v16 = vsub.f32 %v508_v6, %v2599_v1  ;;  %v510_v18 = vld [vmem:[%s2592_s6 + $0xab8] sm:$0xff]  ;;  %v1022_v21 = vsub.f32 %v509_v17, %v2599_v1 }
 0x11d   : > { %v1528_v11 = vand.u32 2147483647, %v1016_v0  ;;  %v1529_v12 = vand.u32 2147483647, %v1017_v2  ;;  %v1530_v13 = vand.u32 2147483647, %v1018_v3  ;;  %v1023_v22 = vsub.f32 %v510_v18, %v2599_v1 }
 0x11e   : > { %2037 = vst [vmem:[%s2617_s21 + $0xa68] sm:$0xff] %v1525_v7  ;;  %2038 = vst [vmem:[%s2617_s21 + $0xa70] sm:$0xff] %v1526_v8  ;;  %v1531_v15 = vand.u32 2147483647, %v1019_v10  ;;  %v511_v19 = vld [vmem:[%s2592_s6 + $0xac0] sm:$0xff]  ;;  %v512_v24 = vld [vmem:[%s2592_s6 + $0xac8] sm:$0xff] }
 0x11f   : > { %2039 = vst [vmem:[%s2617_s21 + $0xa78] sm:$0xff] %v1527_v9  ;;  %2040 = vst [vmem:[%s2617_s21 + $0xa80] sm:$0xff] %v1528_v11  ;;  %v1532_v20 = vand.u32 2147483647, %v1020_v14  ;;  %v1024_v23 = vsub.f32 %v511_v19, %v2599_v1  ;;  %v513_v25 = vld [vmem:[%s2592_s6 + $0xad0] sm:$0xff]  ;;  %v514_v26 = vld [vmem:[%s2592_s6 + $0xad8] sm:$0xff]  ;;  %v1025_v28 = vsub.f32 %v512_v24, %v2599_v1 }
 0x120   : > { %2041 = vst [vmem:[%s2617_s21 + $0xa88] sm:$0xff] %v1529_v12  ;;  %2042 = vst [vmem:[%s2617_s21 + $0xa90] sm:$0xff] %v1530_v13  ;;  %v1533_v27 = vand.u32 2147483647, %v1021_v16  ;;  %v1026_v29 = vsub.f32 %v513_v25, %v2599_v1  ;;  %v1027_v30 = vsub.f32 %v514_v26, %v2599_v1  ;;  %v515_v31 = vld [vmem:[%s2592_s6 + $0xae0] sm:$0xff]  ;;  %v516_v32 = vld [vmem:[%s2592_s6 + $0xae8] sm:$0xff] }
 0x121   : > { %2043 = vst [vmem:[%s2617_s21 + $0xa98] sm:$0xff] %v1531_v15  ;;  %v517_v33 = vld [vmem:[%s2592_s6 + $0xaf0] sm:$0xff]  ;;  %2044 = vst [vmem:[%s2617_s21 + $0xaa0] sm:$0xff] %v1532_v20  ;;  %v1534_v34 = vand.u32 2147483647, %v1022_v21  ;;  %v1028_v37 = vsub.f32 %v515_v31, %v2599_v1  ;;  %v1029_v41 = vsub.f32 %v516_v32, %v2599_v1  ;;  %v518_v44 = vld [vmem:[%s2592_s6 + $0xaf8] sm:$0xff] }
 0x122   : > { %v1535_v35 = vand.u32 2147483647, %v1023_v22  ;;  %v1536_v36 = vand.u32 2147483647, %v1024_v23  ;;  %2045 = vst [vmem:[%s2617_s21 + $0xaa8] sm:$0xff] %v1533_v27  ;;  %v1030_v43 = vsub.f32 %v517_v33, %v2599_v1  ;;  %v519_v45 = vld [vmem:[%s2592_s6 + $0xb00] sm:$0xff]  ;;  %v1031_v48 = vsub.f32 %v518_v44, %v2599_v1 }
 0x123   : > { %v1537_v38 = vand.u32 2147483647, %v1025_v28  ;;  %v1538_v39 = vand.u32 2147483647, %v1026_v29  ;;  %v1539_v40 = vand.u32 2147483647, %v1027_v30  ;;  %v1032_v49 = vsub.f32 %v519_v45, %v2599_v1 }
 0x124   : > { %2046 = vst [vmem:[%s2617_s21 + $0xab0] sm:$0xff] %v1534_v34  ;;  %2047 = vst [vmem:[%s2617_s21 + $0xab8] sm:$0xff] %v1535_v35  ;;  %v1540_v42 = vand.u32 2147483647, %v1028_v37  ;;  %v520_v46 = vld [vmem:[%s2592_s6 + $0xb08] sm:$0xff]  ;;  %v521_v51 = vld [vmem:[%s2592_s6 + $0xb10] sm:$0xff] }
 0x125   : > { %2048 = vst [vmem:[%s2617_s21 + $0xac0] sm:$0xff] %v1536_v36  ;;  %2049 = vst [vmem:[%s2617_s21 + $0xac8] sm:$0xff] %v1537_v38  ;;  %v1541_v47 = vand.u32 2147483647, %v1029_v41  ;;  %v1033_v50 = vsub.f32 %v520_v46, %v2599_v1  ;;  %v522_v52 = vld [vmem:[%s2592_s6 + $0xb18] sm:$0xff]  ;;  %v523_v53 = vld [vmem:[%s2592_s6 + $0xb20] sm:$0xff]  ;;  %v1034_v55 = vsub.f32 %v521_v51, %v2599_v1 }
 0x126   : > { %2050 = vst [vmem:[%s2617_s21 + $0xad0] sm:$0xff] %v1538_v39  ;;  %2051 = vst [vmem:[%s2617_s21 + $0xad8] sm:$0xff] %v1539_v40  ;;  %v1542_v54 = vand.u32 2147483647, %v1030_v43  ;;  %v1035_v56 = vsub.f32 %v522_v52, %v2599_v1  ;;  %v1036_v57 = vsub.f32 %v523_v53, %v2599_v1  ;;  %v524_v58 = vld [vmem:[%s2592_s6 + $0xb28] sm:$0xff]  ;;  %v525_v59 = vld [vmem:[%s2592_s6 + $0xb30] sm:$0xff] }
 0x127   : > { %2052 = vst [vmem:[%s2617_s21 + $0xae0] sm:$0xff] %v1540_v42  ;;  %v526_v60 = vld [vmem:[%s2592_s6 + $0xb38] sm:$0xff]  ;;  %2053 = vst [vmem:[%s2617_s21 + $0xae8] sm:$0xff] %v1541_v47  ;;  %v1543_v61 = vand.u32 2147483647, %v1031_v48  ;;  %v1037_v0 = vsub.f32 %v524_v58, %v2599_v1  ;;  %v1038_v5 = vsub.f32 %v525_v59, %v2599_v1  ;;  %v527_v8 = vld [vmem:[%s2592_s6 + $0xb40] sm:$0xff] }
 0x128   : > { %v1544_v62 = vand.u32 2147483647, %v1032_v49  ;;  %v1545_v63 = vand.u32 2147483647, %v1033_v50  ;;  %2054 = vst [vmem:[%s2617_s21 + $0xaf0] sm:$0xff] %v1542_v54  ;;  %v1039_v7 = vsub.f32 %v526_v60, %v2599_v1  ;;  %v528_v9 = vld [vmem:[%s2592_s6 + $0xb48] sm:$0xff]  ;;  %v1040_v12 = vsub.f32 %v527_v8, %v2599_v1 }
 0x129   : > { %v1546_v2 = vand.u32 2147483647, %v1034_v55  ;;  %v1547_v3 = vand.u32 2147483647, %v1035_v56  ;;  %v1548_v4 = vand.u32 2147483647, %v1036_v57  ;;  %v1041_v13 = vsub.f32 %v528_v9, %v2599_v1 }
 0x12a   : > { %2055 = vst [vmem:[%s2617_s21 + $0xaf8] sm:$0xff] %v1543_v61  ;;  %2056 = vst [vmem:[%s2617_s21 + $0xb00] sm:$0xff] %v1544_v62  ;;  %v1549_v6 = vand.u32 2147483647, %v1037_v0  ;;  %v529_v10 = vld [vmem:[%s2592_s6 + $0xb50] sm:$0xff]  ;;  %v530_v15 = vld [vmem:[%s2592_s6 + $0xb58] sm:$0xff] }
 0x12b   : > { %2057 = vst [vmem:[%s2617_s21 + $0xb08] sm:$0xff] %v1545_v63  ;;  %2058 = vst [vmem:[%s2617_s21 + $0xb10] sm:$0xff] %v1546_v2  ;;  %v1550_v11 = vand.u32 2147483647, %v1038_v5  ;;  %v1042_v14 = vsub.f32 %v529_v10, %v2599_v1  ;;  %v531_v16 = vld [vmem:[%s2592_s6 + $0xb60] sm:$0xff]  ;;  %v532_v17 = vld [vmem:[%s2592_s6 + $0xb68] sm:$0xff]  ;;  %v1043_v19 = vsub.f32 %v530_v15, %v2599_v1 }
 0x12c   : > { %2059 = vst [vmem:[%s2617_s21 + $0xb18] sm:$0xff] %v1547_v3  ;;  %2060 = vst [vmem:[%s2617_s21 + $0xb20] sm:$0xff] %v1548_v4  ;;  %v1551_v18 = vand.u32 2147483647, %v1039_v7  ;;  %v1044_v20 = vsub.f32 %v531_v16, %v2599_v1  ;;  %v1045_v21 = vsub.f32 %v532_v17, %v2599_v1  ;;  %v533_v22 = vld [vmem:[%s2592_s6 + $0xb70] sm:$0xff]  ;;  %v534_v23 = vld [vmem:[%s2592_s6 + $0xb78] sm:$0xff] }
 0x12d   : > { %2061 = vst [vmem:[%s2617_s21 + $0xb28] sm:$0xff] %v1549_v6  ;;  %v535_v24 = vld [vmem:[%s2592_s6 + $0xb80] sm:$0xff]  ;;  %2062 = vst [vmem:[%s2617_s21 + $0xb30] sm:$0xff] %v1550_v11  ;;  %v1552_v25 = vand.u32 2147483647, %v1040_v12  ;;  %v1046_v28 = vsub.f32 %v533_v22, %v2599_v1  ;;  %v1047_v32 = vsub.f32 %v534_v23, %v2599_v1  ;;  %v536_v35 = vld [vmem:[%s2592_s6 + $0xb88] sm:$0xff] }
 0x12e   : > { %v1553_v26 = vand.u32 2147483647, %v1041_v13  ;;  %v1554_v27 = vand.u32 2147483647, %v1042_v14  ;;  %2063 = vst [vmem:[%s2617_s21 + $0xb38] sm:$0xff] %v1551_v18  ;;  %v1048_v34 = vsub.f32 %v535_v24, %v2599_v1  ;;  %v537_v36 = vld [vmem:[%s2592_s6 + $0xb90] sm:$0xff]  ;;  %v1049_v39 = vsub.f32 %v536_v35, %v2599_v1 }
 0x12f   : > { %v1555_v29 = vand.u32 2147483647, %v1043_v19  ;;  %v1556_v30 = vand.u32 2147483647, %v1044_v20  ;;  %v1557_v31 = vand.u32 2147483647, %v1045_v21  ;;  %v1050_v40 = vsub.f32 %v537_v36, %v2599_v1 }
 0x130   : > { %2064 = vst [vmem:[%s2617_s21 + $0xb40] sm:$0xff] %v1552_v25  ;;  %2065 = vst [vmem:[%s2617_s21 + $0xb48] sm:$0xff] %v1553_v26  ;;  %v1558_v33 = vand.u32 2147483647, %v1046_v28  ;;  %v538_v37 = vld [vmem:[%s2592_s6 + $0xb98] sm:$0xff]  ;;  %v539_v42 = vld [vmem:[%s2592_s6 + $0xba0] sm:$0xff] }
 0x131   : > { %2066 = vst [vmem:[%s2617_s21 + $0xb50] sm:$0xff] %v1554_v27  ;;  %2067 = vst [vmem:[%s2617_s21 + $0xb58] sm:$0xff] %v1555_v29  ;;  %v1559_v38 = vand.u32 2147483647, %v1047_v32  ;;  %v1051_v41 = vsub.f32 %v538_v37, %v2599_v1  ;;  %v540_v43 = vld [vmem:[%s2592_s6 + $0xba8] sm:$0xff]  ;;  %v541_v44 = vld [vmem:[%s2592_s6 + $0xbb0] sm:$0xff]  ;;  %v1052_v46 = vsub.f32 %v539_v42, %v2599_v1 }
 0x132   : > { %2068 = vst [vmem:[%s2617_s21 + $0xb60] sm:$0xff] %v1556_v30  ;;  %2069 = vst [vmem:[%s2617_s21 + $0xb68] sm:$0xff] %v1557_v31  ;;  %v1560_v45 = vand.u32 2147483647, %v1048_v34  ;;  %v1053_v47 = vsub.f32 %v540_v43, %v2599_v1  ;;  %v1054_v48 = vsub.f32 %v541_v44, %v2599_v1  ;;  %v542_v49 = vld [vmem:[%s2592_s6 + $0xbb8] sm:$0xff]  ;;  %v543_v50 = vld [vmem:[%s2592_s6 + $0xbc0] sm:$0xff] }
 0x133   : > { %2070 = vst [vmem:[%s2617_s21 + $0xb70] sm:$0xff] %v1558_v33  ;;  %v544_v51 = vld [vmem:[%s2592_s6 + $0xbc8] sm:$0xff]  ;;  %2071 = vst [vmem:[%s2617_s21 + $0xb78] sm:$0xff] %v1559_v38  ;;  %v1561_v52 = vand.u32 2147483647, %v1049_v39  ;;  %v1055_v55 = vsub.f32 %v542_v49, %v2599_v1  ;;  %v1056_v59 = vsub.f32 %v543_v50, %v2599_v1  ;;  %v545_v62 = vld [vmem:[%s2592_s6 + $0xbd0] sm:$0xff] }
 0x134   : > { %v1562_v53 = vand.u32 2147483647, %v1050_v40  ;;  %v1563_v54 = vand.u32 2147483647, %v1051_v41  ;;  %2072 = vst [vmem:[%s2617_s21 + $0xb80] sm:$0xff] %v1560_v45  ;;  %v1057_v61 = vsub.f32 %v544_v51, %v2599_v1  ;;  %v546_v63 = vld [vmem:[%s2592_s6 + $0xbd8] sm:$0xff]  ;;  %v1058_v3 = vsub.f32 %v545_v62, %v2599_v1 }
 0x135   : > { %v1564_v56 = vand.u32 2147483647, %v1052_v46  ;;  %v1565_v57 = vand.u32 2147483647, %v1053_v47  ;;  %v1566_v58 = vand.u32 2147483647, %v1054_v48  ;;  %v1059_v4 = vsub.f32 %v546_v63, %v2599_v1 }
 0x136   : > { %2073 = vst [vmem:[%s2617_s21 + $0xb88] sm:$0xff] %v1561_v52  ;;  %2074 = vst [vmem:[%s2617_s21 + $0xb90] sm:$0xff] %v1562_v53  ;;  %v1567_v60 = vand.u32 2147483647, %v1055_v55  ;;  %v547_v0 = vld [vmem:[%s2592_s6 + $0xbe0] sm:$0xff]  ;;  %v548_v6 = vld [vmem:[%s2592_s6 + $0xbe8] sm:$0xff] }
 0x137   : > { %2075 = vst [vmem:[%s2617_s21 + $0xb98] sm:$0xff] %v1563_v54  ;;  %2076 = vst [vmem:[%s2617_s21 + $0xba0] sm:$0xff] %v1564_v56  ;;  %v1568_v2 = vand.u32 2147483647, %v1056_v59  ;;  %v1060_v5 = vsub.f32 %v547_v0, %v2599_v1  ;;  %v549_v7 = vld [vmem:[%s2592_s6 + $0xbf0] sm:$0xff]  ;;  %v550_v8 = vld [vmem:[%s2592_s6 + $0xbf8] sm:$0xff]  ;;  %v1061_v10 = vsub.f32 %v548_v6, %v2599_v1 }
 0x138   : > { %2077 = vst [vmem:[%s2617_s21 + $0xba8] sm:$0xff] %v1565_v57  ;;  %2078 = vst [vmem:[%s2617_s21 + $0xbb0] sm:$0xff] %v1566_v58  ;;  %v1569_v9 = vand.u32 2147483647, %v1057_v61  ;;  %v1062_v11 = vsub.f32 %v549_v7, %v2599_v1  ;;  %v1063_v12 = vsub.f32 %v550_v8, %v2599_v1  ;;  %v551_v13 = vld [vmem:[%s2592_s6 + $0xc00] sm:$0xff]  ;;  %v552_v14 = vld [vmem:[%s2592_s6 + $0xc08] sm:$0xff] }
 0x139   : > { %2079 = vst [vmem:[%s2617_s21 + $0xbb8] sm:$0xff] %v1567_v60  ;;  %v553_v15 = vld [vmem:[%s2592_s6 + $0xc10] sm:$0xff]  ;;  %2080 = vst [vmem:[%s2617_s21 + $0xbc0] sm:$0xff] %v1568_v2  ;;  %v1570_v16 = vand.u32 2147483647, %v1058_v3  ;;  %v1064_v19 = vsub.f32 %v551_v13, %v2599_v1  ;;  %v1065_v23 = vsub.f32 %v552_v14, %v2599_v1  ;;  %v554_v26 = vld [vmem:[%s2592_s6 + $0xc18] sm:$0xff] }
 0x13a   : > { %v1571_v17 = vand.u32 2147483647, %v1059_v4  ;;  %v1572_v18 = vand.u32 2147483647, %v1060_v5  ;;  %2081 = vst [vmem:[%s2617_s21 + $0xbc8] sm:$0xff] %v1569_v9  ;;  %v1066_v25 = vsub.f32 %v553_v15, %v2599_v1  ;;  %v555_v27 = vld [vmem:[%s2592_s6 + $0xc20] sm:$0xff]  ;;  %v1067_v30 = vsub.f32 %v554_v26, %v2599_v1 }
 0x13b   : > { %v1573_v20 = vand.u32 2147483647, %v1061_v10  ;;  %v1574_v21 = vand.u32 2147483647, %v1062_v11  ;;  %v1575_v22 = vand.u32 2147483647, %v1063_v12  ;;  %v1068_v31 = vsub.f32 %v555_v27, %v2599_v1 }
 0x13c   : > { %2082 = vst [vmem:[%s2617_s21 + $0xbd0] sm:$0xff] %v1570_v16  ;;  %2083 = vst [vmem:[%s2617_s21 + $0xbd8] sm:$0xff] %v1571_v17  ;;  %v1576_v24 = vand.u32 2147483647, %v1064_v19  ;;  %v556_v28 = vld [vmem:[%s2592_s6 + $0xc28] sm:$0xff]  ;;  %v557_v33 = vld [vmem:[%s2592_s6 + $0xc30] sm:$0xff] }
 0x13d   : > { %2084 = vst [vmem:[%s2617_s21 + $0xbe0] sm:$0xff] %v1572_v18  ;;  %2085 = vst [vmem:[%s2617_s21 + $0xbe8] sm:$0xff] %v1573_v20  ;;  %v1577_v29 = vand.u32 2147483647, %v1065_v23  ;;  %v1069_v32 = vsub.f32 %v556_v28, %v2599_v1  ;;  %v558_v34 = vld [vmem:[%s2592_s6 + $0xc38] sm:$0xff]  ;;  %v559_v35 = vld [vmem:[%s2592_s6 + $0xc40] sm:$0xff]  ;;  %v1070_v37 = vsub.f32 %v557_v33, %v2599_v1 }
 0x13e   : > { %2086 = vst [vmem:[%s2617_s21 + $0xbf0] sm:$0xff] %v1574_v21  ;;  %2087 = vst [vmem:[%s2617_s21 + $0xbf8] sm:$0xff] %v1575_v22  ;;  %v1578_v36 = vand.u32 2147483647, %v1066_v25  ;;  %v1071_v38 = vsub.f32 %v558_v34, %v2599_v1  ;;  %v1072_v39 = vsub.f32 %v559_v35, %v2599_v1  ;;  %v560_v40 = vld [vmem:[%s2592_s6 + $0xc48] sm:$0xff]  ;;  %v561_v41 = vld [vmem:[%s2592_s6 + $0xc50] sm:$0xff] }
 0x13f   : > { %2088 = vst [vmem:[%s2617_s21 + $0xc00] sm:$0xff] %v1576_v24  ;;  %v562_v42 = vld [vmem:[%s2592_s6 + $0xc58] sm:$0xff]  ;;  %2089 = vst [vmem:[%s2617_s21 + $0xc08] sm:$0xff] %v1577_v29  ;;  %v1579_v43 = vand.u32 2147483647, %v1067_v30  ;;  %v1073_v46 = vsub.f32 %v560_v40, %v2599_v1  ;;  %v1074_v50 = vsub.f32 %v561_v41, %v2599_v1  ;;  %v563_v53 = vld [vmem:[%s2592_s6 + $0xc60] sm:$0xff] }
 0x140   : > { %v1580_v44 = vand.u32 2147483647, %v1068_v31  ;;  %v1581_v45 = vand.u32 2147483647, %v1069_v32  ;;  %2090 = vst [vmem:[%s2617_s21 + $0xc10] sm:$0xff] %v1578_v36  ;;  %v1075_v52 = vsub.f32 %v562_v42, %v2599_v1  ;;  %v564_v54 = vld [vmem:[%s2592_s6 + $0xc68] sm:$0xff]  ;;  %v1076_v57 = vsub.f32 %v563_v53, %v2599_v1 }
 0x141   : > { %v1582_v47 = vand.u32 2147483647, %v1070_v37  ;;  %v1583_v48 = vand.u32 2147483647, %v1071_v38  ;;  %v1584_v49 = vand.u32 2147483647, %v1072_v39  ;;  %v1077_v58 = vsub.f32 %v564_v54, %v2599_v1 }
 0x142   : > { %2091 = vst [vmem:[%s2617_s21 + $0xc18] sm:$0xff] %v1579_v43  ;;  %2092 = vst [vmem:[%s2617_s21 + $0xc20] sm:$0xff] %v1580_v44  ;;  %v1585_v51 = vand.u32 2147483647, %v1073_v46  ;;  %v565_v55 = vld [vmem:[%s2592_s6 + $0xc70] sm:$0xff]  ;;  %v566_v60 = vld [vmem:[%s2592_s6 + $0xc78] sm:$0xff] }
 0x143   : > { %2093 = vst [vmem:[%s2617_s21 + $0xc28] sm:$0xff] %v1581_v45  ;;  %2094 = vst [vmem:[%s2617_s21 + $0xc30] sm:$0xff] %v1582_v47  ;;  %v1586_v56 = vand.u32 2147483647, %v1074_v50  ;;  %v1078_v59 = vsub.f32 %v565_v55, %v2599_v1  ;;  %v567_v61 = vld [vmem:[%s2592_s6 + $0xc80] sm:$0xff]  ;;  %v568_v62 = vld [vmem:[%s2592_s6 + $0xc88] sm:$0xff]  ;;  %v1079_v0 = vsub.f32 %v566_v60, %v2599_v1 }
 0x144   : > { %2095 = vst [vmem:[%s2617_s21 + $0xc38] sm:$0xff] %v1583_v48  ;;  %2096 = vst [vmem:[%s2617_s21 + $0xc40] sm:$0xff] %v1584_v49  ;;  %v1587_v63 = vand.u32 2147483647, %v1075_v52  ;;  %v1080_v2 = vsub.f32 %v567_v61, %v2599_v1  ;;  %v1081_v3 = vsub.f32 %v568_v62, %v2599_v1  ;;  %v569_v4 = vld [vmem:[%s2592_s6 + $0xc90] sm:$0xff]  ;;  %v570_v5 = vld [vmem:[%s2592_s6 + $0xc98] sm:$0xff] }
 0x145   : > { %2097 = vst [vmem:[%s2617_s21 + $0xc48] sm:$0xff] %v1585_v51  ;;  %v571_v6 = vld [vmem:[%s2592_s6 + $0xca0] sm:$0xff]  ;;  %2098 = vst [vmem:[%s2617_s21 + $0xc50] sm:$0xff] %v1586_v56  ;;  %v1588_v7 = vand.u32 2147483647, %v1076_v57  ;;  %v1082_v10 = vsub.f32 %v569_v4, %v2599_v1  ;;  %v1083_v14 = vsub.f32 %v570_v5, %v2599_v1  ;;  %v572_v17 = vld [vmem:[%s2592_s6 + $0xca8] sm:$0xff] }
 0x146   : > { %v1589_v8 = vand.u32 2147483647, %v1077_v58  ;;  %v1590_v9 = vand.u32 2147483647, %v1078_v59  ;;  %2099 = vst [vmem:[%s2617_s21 + $0xc58] sm:$0xff] %v1587_v63  ;;  %v1084_v16 = vsub.f32 %v571_v6, %v2599_v1  ;;  %v573_v18 = vld [vmem:[%s2592_s6 + $0xcb0] sm:$0xff]  ;;  %v1085_v21 = vsub.f32 %v572_v17, %v2599_v1 }
 0x147   : > { %v1591_v11 = vand.u32 2147483647, %v1079_v0  ;;  %v1592_v12 = vand.u32 2147483647, %v1080_v2  ;;  %v1593_v13 = vand.u32 2147483647, %v1081_v3  ;;  %v1086_v22 = vsub.f32 %v573_v18, %v2599_v1 }
 0x148   : > { %2100 = vst [vmem:[%s2617_s21 + $0xc60] sm:$0xff] %v1588_v7  ;;  %2101 = vst [vmem:[%s2617_s21 + $0xc68] sm:$0xff] %v1589_v8  ;;  %v1594_v15 = vand.u32 2147483647, %v1082_v10  ;;  %v574_v19 = vld [vmem:[%s2592_s6 + $0xcb8] sm:$0xff]  ;;  %v575_v24 = vld [vmem:[%s2592_s6 + $0xcc0] sm:$0xff] }
 0x149   : > { %2102 = vst [vmem:[%s2617_s21 + $0xc70] sm:$0xff] %v1590_v9  ;;  %2103 = vst [vmem:[%s2617_s21 + $0xc78] sm:$0xff] %v1591_v11  ;;  %v1595_v20 = vand.u32 2147483647, %v1083_v14  ;;  %v1087_v23 = vsub.f32 %v574_v19, %v2599_v1  ;;  %v576_v25 = vld [vmem:[%s2592_s6 + $0xcc8] sm:$0xff]  ;;  %v577_v26 = vld [vmem:[%s2592_s6 + $0xcd0] sm:$0xff]  ;;  %v1088_v28 = vsub.f32 %v575_v24, %v2599_v1 }
 0x14a   : > { %2104 = vst [vmem:[%s2617_s21 + $0xc80] sm:$0xff] %v1592_v12  ;;  %2105 = vst [vmem:[%s2617_s21 + $0xc88] sm:$0xff] %v1593_v13  ;;  %v1596_v27 = vand.u32 2147483647, %v1084_v16  ;;  %v1089_v29 = vsub.f32 %v576_v25, %v2599_v1  ;;  %v1090_v30 = vsub.f32 %v577_v26, %v2599_v1  ;;  %v578_v31 = vld [vmem:[%s2592_s6 + $0xcd8] sm:$0xff]  ;;  %v579_v32 = vld [vmem:[%s2592_s6 + $0xce0] sm:$0xff] }
 0x14b   : > { %2106 = vst [vmem:[%s2617_s21 + $0xc90] sm:$0xff] %v1594_v15  ;;  %v580_v33 = vld [vmem:[%s2592_s6 + $0xce8] sm:$0xff]  ;;  %2107 = vst [vmem:[%s2617_s21 + $0xc98] sm:$0xff] %v1595_v20  ;;  %v1597_v34 = vand.u32 2147483647, %v1085_v21  ;;  %v1091_v37 = vsub.f32 %v578_v31, %v2599_v1  ;;  %v1092_v41 = vsub.f32 %v579_v32, %v2599_v1  ;;  %v581_v44 = vld [vmem:[%s2592_s6 + $0xcf0] sm:$0xff] }
 0x14c   : > { %v1598_v35 = vand.u32 2147483647, %v1086_v22  ;;  %v1599_v36 = vand.u32 2147483647, %v1087_v23  ;;  %2108 = vst [vmem:[%s2617_s21 + $0xca0] sm:$0xff] %v1596_v27  ;;  %v1093_v43 = vsub.f32 %v580_v33, %v2599_v1  ;;  %v582_v45 = vld [vmem:[%s2592_s6 + $0xcf8] sm:$0xff]  ;;  %v1094_v48 = vsub.f32 %v581_v44, %v2599_v1 }
 0x14d   : > { %v1600_v38 = vand.u32 2147483647, %v1088_v28  ;;  %v1601_v39 = vand.u32 2147483647, %v1089_v29  ;;  %v1602_v40 = vand.u32 2147483647, %v1090_v30  ;;  %v1095_v49 = vsub.f32 %v582_v45, %v2599_v1 }
 0x14e   : > { %2109 = vst [vmem:[%s2617_s21 + $0xca8] sm:$0xff] %v1597_v34  ;;  %2110 = vst [vmem:[%s2617_s21 + $0xcb0] sm:$0xff] %v1598_v35  ;;  %v1603_v42 = vand.u32 2147483647, %v1091_v37  ;;  %v583_v46 = vld [vmem:[%s2592_s6 + $0xd00] sm:$0xff]  ;;  %v584_v51 = vld [vmem:[%s2592_s6 + $0xd08] sm:$0xff] }
 0x14f   : > { %2111 = vst [vmem:[%s2617_s21 + $0xcb8] sm:$0xff] %v1599_v36  ;;  %2112 = vst [vmem:[%s2617_s21 + $0xcc0] sm:$0xff] %v1600_v38  ;;  %v1604_v47 = vand.u32 2147483647, %v1092_v41  ;;  %v1096_v50 = vsub.f32 %v583_v46, %v2599_v1  ;;  %v585_v52 = vld [vmem:[%s2592_s6 + $0xd10] sm:$0xff]  ;;  %v586_v53 = vld [vmem:[%s2592_s6 + $0xd18] sm:$0xff]  ;;  %v1097_v55 = vsub.f32 %v584_v51, %v2599_v1 }
 0x150   : > { %2113 = vst [vmem:[%s2617_s21 + $0xcc8] sm:$0xff] %v1601_v39  ;;  %2114 = vst [vmem:[%s2617_s21 + $0xcd0] sm:$0xff] %v1602_v40  ;;  %v1605_v54 = vand.u32 2147483647, %v1093_v43  ;;  %v1098_v56 = vsub.f32 %v585_v52, %v2599_v1  ;;  %v1099_v57 = vsub.f32 %v586_v53, %v2599_v1  ;;  %v587_v58 = vld [vmem:[%s2592_s6 + $0xd20] sm:$0xff]  ;;  %v588_v59 = vld [vmem:[%s2592_s6 + $0xd28] sm:$0xff] }
 0x151   : > { %2115 = vst [vmem:[%s2617_s21 + $0xcd8] sm:$0xff] %v1603_v42  ;;  %v589_v60 = vld [vmem:[%s2592_s6 + $0xd30] sm:$0xff]  ;;  %2116 = vst [vmem:[%s2617_s21 + $0xce0] sm:$0xff] %v1604_v47  ;;  %v1606_v61 = vand.u32 2147483647, %v1094_v48  ;;  %v1100_v0 = vsub.f32 %v587_v58, %v2599_v1  ;;  %v1101_v5 = vsub.f32 %v588_v59, %v2599_v1  ;;  %v590_v8 = vld [vmem:[%s2592_s6 + $0xd38] sm:$0xff] }
 0x152   : > { %v1607_v62 = vand.u32 2147483647, %v1095_v49  ;;  %v1608_v63 = vand.u32 2147483647, %v1096_v50  ;;  %2117 = vst [vmem:[%s2617_s21 + $0xce8] sm:$0xff] %v1605_v54  ;;  %v1102_v7 = vsub.f32 %v589_v60, %v2599_v1  ;;  %v591_v9 = vld [vmem:[%s2592_s6 + $0xd40] sm:$0xff]  ;;  %v1103_v12 = vsub.f32 %v590_v8, %v2599_v1 }
 0x153   : > { %v1609_v2 = vand.u32 2147483647, %v1097_v55  ;;  %v1610_v3 = vand.u32 2147483647, %v1098_v56  ;;  %v1611_v4 = vand.u32 2147483647, %v1099_v57  ;;  %v1104_v13 = vsub.f32 %v591_v9, %v2599_v1 }
 0x154   : > { %2118 = vst [vmem:[%s2617_s21 + $0xcf0] sm:$0xff] %v1606_v61  ;;  %2119 = vst [vmem:[%s2617_s21 + $0xcf8] sm:$0xff] %v1607_v62  ;;  %v1612_v6 = vand.u32 2147483647, %v1100_v0  ;;  %v592_v10 = vld [vmem:[%s2592_s6 + $0xd48] sm:$0xff]  ;;  %v593_v15 = vld [vmem:[%s2592_s6 + $0xd50] sm:$0xff] }
 0x155   : > { %2120 = vst [vmem:[%s2617_s21 + $0xd00] sm:$0xff] %v1608_v63  ;;  %2121 = vst [vmem:[%s2617_s21 + $0xd08] sm:$0xff] %v1609_v2  ;;  %v1613_v11 = vand.u32 2147483647, %v1101_v5  ;;  %v1105_v14 = vsub.f32 %v592_v10, %v2599_v1  ;;  %v594_v16 = vld [vmem:[%s2592_s6 + $0xd58] sm:$0xff]  ;;  %v595_v17 = vld [vmem:[%s2592_s6 + $0xd60] sm:$0xff]  ;;  %v1106_v19 = vsub.f32 %v593_v15, %v2599_v1 }
 0x156   : > { %2122 = vst [vmem:[%s2617_s21 + $0xd10] sm:$0xff] %v1610_v3  ;;  %2123 = vst [vmem:[%s2617_s21 + $0xd18] sm:$0xff] %v1611_v4  ;;  %v1614_v18 = vand.u32 2147483647, %v1102_v7  ;;  %v1107_v20 = vsub.f32 %v594_v16, %v2599_v1  ;;  %v1108_v21 = vsub.f32 %v595_v17, %v2599_v1  ;;  %v596_v22 = vld [vmem:[%s2592_s6 + $0xd68] sm:$0xff]  ;;  %v597_v23 = vld [vmem:[%s2592_s6 + $0xd70] sm:$0xff] }
 0x157   : > { %2124 = vst [vmem:[%s2617_s21 + $0xd20] sm:$0xff] %v1612_v6  ;;  %v598_v24 = vld [vmem:[%s2592_s6 + $0xd78] sm:$0xff]  ;;  %2125 = vst [vmem:[%s2617_s21 + $0xd28] sm:$0xff] %v1613_v11  ;;  %v1615_v25 = vand.u32 2147483647, %v1103_v12  ;;  %v1109_v28 = vsub.f32 %v596_v22, %v2599_v1  ;;  %v1110_v32 = vsub.f32 %v597_v23, %v2599_v1  ;;  %v599_v35 = vld [vmem:[%s2592_s6 + $0xd80] sm:$0xff] }
 0x158   : > { %v1616_v26 = vand.u32 2147483647, %v1104_v13  ;;  %v1617_v27 = vand.u32 2147483647, %v1105_v14  ;;  %2126 = vst [vmem:[%s2617_s21 + $0xd30] sm:$0xff] %v1614_v18  ;;  %v1111_v34 = vsub.f32 %v598_v24, %v2599_v1  ;;  %v600_v36 = vld [vmem:[%s2592_s6 + $0xd88] sm:$0xff]  ;;  %v1112_v39 = vsub.f32 %v599_v35, %v2599_v1 }
 0x159   : > { %v1618_v29 = vand.u32 2147483647, %v1106_v19  ;;  %v1619_v30 = vand.u32 2147483647, %v1107_v20  ;;  %v1620_v31 = vand.u32 2147483647, %v1108_v21  ;;  %v1113_v40 = vsub.f32 %v600_v36, %v2599_v1 }
 0x15a   : > { %2127 = vst [vmem:[%s2617_s21 + $0xd38] sm:$0xff] %v1615_v25  ;;  %2128 = vst [vmem:[%s2617_s21 + $0xd40] sm:$0xff] %v1616_v26  ;;  %v1621_v33 = vand.u32 2147483647, %v1109_v28  ;;  %v601_v37 = vld [vmem:[%s2592_s6 + $0xd90] sm:$0xff]  ;;  %v602_v42 = vld [vmem:[%s2592_s6 + $0xd98] sm:$0xff] }
 0x15b   : > { %2129 = vst [vmem:[%s2617_s21 + $0xd48] sm:$0xff] %v1617_v27  ;;  %2130 = vst [vmem:[%s2617_s21 + $0xd50] sm:$0xff] %v1618_v29  ;;  %v1622_v38 = vand.u32 2147483647, %v1110_v32  ;;  %v1114_v41 = vsub.f32 %v601_v37, %v2599_v1  ;;  %v603_v43 = vld [vmem:[%s2592_s6 + $0xda0] sm:$0xff]  ;;  %v604_v44 = vld [vmem:[%s2592_s6 + $0xda8] sm:$0xff]  ;;  %v1115_v46 = vsub.f32 %v602_v42, %v2599_v1 }
 0x15c   : > { %2131 = vst [vmem:[%s2617_s21 + $0xd58] sm:$0xff] %v1619_v30  ;;  %2132 = vst [vmem:[%s2617_s21 + $0xd60] sm:$0xff] %v1620_v31  ;;  %v1623_v45 = vand.u32 2147483647, %v1111_v34  ;;  %v1116_v47 = vsub.f32 %v603_v43, %v2599_v1  ;;  %v1117_v48 = vsub.f32 %v604_v44, %v2599_v1  ;;  %v605_v49 = vld [vmem:[%s2592_s6 + $0xdb0] sm:$0xff]  ;;  %v606_v50 = vld [vmem:[%s2592_s6 + $0xdb8] sm:$0xff] }
 0x15d   : > { %2133 = vst [vmem:[%s2617_s21 + $0xd68] sm:$0xff] %v1621_v33  ;;  %v607_v51 = vld [vmem:[%s2592_s6 + $0xdc0] sm:$0xff]  ;;  %2134 = vst [vmem:[%s2617_s21 + $0xd70] sm:$0xff] %v1622_v38  ;;  %v1624_v52 = vand.u32 2147483647, %v1112_v39  ;;  %v1118_v55 = vsub.f32 %v605_v49, %v2599_v1  ;;  %v1119_v59 = vsub.f32 %v606_v50, %v2599_v1  ;;  %v608_v62 = vld [vmem:[%s2592_s6 + $0xdc8] sm:$0xff] }
 0x15e   : > { %v1625_v53 = vand.u32 2147483647, %v1113_v40  ;;  %v1626_v54 = vand.u32 2147483647, %v1114_v41  ;;  %2135 = vst [vmem:[%s2617_s21 + $0xd78] sm:$0xff] %v1623_v45  ;;  %v1120_v61 = vsub.f32 %v607_v51, %v2599_v1  ;;  %v609_v63 = vld [vmem:[%s2592_s6 + $0xdd0] sm:$0xff]  ;;  %v1121_v3 = vsub.f32 %v608_v62, %v2599_v1 }
 0x15f   : > { %v1627_v56 = vand.u32 2147483647, %v1115_v46  ;;  %v1628_v57 = vand.u32 2147483647, %v1116_v47  ;;  %v1629_v58 = vand.u32 2147483647, %v1117_v48  ;;  %v1122_v4 = vsub.f32 %v609_v63, %v2599_v1 }
 0x160   : > { %2136 = vst [vmem:[%s2617_s21 + $0xd80] sm:$0xff] %v1624_v52  ;;  %2137 = vst [vmem:[%s2617_s21 + $0xd88] sm:$0xff] %v1625_v53  ;;  %v1630_v60 = vand.u32 2147483647, %v1118_v55  ;;  %v610_v0 = vld [vmem:[%s2592_s6 + $0xdd8] sm:$0xff]  ;;  %v611_v6 = vld [vmem:[%s2592_s6 + $0xde0] sm:$0xff] }
 0x161   : > { %2138 = vst [vmem:[%s2617_s21 + $0xd90] sm:$0xff] %v1626_v54  ;;  %2139 = vst [vmem:[%s2617_s21 + $0xd98] sm:$0xff] %v1627_v56  ;;  %v1631_v2 = vand.u32 2147483647, %v1119_v59  ;;  %v1123_v5 = vsub.f32 %v610_v0, %v2599_v1  ;;  %v612_v7 = vld [vmem:[%s2592_s6 + $0xde8] sm:$0xff]  ;;  %v613_v8 = vld [vmem:[%s2592_s6 + $0xdf0] sm:$0xff]  ;;  %v1124_v10 = vsub.f32 %v611_v6, %v2599_v1 }
 0x162   : > { %2140 = vst [vmem:[%s2617_s21 + $0xda0] sm:$0xff] %v1628_v57  ;;  %2141 = vst [vmem:[%s2617_s21 + $0xda8] sm:$0xff] %v1629_v58  ;;  %v1632_v9 = vand.u32 2147483647, %v1120_v61  ;;  %v1125_v11 = vsub.f32 %v612_v7, %v2599_v1  ;;  %v1126_v12 = vsub.f32 %v613_v8, %v2599_v1  ;;  %v614_v13 = vld [vmem:[%s2592_s6 + $0xdf8] sm:$0xff]  ;;  %v615_v14 = vld [vmem:[%s2592_s6 + $0xe00] sm:$0xff] }
 0x163   : > { %2142 = vst [vmem:[%s2617_s21 + $0xdb0] sm:$0xff] %v1630_v60  ;;  %v616_v15 = vld [vmem:[%s2592_s6 + $0xe08] sm:$0xff]  ;;  %2143 = vst [vmem:[%s2617_s21 + $0xdb8] sm:$0xff] %v1631_v2  ;;  %v1633_v16 = vand.u32 2147483647, %v1121_v3  ;;  %v1127_v19 = vsub.f32 %v614_v13, %v2599_v1  ;;  %v1128_v23 = vsub.f32 %v615_v14, %v2599_v1  ;;  %v617_v26 = vld [vmem:[%s2592_s6 + $0xe10] sm:$0xff] }
 0x164   : > { %v1634_v17 = vand.u32 2147483647, %v1122_v4  ;;  %v1635_v18 = vand.u32 2147483647, %v1123_v5  ;;  %2144 = vst [vmem:[%s2617_s21 + $0xdc0] sm:$0xff] %v1632_v9  ;;  %v1129_v25 = vsub.f32 %v616_v15, %v2599_v1  ;;  %v618_v27 = vld [vmem:[%s2592_s6 + $0xe18] sm:$0xff]  ;;  %v1130_v30 = vsub.f32 %v617_v26, %v2599_v1 }
 0x165   : > { %v1636_v20 = vand.u32 2147483647, %v1124_v10  ;;  %v1637_v21 = vand.u32 2147483647, %v1125_v11  ;;  %v1638_v22 = vand.u32 2147483647, %v1126_v12  ;;  %v1131_v31 = vsub.f32 %v618_v27, %v2599_v1 }
 0x166   : > { %2145 = vst [vmem:[%s2617_s21 + $0xdc8] sm:$0xff] %v1633_v16  ;;  %2146 = vst [vmem:[%s2617_s21 + $0xdd0] sm:$0xff] %v1634_v17  ;;  %v1639_v24 = vand.u32 2147483647, %v1127_v19  ;;  %v619_v28 = vld [vmem:[%s2592_s6 + $0xe20] sm:$0xff]  ;;  %v620_v33 = vld [vmem:[%s2592_s6 + $0xe28] sm:$0xff] }
 0x167   : > { %2147 = vst [vmem:[%s2617_s21 + $0xdd8] sm:$0xff] %v1635_v18  ;;  %2148 = vst [vmem:[%s2617_s21 + $0xde0] sm:$0xff] %v1636_v20  ;;  %v1640_v29 = vand.u32 2147483647, %v1128_v23  ;;  %v1132_v32 = vsub.f32 %v619_v28, %v2599_v1  ;;  %v621_v34 = vld [vmem:[%s2592_s6 + $0xe30] sm:$0xff]  ;;  %v622_v35 = vld [vmem:[%s2592_s6 + $0xe38] sm:$0xff]  ;;  %v1133_v37 = vsub.f32 %v620_v33, %v2599_v1 }
 0x168   : > { %2149 = vst [vmem:[%s2617_s21 + $0xde8] sm:$0xff] %v1637_v21  ;;  %2150 = vst [vmem:[%s2617_s21 + $0xdf0] sm:$0xff] %v1638_v22  ;;  %v1641_v36 = vand.u32 2147483647, %v1129_v25  ;;  %v1134_v38 = vsub.f32 %v621_v34, %v2599_v1  ;;  %v1135_v39 = vsub.f32 %v622_v35, %v2599_v1  ;;  %v623_v40 = vld [vmem:[%s2592_s6 + $0xe40] sm:$0xff]  ;;  %v624_v41 = vld [vmem:[%s2592_s6 + $0xe48] sm:$0xff] }
 0x169   : > { %2151 = vst [vmem:[%s2617_s21 + $0xdf8] sm:$0xff] %v1639_v24  ;;  %v625_v42 = vld [vmem:[%s2592_s6 + $0xe50] sm:$0xff]  ;;  %2152 = vst [vmem:[%s2617_s21 + $0xe00] sm:$0xff] %v1640_v29  ;;  %v1642_v43 = vand.u32 2147483647, %v1130_v30  ;;  %v1136_v46 = vsub.f32 %v623_v40, %v2599_v1  ;;  %v1137_v50 = vsub.f32 %v624_v41, %v2599_v1  ;;  %v626_v53 = vld [vmem:[%s2592_s6 + $0xe58] sm:$0xff] }
 0x16a   : > { %v1643_v44 = vand.u32 2147483647, %v1131_v31  ;;  %v1644_v45 = vand.u32 2147483647, %v1132_v32  ;;  %2153 = vst [vmem:[%s2617_s21 + $0xe08] sm:$0xff] %v1641_v36  ;;  %v1138_v52 = vsub.f32 %v625_v42, %v2599_v1  ;;  %v627_v54 = vld [vmem:[%s2592_s6 + $0xe60] sm:$0xff]  ;;  %v1139_v57 = vsub.f32 %v626_v53, %v2599_v1 }
 0x16b   : > { %v1645_v47 = vand.u32 2147483647, %v1133_v37  ;;  %v1646_v48 = vand.u32 2147483647, %v1134_v38  ;;  %v1647_v49 = vand.u32 2147483647, %v1135_v39  ;;  %v1140_v58 = vsub.f32 %v627_v54, %v2599_v1 }
 0x16c   : > { %2154 = vst [vmem:[%s2617_s21 + $0xe10] sm:$0xff] %v1642_v43  ;;  %2155 = vst [vmem:[%s2617_s21 + $0xe18] sm:$0xff] %v1643_v44  ;;  %v1648_v51 = vand.u32 2147483647, %v1136_v46  ;;  %v628_v55 = vld [vmem:[%s2592_s6 + $0xe68] sm:$0xff]  ;;  %v629_v60 = vld [vmem:[%s2592_s6 + $0xe70] sm:$0xff] }
 0x16d   : > { %2156 = vst [vmem:[%s2617_s21 + $0xe20] sm:$0xff] %v1644_v45  ;;  %2157 = vst [vmem:[%s2617_s21 + $0xe28] sm:$0xff] %v1645_v47  ;;  %v1649_v56 = vand.u32 2147483647, %v1137_v50  ;;  %v1141_v59 = vsub.f32 %v628_v55, %v2599_v1  ;;  %v630_v61 = vld [vmem:[%s2592_s6 + $0xe78] sm:$0xff]  ;;  %v631_v62 = vld [vmem:[%s2592_s6 + $0xe80] sm:$0xff]  ;;  %v1142_v0 = vsub.f32 %v629_v60, %v2599_v1 }
 0x16e   : > { %2158 = vst [vmem:[%s2617_s21 + $0xe30] sm:$0xff] %v1646_v48  ;;  %2159 = vst [vmem:[%s2617_s21 + $0xe38] sm:$0xff] %v1647_v49  ;;  %v1650_v63 = vand.u32 2147483647, %v1138_v52  ;;  %v1143_v2 = vsub.f32 %v630_v61, %v2599_v1  ;;  %v1144_v3 = vsub.f32 %v631_v62, %v2599_v1  ;;  %v632_v4 = vld [vmem:[%s2592_s6 + $0xe88] sm:$0xff]  ;;  %v633_v5 = vld [vmem:[%s2592_s6 + $0xe90] sm:$0xff] }
 0x16f   : > { %2160 = vst [vmem:[%s2617_s21 + $0xe40] sm:$0xff] %v1648_v51  ;;  %v634_v6 = vld [vmem:[%s2592_s6 + $0xe98] sm:$0xff]  ;;  %2161 = vst [vmem:[%s2617_s21 + $0xe48] sm:$0xff] %v1649_v56  ;;  %v1651_v7 = vand.u32 2147483647, %v1139_v57  ;;  %v1145_v10 = vsub.f32 %v632_v4, %v2599_v1  ;;  %v1146_v14 = vsub.f32 %v633_v5, %v2599_v1  ;;  %v635_v17 = vld [vmem:[%s2592_s6 + $0xea0] sm:$0xff] }
 0x170   : > { %v1652_v8 = vand.u32 2147483647, %v1140_v58  ;;  %v1653_v9 = vand.u32 2147483647, %v1141_v59  ;;  %2162 = vst [vmem:[%s2617_s21 + $0xe50] sm:$0xff] %v1650_v63  ;;  %v1147_v16 = vsub.f32 %v634_v6, %v2599_v1  ;;  %v636_v18 = vld [vmem:[%s2592_s6 + $0xea8] sm:$0xff]  ;;  %v1148_v21 = vsub.f32 %v635_v17, %v2599_v1 }
 0x171   : > { %v1654_v11 = vand.u32 2147483647, %v1142_v0  ;;  %v1655_v12 = vand.u32 2147483647, %v1143_v2  ;;  %v1656_v13 = vand.u32 2147483647, %v1144_v3  ;;  %v1149_v22 = vsub.f32 %v636_v18, %v2599_v1 }
 0x172   : > { %2163 = vst [vmem:[%s2617_s21 + $0xe58] sm:$0xff] %v1651_v7  ;;  %2164 = vst [vmem:[%s2617_s21 + $0xe60] sm:$0xff] %v1652_v8  ;;  %v1657_v15 = vand.u32 2147483647, %v1145_v10  ;;  %v637_v19 = vld [vmem:[%s2592_s6 + $0xeb0] sm:$0xff]  ;;  %v638_v24 = vld [vmem:[%s2592_s6 + $0xeb8] sm:$0xff] }
 0x173   : > { %2165 = vst [vmem:[%s2617_s21 + $0xe68] sm:$0xff] %v1653_v9  ;;  %2166 = vst [vmem:[%s2617_s21 + $0xe70] sm:$0xff] %v1654_v11  ;;  %v1658_v20 = vand.u32 2147483647, %v1146_v14  ;;  %v1150_v23 = vsub.f32 %v637_v19, %v2599_v1  ;;  %v639_v25 = vld [vmem:[%s2592_s6 + $0xec0] sm:$0xff]  ;;  %v640_v26 = vld [vmem:[%s2592_s6 + $0xec8] sm:$0xff]  ;;  %v1151_v28 = vsub.f32 %v638_v24, %v2599_v1 }
 0x174   : > { %2167 = vst [vmem:[%s2617_s21 + $0xe78] sm:$0xff] %v1655_v12  ;;  %2168 = vst [vmem:[%s2617_s21 + $0xe80] sm:$0xff] %v1656_v13  ;;  %v1659_v27 = vand.u32 2147483647, %v1147_v16  ;;  %v1152_v29 = vsub.f32 %v639_v25, %v2599_v1  ;;  %v1153_v30 = vsub.f32 %v640_v26, %v2599_v1  ;;  %v641_v31 = vld [vmem:[%s2592_s6 + $0xed0] sm:$0xff]  ;;  %v642_v32 = vld [vmem:[%s2592_s6 + $0xed8] sm:$0xff] }
 0x175   : > { %2169 = vst [vmem:[%s2617_s21 + $0xe88] sm:$0xff] %v1657_v15  ;;  %v643_v33 = vld [vmem:[%s2592_s6 + $0xee0] sm:$0xff]  ;;  %2170 = vst [vmem:[%s2617_s21 + $0xe90] sm:$0xff] %v1658_v20  ;;  %v1660_v34 = vand.u32 2147483647, %v1148_v21  ;;  %v1154_v37 = vsub.f32 %v641_v31, %v2599_v1  ;;  %v1155_v41 = vsub.f32 %v642_v32, %v2599_v1  ;;  %v644_v44 = vld [vmem:[%s2592_s6 + $0xee8] sm:$0xff] }
 0x176   : > { %v1661_v35 = vand.u32 2147483647, %v1149_v22  ;;  %v1662_v36 = vand.u32 2147483647, %v1150_v23  ;;  %2171 = vst [vmem:[%s2617_s21 + $0xe98] sm:$0xff] %v1659_v27  ;;  %v1156_v43 = vsub.f32 %v643_v33, %v2599_v1  ;;  %v645_v45 = vld [vmem:[%s2592_s6 + $0xef0] sm:$0xff]  ;;  %v1157_v48 = vsub.f32 %v644_v44, %v2599_v1 }
 0x177   : > { %v1663_v38 = vand.u32 2147483647, %v1151_v28  ;;  %v1664_v39 = vand.u32 2147483647, %v1152_v29  ;;  %v1665_v40 = vand.u32 2147483647, %v1153_v30  ;;  %v1158_v49 = vsub.f32 %v645_v45, %v2599_v1 }
 0x178   : > { %2172 = vst [vmem:[%s2617_s21 + $0xea0] sm:$0xff] %v1660_v34  ;;  %2173 = vst [vmem:[%s2617_s21 + $0xea8] sm:$0xff] %v1661_v35  ;;  %v1666_v42 = vand.u32 2147483647, %v1154_v37  ;;  %v646_v46 = vld [vmem:[%s2592_s6 + $0xef8] sm:$0xff]  ;;  %v647_v51 = vld [vmem:[%s2592_s6 + $0xf00] sm:$0xff] }
 0x179   : > { %2174 = vst [vmem:[%s2617_s21 + $0xeb0] sm:$0xff] %v1662_v36  ;;  %2175 = vst [vmem:[%s2617_s21 + $0xeb8] sm:$0xff] %v1663_v38  ;;  %v1667_v47 = vand.u32 2147483647, %v1155_v41  ;;  %v1159_v50 = vsub.f32 %v646_v46, %v2599_v1  ;;  %v648_v52 = vld [vmem:[%s2592_s6 + $0xf08] sm:$0xff]  ;;  %v649_v53 = vld [vmem:[%s2592_s6 + $0xf10] sm:$0xff]  ;;  %v1160_v55 = vsub.f32 %v647_v51, %v2599_v1 }
 0x17a   : > { %2176 = vst [vmem:[%s2617_s21 + $0xec0] sm:$0xff] %v1664_v39  ;;  %2177 = vst [vmem:[%s2617_s21 + $0xec8] sm:$0xff] %v1665_v40  ;;  %v1668_v54 = vand.u32 2147483647, %v1156_v43  ;;  %v1161_v56 = vsub.f32 %v648_v52, %v2599_v1  ;;  %v1162_v57 = vsub.f32 %v649_v53, %v2599_v1  ;;  %v650_v58 = vld [vmem:[%s2592_s6 + $0xf18] sm:$0xff]  ;;  %v651_v59 = vld [vmem:[%s2592_s6 + $0xf20] sm:$0xff] }
 0x17b   : > { %2178 = vst [vmem:[%s2617_s21 + $0xed0] sm:$0xff] %v1666_v42  ;;  %v652_v60 = vld [vmem:[%s2592_s6 + $0xf28] sm:$0xff]  ;;  %2179 = vst [vmem:[%s2617_s21 + $0xed8] sm:$0xff] %v1667_v47  ;;  %v1669_v61 = vand.u32 2147483647, %v1157_v48  ;;  %v1163_v0 = vsub.f32 %v650_v58, %v2599_v1  ;;  %v1164_v5 = vsub.f32 %v651_v59, %v2599_v1  ;;  %v653_v8 = vld [vmem:[%s2592_s6 + $0xf30] sm:$0xff] }
 0x17c   : > { %v1670_v62 = vand.u32 2147483647, %v1158_v49  ;;  %v1671_v63 = vand.u32 2147483647, %v1159_v50  ;;  %2180 = vst [vmem:[%s2617_s21 + $0xee0] sm:$0xff] %v1668_v54  ;;  %v1165_v7 = vsub.f32 %v652_v60, %v2599_v1  ;;  %v654_v9 = vld [vmem:[%s2592_s6 + $0xf38] sm:$0xff]  ;;  %v1166_v12 = vsub.f32 %v653_v8, %v2599_v1 }
 0x17d   : > { %v1672_v2 = vand.u32 2147483647, %v1160_v55  ;;  %v1673_v3 = vand.u32 2147483647, %v1161_v56  ;;  %v1674_v4 = vand.u32 2147483647, %v1162_v57  ;;  %v1167_v13 = vsub.f32 %v654_v9, %v2599_v1 }
 0x17e   : > { %2181 = vst [vmem:[%s2617_s21 + $0xee8] sm:$0xff] %v1669_v61  ;;  %2182 = vst [vmem:[%s2617_s21 + $0xef0] sm:$0xff] %v1670_v62  ;;  %v1675_v6 = vand.u32 2147483647, %v1163_v0  ;;  %v655_v10 = vld [vmem:[%s2592_s6 + $0xf40] sm:$0xff]  ;;  %v656_v15 = vld [vmem:[%s2592_s6 + $0xf48] sm:$0xff] }
 0x17f   : > { %2183 = vst [vmem:[%s2617_s21 + $0xef8] sm:$0xff] %v1671_v63  ;;  %2184 = vst [vmem:[%s2617_s21 + $0xf00] sm:$0xff] %v1672_v2  ;;  %v1676_v11 = vand.u32 2147483647, %v1164_v5  ;;  %v1168_v14 = vsub.f32 %v655_v10, %v2599_v1  ;;  %v657_v16 = vld [vmem:[%s2592_s6 + $0xf50] sm:$0xff]  ;;  %v658_v17 = vld [vmem:[%s2592_s6 + $0xf58] sm:$0xff]  ;;  %v1169_v19 = vsub.f32 %v656_v15, %v2599_v1 }
 0x180   : > { %2185 = vst [vmem:[%s2617_s21 + $0xf08] sm:$0xff] %v1673_v3  ;;  %2186 = vst [vmem:[%s2617_s21 + $0xf10] sm:$0xff] %v1674_v4  ;;  %v1677_v18 = vand.u32 2147483647, %v1165_v7  ;;  %v1170_v20 = vsub.f32 %v657_v16, %v2599_v1  ;;  %v1171_v21 = vsub.f32 %v658_v17, %v2599_v1  ;;  %v659_v22 = vld [vmem:[%s2592_s6 + $0xf60] sm:$0xff]  ;;  %v660_v23 = vld [vmem:[%s2592_s6 + $0xf68] sm:$0xff] }
 0x181   : > { %2187 = vst [vmem:[%s2617_s21 + $0xf18] sm:$0xff] %v1675_v6  ;;  %v661_v24 = vld [vmem:[%s2592_s6 + $0xf70] sm:$0xff]  ;;  %2188 = vst [vmem:[%s2617_s21 + $0xf20] sm:$0xff] %v1676_v11  ;;  %v1678_v25 = vand.u32 2147483647, %v1166_v12  ;;  %v1172_v28 = vsub.f32 %v659_v22, %v2599_v1  ;;  %v1173_v32 = vsub.f32 %v660_v23, %v2599_v1  ;;  %v662_v35 = vld [vmem:[%s2592_s6 + $0xf78] sm:$0xff] }
 0x182   : > { %v1679_v26 = vand.u32 2147483647, %v1167_v13  ;;  %v1680_v27 = vand.u32 2147483647, %v1168_v14  ;;  %2189 = vst [vmem:[%s2617_s21 + $0xf28] sm:$0xff] %v1677_v18  ;;  %v1174_v34 = vsub.f32 %v661_v24, %v2599_v1  ;;  %v663_v36 = vld [vmem:[%s2592_s6 + $0xf80] sm:$0xff]  ;;  %v1175_v39 = vsub.f32 %v662_v35, %v2599_v1 }
 0x183   : > { %v1681_v29 = vand.u32 2147483647, %v1169_v19  ;;  %v1682_v30 = vand.u32 2147483647, %v1170_v20  ;;  %v1683_v31 = vand.u32 2147483647, %v1171_v21  ;;  %v1176_v40 = vsub.f32 %v663_v36, %v2599_v1 }
 0x184   : > { %2190 = vst [vmem:[%s2617_s21 + $0xf30] sm:$0xff] %v1678_v25  ;;  %2191 = vst [vmem:[%s2617_s21 + $0xf38] sm:$0xff] %v1679_v26  ;;  %v1684_v33 = vand.u32 2147483647, %v1172_v28  ;;  %v664_v37 = vld [vmem:[%s2592_s6 + $0xf88] sm:$0xff]  ;;  %v665_v42 = vld [vmem:[%s2592_s6 + $0xf90] sm:$0xff] }
 0x185   : > { %2192 = vst [vmem:[%s2617_s21 + $0xf40] sm:$0xff] %v1680_v27  ;;  %2193 = vst [vmem:[%s2617_s21 + $0xf48] sm:$0xff] %v1681_v29  ;;  %v1685_v38 = vand.u32 2147483647, %v1173_v32  ;;  %v1177_v41 = vsub.f32 %v664_v37, %v2599_v1  ;;  %v666_v43 = vld [vmem:[%s2592_s6 + $0xf98] sm:$0xff]  ;;  %v667_v44 = vld [vmem:[%s2592_s6 + $0xfa0] sm:$0xff]  ;;  %v1178_v46 = vsub.f32 %v665_v42, %v2599_v1 }
 0x186   : > { %2194 = vst [vmem:[%s2617_s21 + $0xf50] sm:$0xff] %v1682_v30  ;;  %2195 = vst [vmem:[%s2617_s21 + $0xf58] sm:$0xff] %v1683_v31  ;;  %v1686_v45 = vand.u32 2147483647, %v1174_v34  ;;  %v1179_v47 = vsub.f32 %v666_v43, %v2599_v1  ;;  %v1180_v48 = vsub.f32 %v667_v44, %v2599_v1  ;;  %v668_v49 = vld [vmem:[%s2592_s6 + $0xfa8] sm:$0xff]  ;;  %v669_v50 = vld [vmem:[%s2592_s6 + $0xfb0] sm:$0xff] }
 0x187   : > { %2196 = vst [vmem:[%s2617_s21 + $0xf60] sm:$0xff] %v1684_v33  ;;  %v670_v51 = vld [vmem:[%s2592_s6 + $0xfb8] sm:$0xff]  ;;  %2197 = vst [vmem:[%s2617_s21 + $0xf68] sm:$0xff] %v1685_v38  ;;  %v1687_v52 = vand.u32 2147483647, %v1175_v39  ;;  %v1181_v55 = vsub.f32 %v668_v49, %v2599_v1  ;;  %v1182_v59 = vsub.f32 %v669_v50, %v2599_v1  ;;  %v671_v62 = vld [vmem:[%s2592_s6 + $0xfc0] sm:$0xff] }
 0x188   : > { %v1688_v53 = vand.u32 2147483647, %v1176_v40  ;;  %v1689_v54 = vand.u32 2147483647, %v1177_v41  ;;  %2198 = vst [vmem:[%s2617_s21 + $0xf70] sm:$0xff] %v1686_v45  ;;  %v1183_v61 = vsub.f32 %v670_v51, %v2599_v1  ;;  %v672_v63 = vld [vmem:[%s2592_s6 + $0xfc8] sm:$0xff]  ;;  %v1184_v3 = vsub.f32 %v671_v62, %v2599_v1 }
 0x189   : > { %v1690_v56 = vand.u32 2147483647, %v1178_v46  ;;  %v1691_v57 = vand.u32 2147483647, %v1179_v47  ;;  %v1692_v58 = vand.u32 2147483647, %v1180_v48  ;;  %v1185_v4 = vsub.f32 %v672_v63, %v2599_v1 }
 0x18a   : > { %2199 = vst [vmem:[%s2617_s21 + $0xf78] sm:$0xff] %v1687_v52  ;;  %2200 = vst [vmem:[%s2617_s21 + $0xf80] sm:$0xff] %v1688_v53  ;;  %v1693_v60 = vand.u32 2147483647, %v1181_v55  ;;  %v673_v0 = vld [vmem:[%s2592_s6 + $0xfd0] sm:$0xff]  ;;  %v674_v6 = vld [vmem:[%s2592_s6 + $0xfd8] sm:$0xff] }
 0x18b   : > { %2201 = vst [vmem:[%s2617_s21 + $0xf88] sm:$0xff] %v1689_v54  ;;  %2202 = vst [vmem:[%s2617_s21 + $0xf90] sm:$0xff] %v1690_v56  ;;  %v1694_v2 = vand.u32 2147483647, %v1182_v59  ;;  %v1186_v5 = vsub.f32 %v673_v0, %v2599_v1  ;;  %v675_v7 = vld [vmem:[%s2592_s6 + $0xfe0] sm:$0xff]  ;;  %v676_v8 = vld [vmem:[%s2592_s6 + $0xfe8] sm:$0xff]  ;;  %v1187_v10 = vsub.f32 %v674_v6, %v2599_v1 }
 0x18c   : > { %2203 = vst [vmem:[%s2617_s21 + $0xf98] sm:$0xff] %v1691_v57  ;;  %2204 = vst [vmem:[%s2617_s21 + $0xfa0] sm:$0xff] %v1692_v58  ;;  %v1695_v9 = vand.u32 2147483647, %v1183_v61  ;;  %v1188_v11 = vsub.f32 %v675_v7, %v2599_v1  ;;  %v1189_v12 = vsub.f32 %v676_v8, %v2599_v1  ;;  %v677_v13 = vld [vmem:[%s2592_s6 + $0xff0] sm:$0xff]  ;;  %v678_v14 = vld [vmem:[%s2592_s6 + $0xff8] sm:$0xff] }
 0x18d   : > { %2205 = vst [vmem:[%s2617_s21 + $0xfa8] sm:$0xff] %v1693_v60  ;;  %2206 = vst [vmem:[%s2617_s21 + $0xfb0] sm:$0xff] %v1694_v2  ;;  %v1696_v15 = vand.u32 2147483647, %v1184_v3  ;;  %v1697_v16 = vand.u32 2147483647, %v1185_v4  ;;  %v1190_v18 = vsub.f32 %v677_v13, %v2599_v1  ;;  %v1191_v22 = vsub.f32 %v678_v14, %v2599_v1 }
 0x18e   : > { %v1698_v17 = vand.u32 2147483647, %v1186_v5  ;;  %2207 = vst [vmem:[%s2617_s21 + $0xfb8] sm:$0xff] %v1695_v9  ;;  %v1699_v19 = vand.u32 2147483647, %v1187_v10 }
 0x18f   : > { %v1700_v20 = vand.u32 2147483647, %v1188_v11  ;;  %v1701_v21 = vand.u32 2147483647, %v1189_v12  ;;  %2208 = vst [vmem:[%s2617_s21 + $0xfc0] sm:$0xff] %v1696_v15  ;;  %2209 = vst [vmem:[%s2617_s21 + $0xfc8] sm:$0xff] %v1697_v16 }
 0x190   : > { %2210 = vst [vmem:[%s2617_s21 + $0xfd0] sm:$0xff] %v1698_v17  ;;  %v1702_v23 = vand.u32 2147483647, %v1190_v18  ;;  %2211 = vst [vmem:[%s2617_s21 + $0xfd8] sm:$0xff] %v1699_v19  ;;  %v1703_v24 = vand.u32 2147483647, %v1191_v22 }
 0x191   : > { %2212 = vst [vmem:[%s2617_s21 + $0xfe0] sm:$0xff] %v1700_v20  ;;  %2213 = vst [vmem:[%s2617_s21 + $0xfe8] sm:$0xff] %v1701_v21 }
 0x192   : > { %2214 = vst [vmem:[%s2617_s21 + $0xff0] sm:$0xff] %v1702_v23  ;;  %2215 = vst [vmem:[%s2617_s21 + $0xff8] sm:$0xff] %v1703_v24 }
 0x193   : > { %2415 = shalt.err (!%p2412_p9)
}
 0x194   : > { %s2416_s18 = scalar_lea.hbm %s4138_s7, 65536  ;;  %s2420_s25 = scalar_lea.hbm %s4189_s2, 262144 }
 0x195   : > { %p2417_p13 = scmp.ne.s32.totalorder %s4138_s7, %s2416_s18  ;;  %p2421_p2 = scmp.lt.s32.totalorder %s4138_s7, %s4189_s2 }
 0x196   : > { %p2422_p3 = scmp.lt.s32.totalorder %s2420_s25, %s2416_s18 }
 0x197   : > { %p2418_p1 = pnand %p2417_p13, %p4198_p11 }
 0x198   : > { %p2423_p6 = por %p2422_p3, %p2421_p2 }
 0x199   : > { %p2419_p0 = pneg %p2418_p1 }
 0x19b   : > { %p2424_p10 = pnand %p2423_p6, %p2419_p0 }
 0x19d   : > { %2427 = shalt.err (!%p2424_p10)
}
 0x19e   : > { %s2472_s30 = smov 256   ;;  %s2473_s6 = smov 16  }
 0x19f   : > { %2326 = dma.vmem_to_hbm [thread:$0]  (%p4198_p11), %s4140_s4, 65536, %s4138_s7, %s2217_s8, %s2472_s30, %s2472_s30, %s2473_s6  }
 0x1a0 PF: > { %p2337_p12 = scmp.ge.s32.totalorder %s2466_s14, 2  ;;  %s2246_s29 = sand.u32 1, %s2454_s11  }
 0x1a1   : > { %p4199_p4 = scmp.ne.s32.totalorder %s4195_s23, 0  ;;  %s2247_s21 = scalar_lea.sflag [#allocation5], %s2246_s29 }
 0x1a3   : > { %p2333_p5 = pnand %p2337_p12, %p4199_p4 }
 0x1a5   : > { %p2334_p7 = pneg %p2333_p5 }
 0x1a7   : > { %2449 = dma.done.wait (%p2334_p7), %s2247_s21, 65536  }
 0x1a8   : > { %2451 = vsyncadd (%p2334_p7), %s2247_s21, 4294901760  ;;  %p16_p8 = scmp.ge.s32.totalorder %s2517_s16, 6   ;;  %s4200_s11 = smov %s2458_s12 }
 0x1a9   : > { %s4201_s12 = smov %s2462_s13  ;;  %s4202_s13 = smov %s2529_s19 }
 0x1aa   : > { %s4203_s14 = smov %s2517_s16  ;;  %18 = sbr.rel (!%p16_p8) target bundleno = 7 (0x7), region = 73 }
 0x1af   :  { %2252 = vsyncpa [#allocation4], 1 }
 0x1b0   :  { %2254 = vsyncpa [#allocation4 + $0x1], 1 }
 0x1b1   :  { %2255 = vsyncpa [#allocation5], 1 }
 0x1b2   :  { %2257 = vsyncpa [#allocation5 + $0x1], 1 }

</bundles_post_ra>
